<compile_context>
chip_gen: v5e
topology: v5e:2x2
jax: 0.10.0
libtpu: 0.0.40
codegen_flags: <defaults>
</compile_context>

<pallas_src>
import functools
import math

import jax
import jax.numpy as jnp
import numpy as np
from jax import lax
from jax.experimental import pallas as pl
from jax.experimental.pallas import tpu as pltpu


def _slstm_kernel(
    # inputs
    x_ref,
    wih1_ref, whh1_ref, b1_ref, thr1_ref,
    wih2_ref, whh2_ref, b2_ref, thr2_ref,
    wih3_ref, whh3_ref, b3_ref, thr3_ref,
    fc1w_ref, fc1b_ref, beta1_ref,
    fc2w_ref, fc2b_ref, beta2_ref,
    # outputs
    out_ref, spk23_ref,
    # scratch (recurrent state, persists across the time-chunk grid)
    syn1_r, mem1_r, syn2_r, mem2_r, syn3_r, mem3_r, memo1_r, memo2_r, acc_r,
    *, hidden, nout, tt, bp, b_real, t_real, t_pad,
):
    c = pl.program_id(0)
    H = hidden
    O = nout
    f32 = jnp.float32

    state_refs = (syn1_r, mem1_r, syn2_r, mem2_r, syn3_r, mem3_r,
                  memo1_r, memo2_r, acc_r)

    @pl.when(c == 0)
    def _init():
        for r in state_refs:
            r[...] = jnp.zeros_like(r)

    # [R3] Hoist the constant sublane broadcasts out of the time loop (JAX does not
    # CSE broadcast_in_dim; a per-step broadcast would otherwise be re-emitted).
    wih1 = jnp.broadcast_to(wih1_ref[...], (bp, 4 * H))
    b1 = jnp.broadcast_to(b1_ref[...], (bp, 4 * H))
    b2 = jnp.broadcast_to(b2_ref[...], (bp, 4 * H))
    b3 = jnp.broadcast_to(b3_ref[...], (bp, 4 * H))
    thr1 = jnp.broadcast_to(thr1_ref[...], (bp, H))
    thr2 = jnp.broadcast_to(thr2_ref[...], (bp, H))
    thr3 = jnp.broadcast_to(thr3_ref[...], (bp, H))
    fc1b = jnp.broadcast_to(fc1b_ref[...], (bp, H))
    fc2b = jnp.broadcast_to(fc2b_ref[...], (bp, O))
    beta1 = jnp.broadcast_to(beta1_ref[...], (bp, H))
    beta2 = jnp.broadcast_to(beta2_ref[...], (bp, O))

    def slstm_cell(gates, syn, mem_prev, thr):
        # [R2] One full-width sigmoid; g-gate recovered via tanh(z) = 2*sigmoid(2z)-1
        # (the 2x scaling of the g-columns was pre-applied to the weights / bias).
        sig = jax.nn.sigmoid(gates)
        i_g = sig[:, 0 * H:1 * H]
        f_g = sig[:, 1 * H:2 * H]
        g_g = 2.0 * sig[:, 2 * H:3 * H] - 1.0
        o_g = sig[:, 3 * H:4 * H]
        reset = (mem_prev > thr).astype(f32)           # heaviside(mem_prev - thr)
        c_new = f_g * syn + i_g * g_g
        h_new = o_g * jnp.tanh(c_new) - reset * thr    # reset-by-subtraction
        spk = (h_new > thr).astype(f32)
        return spk, c_new, h_new

    def step(i, carry):
        (syn1, mem1, syn2, mem2, syn3, mem3, memo1, memo2, acc) = carry
        x_t = x_ref[i]                                  # (Bp, 1)

        # Layer 1 (input size 1): the ih term is a rank-1 broadcast multiply (VPU).
        # [R1] hh matmuls read only carried state, so they are issued off the serial
        # critical path; they are intentionally NOT fused with the ih term.
        g1 = (x_t * wih1
              + jnp.dot(mem1, whh1_ref[...], preferred_element_type=f32) + b1)
        spk1, syn1, mem1 = slstm_cell(g1, syn1, mem1, thr1)

        g2 = (jnp.dot(spk1, wih2_ref[...], preferred_element_type=f32)
              + jnp.dot(mem2, whh2_ref[...], preferred_element_type=f32) + b2)
        spk2, syn2, mem2 = slstm_cell(g2, syn2, mem2, thr2)

        g3 = (jnp.dot(spk2, wih3_ref[...], preferred_element_type=f32)
              + jnp.dot(mem3, whh3_ref[...], preferred_element_type=f32) + b3)
        spk3, syn3, mem3 = slstm_cell(g3, syn3, mem3, thr3)

        # spk_23 elementwise accumulator; padded tail steps are masked out. [R11]
        if t_pad != t_real:
            valid = ((c * tt + i) < t_real).astype(f32)
            acc = acc + spk2 * valid
        else:
            acc = acc + spk2

        # fc1 -> Leaky (reset='none'); betas were clamped once in the wrapper.
        cur = jnp.dot(mem3, fc1w_ref[...], preferred_element_type=f32) + fc1b
        memo1 = beta1 * memo1 + cur
        # fc2 -> Leaky (reset='none')
        cur2 = jnp.dot(memo1, fc2w_ref[...], preferred_element_type=f32) + fc2b
        memo2 = beta2 * memo2 + cur2

        # [R5] Single merged output stream: [ cur2 | lif2 membrane | layer-3 spikes ].
        out_ref[i, :, 0:O] = cur2
        out_ref[i, :, O:2 * O] = memo2
        out_ref[i, :, 2 * O:] = spk3

        return (syn1, mem1, syn2, mem2, syn3, mem3, memo1, memo2, acc)

    # [R4] fori_loop bounds the live ranges of per-step temporaries while keeping
    # scheduler visibility via a moderate unroll.
    carry0 = tuple(r[...] for r in state_refs)
    carry = lax.fori_loop(0, tt, step, carry0, unroll=min(tt, 8))

    # Persist the recurrent state for the next time chunk.
    for r, v in zip(state_refs, carry):
        r[...] = v

    # Single cross-lane/sublane reduction for spk_23, only on the last chunk.
    @pl.when(c == pl.num_programs(0) - 1)
    def _finalize():
        acc_final = carry[-1]
        spk23_ref[...] = jnp.sum(acc_final[:b_real, :], axis=(0, 1),
                                 keepdims=True) * (1.0 / float(t_real * b_real * H))


def _pick_time_chunk(t, max_tt=32):
    """[R11] Chunk length <= max_tt with minimal time padding (never tt=1 fallback)."""
    n_chunks = -(-t // max_tt)          # ceil(t / max_tt)
    tt = -(-t // n_chunks)              # ceil(t / n_chunks)  (<= max_tt)
    return tt, tt * n_chunks


def slstm_forward(x, params, *, max_tt=32):
    """x: [T, B, 1] float32.  Returns the same dict as the PyTorch SLSTM.forward."""
    T, B, _ = x.shape
    H = params["thr1"].shape[-1]
    O = params["fc2b"].shape[-1]
    C = 2 * O + H                                   # merged per-step output channels

    tt, t_pad = _pick_time_chunk(T, max_tt)
    n_chunks = t_pad // tt

    # Pad batch to a full sublane group (8); padded rows are independent & discarded.
    Bp = max(8, ((B + 7) // 8) * 8)
    x_p = jnp.zeros((t_pad, Bp, 1), jnp.float32).at[:T, :B].set(x.astype(jnp.float32))

    # Constant-per-call weight prep (hoisted off the per-step path):
    #   * clamp the Leaky betas once,
    #   * scale the g-gate columns by 2 so the kernel can use tanh(z)=2*sigmoid(2z)-1.
    def scale_g(w):
        return w.at[..., 2 * H:3 * H].multiply(2.0)

    prep = {
        "wih1": scale_g(params["wih1"]), "whh1": scale_g(params["whh1"]),
        "b1": scale_g(params["b1"]), "thr1": params["thr1"],
        "wih2": scale_g(params["wih2"]), "whh2": scale_g(params["whh2"]),
        "b2": scale_g(params["b2"]), "thr2": params["thr2"],
        "wih3": scale_g(params["wih3"]), "whh3": scale_g(params["whh3"]),
        "b3": scale_g(params["b3"]), "thr3": params["thr3"],
        "fc1w": params["fc1w"], "fc1b": params["fc1b"],
        "beta1": jnp.clip(params["beta1"], 0.0, 1.0),
        "fc2w": params["fc2w"], "fc2b": params["fc2b"],
        "beta2": jnp.clip(params["beta2"], 0.0, 1.0),
    }
    weight_names = ["wih1", "whh1", "b1", "thr1",
                    "wih2", "whh2", "b2", "thr2",
                    "wih3", "whh3", "b3", "thr3",
                    "fc1w", "fc1b", "beta1",
                    "fc2w", "fc2b", "beta2"]
    weights = [prep[n] for n in weight_names]

    in_specs = [pl.BlockSpec((tt, Bp, 1), lambda c: (c, 0, 0))]
    # Weight blocks: full arrays with a constant index_map -> fetched once and
    # VMEM-resident across the whole grid.
    # TODO(synk): pipeline_mode=pl.Buffered(1) would halve their VMEM at large H.
    in_specs += [pl.BlockSpec(w.shape, lambda c: (0, 0)) for w in weights]

    out_shapes = (
        jax.ShapeDtypeStruct((t_pad, Bp, C), jnp.float32),  # [cur2 | lif2 mem | spk3]
        jax.ShapeDtypeStruct((1, 1), jnp.float32),          # spk_23 (scalar)
    )
    out_specs = [
        pl.BlockSpec((tt, Bp, C), lambda c: (c, 0, 0)),
        pl.BlockSpec((1, 1), lambda c: (0, 0)),
    ]
    scratch = [pltpu.VMEM((Bp, H), jnp.float32)] * 7        # syn/mem x3 + lif1 mem
    scratch += [pltpu.VMEM((Bp, O), jnp.float32),           # lif2 mem
                pltpu.VMEM((Bp, H), jnp.float32)]           # spk_23 accumulator

    kernel = functools.partial(_slstm_kernel, hidden=H, nout=O, tt=tt, bp=Bp,
                               b_real=B, t_real=T, t_pad=t_pad)

    merged, spk23 = pl.pallas_call(
        kernel,
        out_shape=out_shapes,
        grid_spec=pltpu.PrefetchScalarGridSpec(
            num_scalar_prefetch=0,
            grid=(n_chunks,),
            in_specs=in_specs,
            out_specs=out_specs,
            scratch_shapes=scratch,
        ),
        compiler_params=pltpu.CompilerParams(
            dimension_semantics=("arbitrary",),     # time recurrence is sequential
            vmem_limit_bytes=32 * 1024 * 1024,
        ),
    )(x_p, *weights)

    current = merged[:T, :B, 0:O]
    membrane_potential = jnp.mean(merged[:T, :B, O:2 * O], axis=-1, keepdims=True)
    spikes = merged[:T, :B, 2 * O:]
    return {"current": current,
            "membrane_potential": membrane_potential,
            "spikes": spikes,
            "spk_23": spk23[0, 0]}


def init_params(key, hidden, num_output):
    """Deterministic synthetic parameters matching snntorch/PyTorch shapes."""
    H, O = hidden, num_output
    ks = list(jax.random.split(key, 24))
    it = iter(ks)

    def uni(shape, bound):
        return jax.random.uniform(next(it), shape, jnp.float32, -bound, bound)

    def rand01(shape):
        return jax.random.uniform(next(it), shape, jnp.float32)

    kH = 1.0 / math.sqrt(H)
    p = {}
    # SLSTM layer 1 (input_size = 1): weights stored transposed for right-multiply.
    p["wih1"] = uni((1, 4 * H), kH)
    p["whh1"] = uni((H, 4 * H), kH)
    p["b1"] = uni((1, 4 * H), kH) + uni((1, 4 * H), kH)   # bias_ih + bias_hh
    p["thr1"] = rand01((1, H))
    for layer in (2, 3):                                   # input_size = H
        p[f"wih{layer}"] = uni((H, 4 * H), kH)
        p[f"whh{layer}"] = uni((H, 4 * H), kH)
        p[f"b{layer}"] = uni((1, 4 * H), kH) + uni((1, 4 * H), kH)
        p[f"thr{layer}"] = rand01((1, H))
    # fc1 + lif1
    p["fc1w"] = uni((H, H), kH)
    p["fc1b"] = uni((1, H), kH)
    p["beta1"] = rand01((1, H))
    # fc2 + lif2
    p["fc2w"] = uni((H, O), kH)
    p["fc2b"] = uni((1, O), kH)
    p["beta2"] = rand01((1, O))
    return p


def slstm_reference(x, p):
    """Pure-JAX reference mirroring the PyTorch/snntorch forward, for verification."""
    T, B, _ = x.shape
    H = p["thr1"].shape[-1]
    O = p["fc2b"].shape[-1]
    syn1 = mem1 = syn2 = mem2 = syn3 = mem3 = jnp.zeros((B, H), jnp.float32)
    memo1 = jnp.zeros((B, H), jnp.float32)
    memo2 = jnp.zeros((B, O), jnp.float32)

    def cell(x_t, syn, mem, wih, whh, b, thr):
        reset = (mem - thr > 0).astype(jnp.float32)
        g = x_t @ wih + mem @ whh + b
        i_, f_, g_, o_ = jnp.split(g, 4, axis=-1)
        c = jax.nn.sigmoid(f_) * syn + jax.nn.sigmoid(i_) * jnp.tanh(g_)
        h = jax.nn.sigmoid(o_) * jnp.tanh(c) - reset * thr
        spk = (h - thr > 0).astype(jnp.float32)
        return spk, c, h

    curs, memos, spks, spk2s = [], [], [], []
    for t in range(T):
        x_t = x[t]
        spk1, syn1, mem1 = cell(x_t, syn1, mem1, p["wih1"], p["whh1"], p["b1"], p["thr1"])
        spk2, syn2, mem2 = cell(spk1, syn2, mem2, p["wih2"], p["whh2"], p["b2"], p["thr2"])
        spk3, syn3, mem3 = cell(spk2, syn3, mem3, p["wih3"], p["whh3"], p["b3"], p["thr3"])
        spk2s.append(spk2)
        cur = mem3 @ p["fc1w"] + p["fc1b"]
        memo1 = jnp.clip(p["beta1"], 0.0, 1.0) * memo1 + cur
        cur2 = memo1 @ p["fc2w"] + p["fc2b"]
        memo2 = jnp.clip(p["beta2"], 0.0, 1.0) * memo2 + cur2
        curs.append(cur2)
        memos.append(jnp.mean(memo2, axis=-1, keepdims=True))
        spks.append(spk3)
    return {"current": jnp.stack(curs),
            "membrane_potential": jnp.stack(memos),
            "spikes": jnp.stack(spks),
            "spk_23": jnp.mean(jnp.stack(spk2s))}


if __name__ == "__main__":
    T, B, H, O = 8, 2, 32, 4          # timesteps, batch, hidden, num_output
    key = jax.random.PRNGKey(0)
    kx, kp = jax.random.split(key)
    x = jax.random.normal(kx, (T, B, 1), jnp.float32)
    params = init_params(kp, H, O)

    out = jax.jit(slstm_forward)(x, params)
    out = jax.block_until_ready(out)

    ref = slstm_reference(x, params)
    for name in ("current", "membrane_potential", "spikes"):
        np.testing.assert_allclose(np.asarray(out[name]), np.asarray(ref[name]),
                                   rtol=5e-5, atol=5e-5)
    np.testing.assert_allclose(float(out["spk_23"]), float(ref["spk_23"]),
                               rtol=5e-5, atol=5e-5)
    print("KERNEL_OK")
</pallas_src>

<mosaic_0001>
module attributes {stable_mosaic.version = 11 : i64} {
  func.func @_slstm_kernel(%arg0: i32, %arg1: memref<8x8x1xf32, #tpu.memory_space<vmem>>, %arg2: memref<1x128xf32, #tpu.memory_space<vmem>>, %arg3: memref<32x128xf32, #tpu.memory_space<vmem>>, %arg4: memref<1x128xf32, #tpu.memory_space<vmem>>, %arg5: memref<1x32xf32, #tpu.memory_space<vmem>>, %arg6: memref<32x128xf32, #tpu.memory_space<vmem>>, %arg7: memref<32x128xf32, #tpu.memory_space<vmem>>, %arg8: memref<1x128xf32, #tpu.memory_space<vmem>>, %arg9: memref<1x32xf32, #tpu.memory_space<vmem>>, %arg10: memref<32x128xf32, #tpu.memory_space<vmem>>, %arg11: memref<32x128xf32, #tpu.memory_space<vmem>>, %arg12: memref<1x128xf32, #tpu.memory_space<vmem>>, %arg13: memref<1x32xf32, #tpu.memory_space<vmem>>, %arg14: memref<32x32xf32, #tpu.memory_space<vmem>>, %arg15: memref<1x32xf32, #tpu.memory_space<vmem>>, %arg16: memref<1x32xf32, #tpu.memory_space<vmem>>, %arg17: memref<32x4xf32, #tpu.memory_space<vmem>>, %arg18: memref<1x4xf32, #tpu.memory_space<vmem>>, %arg19: memref<1x4xf32, #tpu.memory_space<vmem>>, %arg20: memref<8x8x40xf32, #tpu.memory_space<vmem>>, %arg21: memref<1x1xf32, #tpu.memory_space<vmem>>, %arg22: memref<8x32xf32, #tpu.memory_space<vmem>>, %arg23: memref<8x32xf32, #tpu.memory_space<vmem>>, %arg24: memref<8x32xf32, #tpu.memory_space<vmem>>, %arg25: memref<8x32xf32, #tpu.memory_space<vmem>>, %arg26: memref<8x32xf32, #tpu.memory_space<vmem>>, %arg27: memref<8x32xf32, #tpu.memory_space<vmem>>, %arg28: memref<8x32xf32, #tpu.memory_space<vmem>>, %arg29: memref<8x4xf32, #tpu.memory_space<vmem>>, %arg30: memref<8x32xf32, #tpu.memory_space<vmem>>) attributes {dimension_semantics = [#tpu.dimension_semantics<arbitrary>], iteration_bounds = array<i64: 1>, scalar_prefetch = 0 : i64, scratch_operands = 9 : i64, tpu.core_type = #tpu.core_type<tc>, window_params = [{transform_indices = @transform_0, window_bounds = array<i64: 8, 8, 1>}, {pipeline_mode = #tpu.pipeline_mode<synchronous>, transform_indices = @transform_1, window_bounds = array<i64: 1, 128>}, {pipeline_mode = #tpu.pipeline_mode<synchronous>, transform_indices = @transform_2, window_bounds = array<i64: 32, 128>}, {pipeline_mode = #tpu.pipeline_mode<synchronous>, transform_indices = @transform_3, window_bounds = array<i64: 1, 128>}, {pipeline_mode = #tpu.pipeline_mode<synchronous>, transform_indices = @transform_4, window_bounds = array<i64: 1, 32>}, {pipeline_mode = #tpu.pipeline_mode<synchronous>, transform_indices = @transform_5, window_bounds = array<i64: 32, 128>}, {pipeline_mode = #tpu.pipeline_mode<synchronous>, transform_indices = @transform_6, window_bounds = array<i64: 32, 128>}, {pipeline_mode = #tpu.pipeline_mode<synchronous>, transform_indices = @transform_7, window_bounds = array<i64: 1, 128>}, {pipeline_mode = #tpu.pipeline_mode<synchronous>, transform_indices = @transform_8, window_bounds = array<i64: 1, 32>}, {pipeline_mode = #tpu.pipeline_mode<synchronous>, transform_indices = @transform_9, window_bounds = array<i64: 32, 128>}, {pipeline_mode = #tpu.pipeline_mode<synchronous>, transform_indices = @transform_10, window_bounds = array<i64: 32, 128>}, {pipeline_mode = #tpu.pipeline_mode<synchronous>, transform_indices = @transform_11, window_bounds = array<i64: 1, 128>}, {pipeline_mode = #tpu.pipeline_mode<synchronous>, transform_indices = @transform_12, window_bounds = array<i64: 1, 32>}, {pipeline_mode = #tpu.pipeline_mode<synchronous>, transform_indices = @transform_13, window_bounds = array<i64: 32, 32>}, {pipeline_mode = #tpu.pipeline_mode<synchronous>, transform_indices = @transform_14, window_bounds = array<i64: 1, 32>}, {pipeline_mode = #tpu.pipeline_mode<synchronous>, transform_indices = @transform_15, window_bounds = array<i64: 1, 32>}, {pipeline_mode = #tpu.pipeline_mode<synchronous>, transform_indices = @transform_16, window_bounds = array<i64: 32, 4>}, {pipeline_mode = #tpu.pipeline_mode<synchronous>, transform_indices = @transform_17, window_bounds = array<i64: 1, 4>}, {pipeline_mode = #tpu.pipeline_mode<synchronous>, transform_indices = @transform_18, window_bounds = array<i64: 1, 4>}, {transform_indices = @transform_19, window_bounds = array<i64: 8, 8, 40>}, {pipeline_mode = #tpu.pipeline_mode<synchronous>, transform_indices = @transform_20, window_bounds = array<i64: 1, 1>}]} {
    %c0_i32 = arith.constant 0 : i32
    %0 = arith.cmpi eq, %arg0, %c0_i32 : i32
    %1 = arith.extui %0 : i1 to i32
    %c0_i32_0 = arith.constant 0 : i32
    %2 = arith.cmpi ne, %1, %c0_i32_0 : i32
    scf.if %2 {
      %cst_362 = arith.constant 0.000000e+00 : f32
      %1033 = vector.broadcast %cst_362 : f32 to vector<8x32xf32>
      %c0_363 = arith.constant 0 : index
      %c0_364 = arith.constant 0 : index
      %1034 = vector.load %arg22[%c0_363, %c0_364] : memref<8x32xf32, #tpu.memory_space<vmem>>, vector<8x32xf32>
      tpu.vector_store %arg22[%c0_363, %c0_364], %1033 {strides = array<i32>} : memref<8x32xf32, #tpu.memory_space<vmem>>, vector<8x32xf32>,
      %cst_365 = arith.constant 0.000000e+00 : f32
      %1035 = vector.broadcast %cst_365 : f32 to vector<8x32xf32>
      %c0_366 = arith.constant 0 : index
      %c0_367 = arith.constant 0 : index
      %1036 = vector.load %arg23[%c0_366, %c0_367] : memref<8x32xf32, #tpu.memory_space<vmem>>, vector<8x32xf32>
      tpu.vector_store %arg23[%c0_366, %c0_367], %1035 {strides = array<i32>} : memref<8x32xf32, #tpu.memory_space<vmem>>, vector<8x32xf32>,
      %cst_368 = arith.constant 0.000000e+00 : f32
      %1037 = vector.broadcast %cst_368 : f32 to vector<8x32xf32>
      %c0_369 = arith.constant 0 : index
      %c0_370 = arith.constant 0 : index
      %1038 = vector.load %arg24[%c0_369, %c0_370] : memref<8x32xf32, #tpu.memory_space<vmem>>, vector<8x32xf32>
      tpu.vector_store %arg24[%c0_369, %c0_370], %1037 {strides = array<i32>} : memref<8x32xf32, #tpu.memory_space<vmem>>, vector<8x32xf32>,
      %cst_371 = arith.constant 0.000000e+00 : f32
      %1039 = vector.broadcast %cst_371 : f32 to vector<8x32xf32>
      %c0_372 = arith.constant 0 : index
      %c0_373 = arith.constant 0 : index
      %1040 = vector.load %arg25[%c0_372, %c0_373] : memref<8x32xf32, #tpu.memory_space<vmem>>, vector<8x32xf32>
      tpu.vector_store %arg25[%c0_372, %c0_373], %1039 {strides = array<i32>} : memref<8x32xf32, #tpu.memory_space<vmem>>, vector<8x32xf32>,
      %cst_374 = arith.constant 0.000000e+00 : f32
      %1041 = vector.broadcast %cst_374 : f32 to vector<8x32xf32>
      %c0_375 = arith.constant 0 : index
      %c0_376 = arith.constant 0 : index
      %1042 = vector.load %arg26[%c0_375, %c0_376] : memref<8x32xf32, #tpu.memory_space<vmem>>, vector<8x32xf32>
      tpu.vector_store %arg26[%c0_375, %c0_376], %1041 {strides = array<i32>} : memref<8x32xf32, #tpu.memory_space<vmem>>, vector<8x32xf32>,
      %cst_377 = arith.constant 0.000000e+00 : f32
      %1043 = vector.broadcast %cst_377 : f32 to vector<8x32xf32>
      %c0_378 = arith.constant 0 : index
      %c0_379 = arith.constant 0 : index
      %1044 = vector.load %arg27[%c0_378, %c0_379] : memref<8x32xf32, #tpu.memory_space<vmem>>, vector<8x32xf32>
      tpu.vector_store %arg27[%c0_378, %c0_379], %1043 {strides = array<i32>} : memref<8x32xf32, #tpu.memory_space<vmem>>, vector<8x32xf32>,
      %cst_380 = arith.constant 0.000000e+00 : f32
      %1045 = vector.broadcast %cst_380 : f32 to vector<8x32xf32>
      %c0_381 = arith.constant 0 : index
      %c0_382 = arith.constant 0 : index
      %1046 = vector.load %arg28[%c0_381, %c0_382] : memref<8x32xf32, #tpu.memory_space<vmem>>, vector<8x32xf32>
      tpu.vector_store %arg28[%c0_381, %c0_382], %1045 {strides = array<i32>} : memref<8x32xf32, #tpu.memory_space<vmem>>, vector<8x32xf32>,
      %cst_383 = arith.constant 0.000000e+00 : f32
      %1047 = vector.broadcast %cst_383 : f32 to vector<8x4xf32>
      %c0_384 = arith.constant 0 : index
      %c0_385 = arith.constant 0 : index
      %1048 = vector.load %arg29[%c0_384, %c0_385] : memref<8x4xf32, #tpu.memory_space<vmem>>, vector<8x4xf32>
      tpu.vector_store %arg29[%c0_384, %c0_385], %1047 {strides = array<i32>} : memref<8x4xf32, #tpu.memory_space<vmem>>, vector<8x4xf32>,
      %cst_386 = arith.constant 0.000000e+00 : f32
      %1049 = vector.broadcast %cst_386 : f32 to vector<8x32xf32>
      %c0_387 = arith.constant 0 : index
      %c0_388 = arith.constant 0 : index
      %1050 = vector.load %arg30[%c0_387, %c0_388] : memref<8x32xf32, #tpu.memory_space<vmem>>, vector<8x32xf32>
      tpu.vector_store %arg30[%c0_387, %c0_388], %1049 {strides = array<i32>} : memref<8x32xf32, #tpu.memory_space<vmem>>, vector<8x32xf32>,
    } else {
    }
    %c0 = arith.constant 0 : index
    %c0_1 = arith.constant 0 : index
    %3 = vector.load %arg2[%c0, %c0_1] : memref<1x128xf32, #tpu.memory_space<vmem>>, vector<1x128xf32>
    %4 = vector.shape_cast %3 : vector<1x128xf32> to vector<1x128xf32>
    %5 = vector.broadcast %4 : vector<1x128xf32> to vector<8x128xf32>
    %c0_2 = arith.constant 0 : index
    %c0_3 = arith.constant 0 : index
    %6 = vector.load %arg4[%c0_2, %c0_3] : memref<1x128xf32, #tpu.memory_space<vmem>>, vector<1x128xf32>
    %7 = vector.shape_cast %6 : vector<1x128xf32> to vector<1x128xf32>
    %8 = vector.broadcast %7 : vector<1x128xf32> to vector<8x128xf32>
    %c0_4 = arith.constant 0 : index
    %c0_5 = arith.constant 0 : index
    %9 = vector.load %arg8[%c0_4, %c0_5] : memref<1x128xf32, #tpu.memory_space<vmem>>, vector<1x128xf32>
    %10 = vector.shape_cast %9 : vector<1x128xf32> to vector<1x128xf32>
    %11 = vector.broadcast %10 : vector<1x128xf32> to vector<8x128xf32>
    %c0_6 = arith.constant 0 : index
    %c0_7 = arith.constant 0 : index
    %12 = vector.load %arg12[%c0_6, %c0_7] : memref<1x128xf32, #tpu.memory_space<vmem>>, vector<1x128xf32>
    %13 = vector.shape_cast %12 : vector<1x128xf32> to vector<1x128xf32>
    %14 = vector.broadcast %13 : vector<1x128xf32> to vector<8x128xf32>
    %c0_8 = arith.constant 0 : index
    %c0_9 = arith.constant 0 : index
    %15 = vector.load %arg5[%c0_8, %c0_9] : memref<1x32xf32, #tpu.memory_space<vmem>>, vector<1x32xf32>
    %16 = vector.shape_cast %15 : vector<1x32xf32> to vector<1x32xf32>
    %17 = vector.broadcast %16 : vector<1x32xf32> to vector<8x32xf32>
    %c0_10 = arith.constant 0 : index
    %c0_11 = arith.constant 0 : index
    %18 = vector.load %arg9[%c0_10, %c0_11] : memref<1x32xf32, #tpu.memory_space<vmem>>, vector<1x32xf32>
    %19 = vector.shape_cast %18 : vector<1x32xf32> to vector<1x32xf32>
    %20 = vector.broadcast %19 : vector<1x32xf32> to vector<8x32xf32>
    %c0_12 = arith.constant 0 : index
    %c0_13 = arith.constant 0 : index
    %21 = vector.load %arg13[%c0_12, %c0_13] : memref<1x32xf32, #tpu.memory_space<vmem>>, vector<1x32xf32>
    %22 = vector.shape_cast %21 : vector<1x32xf32> to vector<1x32xf32>
    %23 = vector.broadcast %22 : vector<1x32xf32> to vector<8x32xf32>
    %c0_14 = arith.constant 0 : index
    %c0_15 = arith.constant 0 : index
    %24 = vector.load %arg15[%c0_14, %c0_15] : memref<1x32xf32, #tpu.memory_space<vmem>>, vector<1x32xf32>
    %25 = vector.shape_cast %24 : vector<1x32xf32> to vector<1x32xf32>
    %26 = vector.broadcast %25 : vector<1x32xf32> to vector<8x32xf32>
    %c0_16 = arith.constant 0 : index
    %c0_17 = arith.constant 0 : index
    %27 = vector.load %arg18[%c0_16, %c0_17] : memref<1x4xf32, #tpu.memory_space<vmem>>, vector<1x4xf32>
    %28 = vector.shape_cast %27 : vector<1x4xf32> to vector<1x4xf32>
    %29 = vector.broadcast %28 : vector<1x4xf32> to vector<8x4xf32>
    %c0_18 = arith.constant 0 : index
    %c0_19 = arith.constant 0 : index
    %30 = vector.load %arg16[%c0_18, %c0_19] : memref<1x32xf32, #tpu.memory_space<vmem>>, vector<1x32xf32>
    %31 = vector.shape_cast %30 : vector<1x32xf32> to vector<1x32xf32>
    %32 = vector.broadcast %31 : vector<1x32xf32> to vector<8x32xf32>
    %c0_20 = arith.constant 0 : index
    %c0_21 = arith.constant 0 : index
    %33 = vector.load %arg19[%c0_20, %c0_21] : memref<1x4xf32, #tpu.memory_space<vmem>>, vector<1x4xf32>
    %34 = vector.shape_cast %33 : vector<1x4xf32> to vector<1x4xf32>
    %35 = vector.broadcast %34 : vector<1x4xf32> to vector<8x4xf32>
    %c0_22 = arith.constant 0 : index
    %c0_23 = arith.constant 0 : index
    %36 = vector.load %arg22[%c0_22, %c0_23] : memref<8x32xf32, #tpu.memory_space<vmem>>, vector<8x32xf32>
    %c0_24 = arith.constant 0 : index
    %c0_25 = arith.constant 0 : index
    %37 = vector.load %arg23[%c0_24, %c0_25] : memref<8x32xf32, #tpu.memory_space<vmem>>, vector<8x32xf32>
    %c0_26 = arith.constant 0 : index
    %c0_27 = arith.constant 0 : index
    %38 = vector.load %arg24[%c0_26, %c0_27] : memref<8x32xf32, #tpu.memory_space<vmem>>, vector<8x32xf32>
    %c0_28 = arith.constant 0 : index
    %c0_29 = arith.constant 0 : index
    %39 = vector.load %arg25[%c0_28, %c0_29] : memref<8x32xf32, #tpu.memory_space<vmem>>, vector<8x32xf32>
    %c0_30 = arith.constant 0 : index
    %c0_31 = arith.constant 0 : index
    %40 = vector.load %arg26[%c0_30, %c0_31] : memref<8x32xf32, #tpu.memory_space<vmem>>, vector<8x32xf32>
    %c0_32 = arith.constant 0 : index
    %c0_33 = arith.constant 0 : index
    %41 = vector.load %arg27[%c0_32, %c0_33] : memref<8x32xf32, #tpu.memory_space<vmem>>, vector<8x32xf32>
    %c0_34 = arith.constant 0 : index
    %c0_35 = arith.constant 0 : index
    %42 = vector.load %arg28[%c0_34, %c0_35] : memref<8x32xf32, #tpu.memory_space<vmem>>, vector<8x32xf32>
    %c0_36 = arith.constant 0 : index
    %c0_37 = arith.constant 0 : index
    %43 = vector.load %arg29[%c0_36, %c0_37] : memref<8x4xf32, #tpu.memory_space<vmem>>, vector<8x4xf32>
    %c0_38 = arith.constant 0 : index
    %c0_39 = arith.constant 0 : index
    %44 = vector.load %arg30[%c0_38, %c0_39] : memref<8x32xf32, #tpu.memory_space<vmem>>, vector<8x32xf32>
    %c0_i32_40 = arith.constant 0 : i32
    %45 = arith.index_cast %c0_i32_40 : i32 to index
    %c0_41 = arith.constant 0 : index
    %c0_42 = arith.constant 0 : index
    %46 = vector.load %arg1[%45, %c0_41, %c0_42] : memref<8x8x1xf32, #tpu.memory_space<vmem>>, vector<1x8x1xf32>
    %47 = vector.shape_cast %46 : vector<1x8x1xf32> to vector<8x1xf32>
    %48 = vector.broadcast %47 : vector<8x1xf32> to vector<8x128xf32>
    %49 = arith.mulf %48, %5 : vector<8x128xf32>
    %c0_43 = arith.constant 0 : index
    %c0_44 = arith.constant 0 : index
    %50 = vector.load %arg3[%c0_43, %c0_44] : memref<32x128xf32, #tpu.memory_space<vmem>>, vector<32x128xf32>
    %cst = arith.constant dense<0.000000e+00> : vector<8x128xf32>
    %51 = tpu.matmul %37, %50, %cst {dimension_numbers = #tpu.dot_dimension_numbers<[1], [0], [0], [1], [0, 0, 1, 1], [], []>} : vector<8x32xf32>, vector<32x128xf32>, vector<8x128xf32> -> vector<8x128xf32>
    %52 = arith.addf %49, %51 : vector<8x128xf32>
    %53 = arith.addf %52, %8 : vector<8x128xf32>
    %54 = arith.negf %53 : vector<8x128xf32>
    %55 = math.exp %54 : vector<8x128xf32>
    %cst_45 = arith.constant 1.000000e+00 : f32
    %56 = vector.broadcast %cst_45 : f32 to vector<8x128xf32>
    %57 = arith.addf %56, %55 : vector<8x128xf32>
    %58 = arith.divf %56, %57 : vector<8x128xf32>
    %59 = vector.extract_strided_slice %58 {offsets = [0, 0], sizes = [8, 32], strides = [1, 1]} : vector<8x128xf32> to vector<8x32xf32>
    %60 = vector.extract_strided_slice %58 {offsets = [0, 32], sizes = [8, 32], strides = [1, 1]} : vector<8x128xf32> to vector<8x32xf32>
    %61 = vector.extract_strided_slice %58 {offsets = [0, 64], sizes = [8, 32], strides = [1, 1]} : vector<8x128xf32> to vector<8x32xf32>
    %cst_46 = arith.constant 2.000000e+00 : f32
    %62 = vector.broadcast %cst_46 : f32 to vector<8x32xf32>
    %63 = arith.mulf %62, %61 : vector<8x32xf32>
    %cst_47 = arith.constant 1.000000e+00 : f32
    %64 = vector.broadcast %cst_47 : f32 to vector<8x32xf32>
    %65 = arith.subf %63, %64 : vector<8x32xf32>
    %66 = vector.extract_strided_slice %58 {offsets = [0, 96], sizes = [8, 32], strides = [1, 1]} : vector<8x128xf32> to vector<8x32xf32>
    %67 = arith.cmpf ogt, %37, %17 : vector<8x32xf32>
    %68 = arith.extui %67 : vector<8x32xi1> to vector<8x32xi32>
    %69 = arith.sitofp %68 : vector<8x32xi32> to vector<8x32xf32>
    %70 = arith.mulf %60, %36 : vector<8x32xf32>
    %71 = arith.mulf %59, %65 : vector<8x32xf32>
    %72 = arith.addf %70, %71 : vector<8x32xf32>
    %73 = math.tanh %72 : vector<8x32xf32>
    %74 = arith.mulf %66, %73 : vector<8x32xf32>
    %75 = arith.mulf %69, %17 : vector<8x32xf32>
    %76 = arith.subf %74, %75 : vector<8x32xf32>
    %77 = arith.cmpf ogt, %76, %17 : vector<8x32xf32>
    %78 = arith.extui %77 : vector<8x32xi1> to vector<8x32xi32>
    %79 = arith.sitofp %78 : vector<8x32xi32> to vector<8x32xf32>
    %c0_48 = arith.constant 0 : index
    %c0_49 = arith.constant 0 : index
    %80 = vector.load %arg6[%c0_48, %c0_49] : memref<32x128xf32, #tpu.memory_space<vmem>>, vector<32x128xf32>
    %cst_50 = arith.constant dense<0.000000e+00> : vector<8x128xf32>
    %81 = tpu.matmul %79, %80, %cst_50 {dimension_numbers = #tpu.dot_dimension_numbers<[1], [0], [0], [1], [0, 0, 1, 1], [], []>} : vector<8x32xf32>, vector<32x128xf32>, vector<8x128xf32> -> vector<8x128xf32>
    %c0_51 = arith.constant 0 : index
    %c0_52 = arith.constant 0 : index
    %82 = vector.load %arg7[%c0_51, %c0_52] : memref<32x128xf32, #tpu.memory_space<vmem>>, vector<32x128xf32>
    %cst_53 = arith.constant dense<0.000000e+00> : vector<8x128xf32>
    %83 = tpu.matmul %39, %82, %cst_53 {dimension_numbers = #tpu.dot_dimension_numbers<[1], [0], [0], [1], [0, 0, 1, 1], [], []>} : vector<8x32xf32>, vector<32x128xf32>, vector<8x128xf32> -> vector<8x128xf32>
    %84 = arith.addf %81, %83 : vector<8x128xf32>
    %85 = arith.addf %84, %11 : vector<8x128xf32>
    %86 = arith.negf %85 : vector<8x128xf32>
    %87 = math.exp %86 : vector<8x128xf32>
    %cst_54 = arith.constant 1.000000e+00 : f32
    %88 = vector.broadcast %cst_54 : f32 to vector<8x128xf32>
    %89 = arith.addf %88, %87 : vector<8x128xf32>
    %90 = arith.divf %88, %89 : vector<8x128xf32>
    %91 = vector.extract_strided_slice %90 {offsets = [0, 0], sizes = [8, 32], strides = [1, 1]} : vector<8x128xf32> to vector<8x32xf32>
    %92 = vector.extract_strided_slice %90 {offsets = [0, 32], sizes = [8, 32], strides = [1, 1]} : vector<8x128xf32> to vector<8x32xf32>
    %93 = vector.extract_strided_slice %90 {offsets = [0, 64], sizes = [8, 32], strides = [1, 1]} : vector<8x128xf32> to vector<8x32xf32>
    %cst_55 = arith.constant 2.000000e+00 : f32
    %94 = vector.broadcast %cst_55 : f32 to vector<8x32xf32>
    %95 = arith.mulf %94, %93 : vector<8x32xf32>
    %cst_56 = arith.constant 1.000000e+00 : f32
    %96 = vector.broadcast %cst_56 : f32 to vector<8x32xf32>
    %97 = arith.subf %95, %96 : vector<8x32xf32>
    %98 = vector.extract_strided_slice %90 {offsets = [0, 96], sizes = [8, 32], strides = [1, 1]} : vector<8x128xf32> to vector<8x32xf32>
    %99 = arith.cmpf ogt, %39, %20 : vector<8x32xf32>
    %100 = arith.extui %99 : vector<8x32xi1> to vector<8x32xi32>
    %101 = arith.sitofp %100 : vector<8x32xi32> to vector<8x32xf32>
    %102 = arith.mulf %92, %38 : vector<8x32xf32>
    %103 = arith.mulf %91, %97 : vector<8x32xf32>
    %104 = arith.addf %102, %103 : vector<8x32xf32>
    %105 = math.tanh %104 : vector<8x32xf32>
    %106 = arith.mulf %98, %105 : vector<8x32xf32>
    %107 = arith.mulf %101, %20 : vector<8x32xf32>
    %108 = arith.subf %106, %107 : vector<8x32xf32>
    %109 = arith.cmpf ogt, %108, %20 : vector<8x32xf32>
    %110 = arith.extui %109 : vector<8x32xi1> to vector<8x32xi32>
    %111 = arith.sitofp %110 : vector<8x32xi32> to vector<8x32xf32>
    %c0_57 = arith.constant 0 : index
    %c0_58 = arith.constant 0 : index
    %112 = vector.load %arg10[%c0_57, %c0_58] : memref<32x128xf32, #tpu.memory_space<vmem>>, vector<32x128xf32>
    %cst_59 = arith.constant dense<0.000000e+00> : vector<8x128xf32>
    %113 = tpu.matmul %111, %112, %cst_59 {dimension_numbers = #tpu.dot_dimension_numbers<[1], [0], [0], [1], [0, 0, 1, 1], [], []>} : vector<8x32xf32>, vector<32x128xf32>, vector<8x128xf32> -> vector<8x128xf32>
    %c0_60 = arith.constant 0 : index
    %c0_61 = arith.constant 0 : index
    %114 = vector.load %arg11[%c0_60, %c0_61] : memref<32x128xf32, #tpu.memory_space<vmem>>, vector<32x128xf32>
    %cst_62 = arith.constant dense<0.000000e+00> : vector<8x128xf32>
    %115 = tpu.matmul %41, %114, %cst_62 {dimension_numbers = #tpu.dot_dimension_numbers<[1], [0], [0], [1], [0, 0, 1, 1], [], []>} : vector<8x32xf32>, vector<32x128xf32>, vector<8x128xf32> -> vector<8x128xf32>
    %116 = arith.addf %113, %115 : vector<8x128xf32>
    %117 = arith.addf %116, %14 : vector<8x128xf32>
    %118 = arith.negf %117 : vector<8x128xf32>
    %119 = math.exp %118 : vector<8x128xf32>
    %cst_63 = arith.constant 1.000000e+00 : f32
    %120 = vector.broadcast %cst_63 : f32 to vector<8x128xf32>
    %121 = arith.addf %120, %119 : vector<8x128xf32>
    %122 = arith.divf %120, %121 : vector<8x128xf32>
    %123 = vector.extract_strided_slice %122 {offsets = [0, 0], sizes = [8, 32], strides = [1, 1]} : vector<8x128xf32> to vector<8x32xf32>
    %124 = vector.extract_strided_slice %122 {offsets = [0, 32], sizes = [8, 32], strides = [1, 1]} : vector<8x128xf32> to vector<8x32xf32>
    %125 = vector.extract_strided_slice %122 {offsets = [0, 64], sizes = [8, 32], strides = [1, 1]} : vector<8x128xf32> to vector<8x32xf32>
    %cst_64 = arith.constant 2.000000e+00 : f32
    %126 = vector.broadcast %cst_64 : f32 to vector<8x32xf32>
    %127 = arith.mulf %126, %125 : vector<8x32xf32>
    %cst_65 = arith.constant 1.000000e+00 : f32
    %128 = vector.broadcast %cst_65 : f32 to vector<8x32xf32>
    %129 = arith.subf %127, %128 : vector<8x32xf32>
    %130 = vector.extract_strided_slice %122 {offsets = [0, 96], sizes = [8, 32], strides = [1, 1]} : vector<8x128xf32> to vector<8x32xf32>
    %131 = arith.cmpf ogt, %41, %23 : vector<8x32xf32>
    %132 = arith.extui %131 : vector<8x32xi1> to vector<8x32xi32>
    %133 = arith.sitofp %132 : vector<8x32xi32> to vector<8x32xf32>
    %134 = arith.mulf %124, %40 : vector<8x32xf32>
    %135 = arith.mulf %123, %129 : vector<8x32xf32>
    %136 = arith.addf %134, %135 : vector<8x32xf32>
    %137 = math.tanh %136 : vector<8x32xf32>
    %138 = arith.mulf %130, %137 : vector<8x32xf32>
    %139 = arith.mulf %133, %23 : vector<8x32xf32>
    %140 = arith.subf %138, %139 : vector<8x32xf32>
    %141 = arith.cmpf ogt, %140, %23 : vector<8x32xf32>
    %142 = arith.extui %141 : vector<8x32xi1> to vector<8x32xi32>
    %143 = arith.sitofp %142 : vector<8x32xi32> to vector<8x32xf32>
    %144 = arith.addf %44, %111 : vector<8x32xf32>
    %c0_66 = arith.constant 0 : index
    %c0_67 = arith.constant 0 : index
    %145 = vector.load %arg14[%c0_66, %c0_67] : memref<32x32xf32, #tpu.memory_space<vmem>>, vector<32x32xf32>
    %cst_68 = arith.constant dense<0.000000e+00> : vector<8x32xf32>
    %146 = tpu.matmul %140, %145, %cst_68 {dimension_numbers = #tpu.dot_dimension_numbers<[1], [0], [0], [1], [0, 0, 1, 1], [], []>} : vector<8x32xf32>, vector<32x32xf32>, vector<8x32xf32> -> vector<8x32xf32>
    %147 = arith.addf %146, %26 : vector<8x32xf32>
    %148 = arith.mulf %32, %42 : vector<8x32xf32>
    %149 = arith.addf %148, %147 : vector<8x32xf32>
    %c0_69 = arith.constant 0 : index
    %c0_70 = arith.constant 0 : index
    %150 = vector.load %arg17[%c0_69, %c0_70] : memref<32x4xf32, #tpu.memory_space<vmem>>, vector<32x4xf32>
    %cst_71 = arith.constant dense<0.000000e+00> : vector<8x4xf32>
    %151 = tpu.matmul %149, %150, %cst_71 {dimension_numbers = #tpu.dot_dimension_numbers<[1], [0], [0], [1], [0, 0, 1, 1], [], []>} : vector<8x32xf32>, vector<32x4xf32>, vector<8x4xf32> -> vector<8x4xf32>
    %152 = arith.addf %151, %29 : vector<8x4xf32>
    %153 = arith.mulf %35, %43 : vector<8x4xf32>
    %154 = arith.addf %153, %152 : vector<8x4xf32>
    %155 = arith.index_cast %c0_i32_40 : i32 to index
    %c0_72 = arith.constant 0 : index
    %c0_73 = arith.constant 0 : index
    %156 = vector.load %arg20[%155, %c0_72, %c0_73] : memref<8x8x40xf32, #tpu.memory_space<vmem>>, vector<1x8x4xf32>
    %157 = vector.shape_cast %156 : vector<1x8x4xf32> to vector<8x4xf32>
    %158 = vector.shape_cast %152 : vector<8x4xf32> to vector<1x8x4xf32>
    tpu.vector_store %arg20[%155, %c0_72, %c0_73], %158 {strides = array<i32>} : memref<8x8x40xf32, #tpu.memory_space<vmem>>, vector<1x8x4xf32>,
    %159 = arith.index_cast %c0_i32_40 : i32 to index
    %c0_74 = arith.constant 0 : index
    %c4 = arith.constant 4 : index
    %160 = vector.load %arg20[%159, %c0_74, %c4] : memref<8x8x40xf32, #tpu.memory_space<vmem>>, vector<1x8x4xf32>
    %161 = vector.shape_cast %160 : vector<1x8x4xf32> to vector<8x4xf32>
    %162 = vector.shape_cast %154 : vector<8x4xf32> to vector<1x8x4xf32>
    tpu.vector_store %arg20[%159, %c0_74, %c4], %162 {strides = array<i32>} : memref<8x8x40xf32, #tpu.memory_space<vmem>>, vector<1x8x4xf32>,
    %163 = arith.index_cast %c0_i32_40 : i32 to index
    %c0_75 = arith.constant 0 : index
    %c8 = arith.constant 8 : index
    %164 = vector.load %arg20[%163, %c0_75, %c8] : memref<8x8x40xf32, #tpu.memory_space<vmem>>, vector<1x8x32xf32>
    %165 = vector.shape_cast %164 : vector<1x8x32xf32> to vector<8x32xf32>
    %166 = vector.shape_cast %143 : vector<8x32xf32> to vector<1x8x32xf32>
    tpu.vector_store %arg20[%163, %c0_75, %c8], %166 {strides = array<i32>} : memref<8x8x40xf32, #tpu.memory_space<vmem>>, vector<1x8x32xf32>,
    %c1_i32 = arith.constant 1 : i32
    %167 = arith.index_cast %c1_i32 : i32 to index
    %c0_76 = arith.constant 0 : index
    %c0_77 = arith.constant 0 : index
    %168 = vector.load %arg1[%167, %c0_76, %c0_77] : memref<8x8x1xf32, #tpu.memory_space<vmem>>, vector<1x8x1xf32>
    %169 = vector.shape_cast %168 : vector<1x8x1xf32> to vector<8x1xf32>
    %170 = vector.broadcast %169 : vector<8x1xf32> to vector<8x128xf32>
    %171 = arith.mulf %170, %5 : vector<8x128xf32>
    %c0_78 = arith.constant 0 : index
    %c0_79 = arith.constant 0 : index
    %172 = vector.load %arg3[%c0_78, %c0_79] : memref<32x128xf32, #tpu.memory_space<vmem>>, vector<32x128xf32>
    %cst_80 = arith.constant dense<0.000000e+00> : vector<8x128xf32>
    %173 = tpu.matmul %76, %172, %cst_80 {dimension_numbers = #tpu.dot_dimension_numbers<[1], [0], [0], [1], [0, 0, 1, 1], [], []>} : vector<8x32xf32>, vector<32x128xf32>, vector<8x128xf32> -> vector<8x128xf32>
    %174 = arith.addf %171, %173 : vector<8x128xf32>
    %175 = arith.addf %174, %8 : vector<8x128xf32>
    %176 = arith.negf %175 : vector<8x128xf32>
    %177 = math.exp %176 : vector<8x128xf32>
    %cst_81 = arith.constant 1.000000e+00 : f32
    %178 = vector.broadcast %cst_81 : f32 to vector<8x128xf32>
    %179 = arith.addf %178, %177 : vector<8x128xf32>
    %180 = arith.divf %178, %179 : vector<8x128xf32>
    %181 = vector.extract_strided_slice %180 {offsets = [0, 0], sizes = [8, 32], strides = [1, 1]} : vector<8x128xf32> to vector<8x32xf32>
    %182 = vector.extract_strided_slice %180 {offsets = [0, 32], sizes = [8, 32], strides = [1, 1]} : vector<8x128xf32> to vector<8x32xf32>
    %183 = vector.extract_strided_slice %180 {offsets = [0, 64], sizes = [8, 32], strides = [1, 1]} : vector<8x128xf32> to vector<8x32xf32>
    %cst_82 = arith.constant 2.000000e+00 : f32
    %184 = vector.broadcast %cst_82 : f32 to vector<8x32xf32>
    %185 = arith.mulf %184, %183 : vector<8x32xf32>
    %cst_83 = arith.constant 1.000000e+00 : f32
    %186 = vector.broadcast %cst_83 : f32 to vector<8x32xf32>
    %187 = arith.subf %185, %186 : vector<8x32xf32>
    %188 = vector.extract_strided_slice %180 {offsets = [0, 96], sizes = [8, 32], strides = [1, 1]} : vector<8x128xf32> to vector<8x32xf32>
    %189 = arith.cmpf ogt, %76, %17 : vector<8x32xf32>
    %190 = arith.extui %189 : vector<8x32xi1> to vector<8x32xi32>
    %191 = arith.sitofp %190 : vector<8x32xi32> to vector<8x32xf32>
    %192 = arith.mulf %182, %72 : vector<8x32xf32>
    %193 = arith.mulf %181, %187 : vector<8x32xf32>
    %194 = arith.addf %192, %193 : vector<8x32xf32>
    %195 = math.tanh %194 : vector<8x32xf32>
    %196 = arith.mulf %188, %195 : vector<8x32xf32>
    %197 = arith.mulf %191, %17 : vector<8x32xf32>
    %198 = arith.subf %196, %197 : vector<8x32xf32>
    %199 = arith.cmpf ogt, %198, %17 : vector<8x32xf32>
    %200 = arith.extui %199 : vector<8x32xi1> to vector<8x32xi32>
    %201 = arith.sitofp %200 : vector<8x32xi32> to vector<8x32xf32>
    %c0_84 = arith.constant 0 : index
    %c0_85 = arith.constant 0 : index
    %202 = vector.load %arg6[%c0_84, %c0_85] : memref<32x128xf32, #tpu.memory_space<vmem>>, vector<32x128xf32>
    %cst_86 = arith.constant dense<0.000000e+00> : vector<8x128xf32>
    %203 = tpu.matmul %201, %202, %cst_86 {dimension_numbers = #tpu.dot_dimension_numbers<[1], [0], [0], [1], [0, 0, 1, 1], [], []>} : vector<8x32xf32>, vector<32x128xf32>, vector<8x128xf32> -> vector<8x128xf32>
    %c0_87 = arith.constant 0 : index
    %c0_88 = arith.constant 0 : index
    %204 = vector.load %arg7[%c0_87, %c0_88] : memref<32x128xf32, #tpu.memory_space<vmem>>, vector<32x128xf32>
    %cst_89 = arith.constant dense<0.000000e+00> : vector<8x128xf32>
    %205 = tpu.matmul %108, %204, %cst_89 {dimension_numbers = #tpu.dot_dimension_numbers<[1], [0], [0], [1], [0, 0, 1, 1], [], []>} : vector<8x32xf32>, vector<32x128xf32>, vector<8x128xf32> -> vector<8x128xf32>
    %206 = arith.addf %203, %205 : vector<8x128xf32>
    %207 = arith.addf %206, %11 : vector<8x128xf32>
    %208 = arith.negf %207 : vector<8x128xf32>
    %209 = math.exp %208 : vector<8x128xf32>
    %cst_90 = arith.constant 1.000000e+00 : f32
    %210 = vector.broadcast %cst_90 : f32 to vector<8x128xf32>
    %211 = arith.addf %210, %209 : vector<8x128xf32>
    %212 = arith.divf %210, %211 : vector<8x128xf32>
    %213 = vector.extract_strided_slice %212 {offsets = [0, 0], sizes = [8, 32], strides = [1, 1]} : vector<8x128xf32> to vector<8x32xf32>
    %214 = vector.extract_strided_slice %212 {offsets = [0, 32], sizes = [8, 32], strides = [1, 1]} : vector<8x128xf32> to vector<8x32xf32>
    %215 = vector.extract_strided_slice %212 {offsets = [0, 64], sizes = [8, 32], strides = [1, 1]} : vector<8x128xf32> to vector<8x32xf32>
    %cst_91 = arith.constant 2.000000e+00 : f32
    %216 = vector.broadcast %cst_91 : f32 to vector<8x32xf32>
    %217 = arith.mulf %216, %215 : vector<8x32xf32>
    %cst_92 = arith.constant 1.000000e+00 : f32
    %218 = vector.broadcast %cst_92 : f32 to vector<8x32xf32>
    %219 = arith.subf %217, %218 : vector<8x32xf32>
    %220 = vector.extract_strided_slice %212 {offsets = [0, 96], sizes = [8, 32], strides = [1, 1]} : vector<8x128xf32> to vector<8x32xf32>
    %221 = arith.cmpf ogt, %108, %20 : vector<8x32xf32>
    %222 = arith.extui %221 : vector<8x32xi1> to vector<8x32xi32>
    %223 = arith.sitofp %222 : vector<8x32xi32> to vector<8x32xf32>
    %224 = arith.mulf %214, %104 : vector<8x32xf32>
    %225 = arith.mulf %213, %219 : vector<8x32xf32>
    %226 = arith.addf %224, %225 : vector<8x32xf32>
    %227 = math.tanh %226 : vector<8x32xf32>
    %228 = arith.mulf %220, %227 : vector<8x32xf32>
    %229 = arith.mulf %223, %20 : vector<8x32xf32>
    %230 = arith.subf %228, %229 : vector<8x32xf32>
    %231 = arith.cmpf ogt, %230, %20 : vector<8x32xf32>
    %232 = arith.extui %231 : vector<8x32xi1> to vector<8x32xi32>
    %233 = arith.sitofp %232 : vector<8x32xi32> to vector<8x32xf32>
    %c0_93 = arith.constant 0 : index
    %c0_94 = arith.constant 0 : index
    %234 = vector.load %arg10[%c0_93, %c0_94] : memref<32x128xf32, #tpu.memory_space<vmem>>, vector<32x128xf32>
    %cst_95 = arith.constant dense<0.000000e+00> : vector<8x128xf32>
    %235 = tpu.matmul %233, %234, %cst_95 {dimension_numbers = #tpu.dot_dimension_numbers<[1], [0], [0], [1], [0, 0, 1, 1], [], []>} : vector<8x32xf32>, vector<32x128xf32>, vector<8x128xf32> -> vector<8x128xf32>
    %c0_96 = arith.constant 0 : index
    %c0_97 = arith.constant 0 : index
    %236 = vector.load %arg11[%c0_96, %c0_97] : memref<32x128xf32, #tpu.memory_space<vmem>>, vector<32x128xf32>
    %cst_98 = arith.constant dense<0.000000e+00> : vector<8x128xf32>
    %237 = tpu.matmul %140, %236, %cst_98 {dimension_numbers = #tpu.dot_dimension_numbers<[1], [0], [0], [1], [0, 0, 1, 1], [], []>} : vector<8x32xf32>, vector<32x128xf32>, vector<8x128xf32> -> vector<8x128xf32>
    %238 = arith.addf %235, %237 : vector<8x128xf32>
    %239 = arith.addf %238, %14 : vector<8x128xf32>
    %240 = arith.negf %239 : vector<8x128xf32>
    %241 = math.exp %240 : vector<8x128xf32>
    %cst_99 = arith.constant 1.000000e+00 : f32
    %242 = vector.broadcast %cst_99 : f32 to vector<8x128xf32>
    %243 = arith.addf %242, %241 : vector<8x128xf32>
    %244 = arith.divf %242, %243 : vector<8x128xf32>
    %245 = vector.extract_strided_slice %244 {offsets = [0, 0], sizes = [8, 32], strides = [1, 1]} : vector<8x128xf32> to vector<8x32xf32>
    %246 = vector.extract_strided_slice %244 {offsets = [0, 32], sizes = [8, 32], strides = [1, 1]} : vector<8x128xf32> to vector<8x32xf32>
    %247 = vector.extract_strided_slice %244 {offsets = [0, 64], sizes = [8, 32], strides = [1, 1]} : vector<8x128xf32> to vector<8x32xf32>
    %cst_100 = arith.constant 2.000000e+00 : f32
    %248 = vector.broadcast %cst_100 : f32 to vector<8x32xf32>
    %249 = arith.mulf %248, %247 : vector<8x32xf32>
    %cst_101 = arith.constant 1.000000e+00 : f32
    %250 = vector.broadcast %cst_101 : f32 to vector<8x32xf32>
    %251 = arith.subf %249, %250 : vector<8x32xf32>
    %252 = vector.extract_strided_slice %244 {offsets = [0, 96], sizes = [8, 32], strides = [1, 1]} : vector<8x128xf32> to vector<8x32xf32>
    %253 = arith.cmpf ogt, %140, %23 : vector<8x32xf32>
    %254 = arith.extui %253 : vector<8x32xi1> to vector<8x32xi32>
    %255 = arith.sitofp %254 : vector<8x32xi32> to vector<8x32xf32>
    %256 = arith.mulf %246, %136 : vector<8x32xf32>
    %257 = arith.mulf %245, %251 : vector<8x32xf32>
    %258 = arith.addf %256, %257 : vector<8x32xf32>
    %259 = math.tanh %258 : vector<8x32xf32>
    %260 = arith.mulf %252, %259 : vector<8x32xf32>
    %261 = arith.mulf %255, %23 : vector<8x32xf32>
    %262 = arith.subf %260, %261 : vector<8x32xf32>
    %263 = arith.cmpf ogt, %262, %23 : vector<8x32xf32>
    %264 = arith.extui %263 : vector<8x32xi1> to vector<8x32xi32>
    %265 = arith.sitofp %264 : vector<8x32xi32> to vector<8x32xf32>
    %266 = arith.addf %144, %233 : vector<8x32xf32>
    %c0_102 = arith.constant 0 : index
    %c0_103 = arith.constant 0 : index
    %267 = vector.load %arg14[%c0_102, %c0_103] : memref<32x32xf32, #tpu.memory_space<vmem>>, vector<32x32xf32>
    %cst_104 = arith.constant dense<0.000000e+00> : vector<8x32xf32>
    %268 = tpu.matmul %262, %267, %cst_104 {dimension_numbers = #tpu.dot_dimension_numbers<[1], [0], [0], [1], [0, 0, 1, 1], [], []>} : vector<8x32xf32>, vector<32x32xf32>, vector<8x32xf32> -> vector<8x32xf32>
    %269 = arith.addf %268, %26 : vector<8x32xf32>
    %270 = arith.mulf %32, %149 : vector<8x32xf32>
    %271 = arith.addf %270, %269 : vector<8x32xf32>
    %c0_105 = arith.constant 0 : index
    %c0_106 = arith.constant 0 : index
    %272 = vector.load %arg17[%c0_105, %c0_106] : memref<32x4xf32, #tpu.memory_space<vmem>>, vector<32x4xf32>
    %cst_107 = arith.constant dense<0.000000e+00> : vector<8x4xf32>
    %273 = tpu.matmul %271, %272, %cst_107 {dimension_numbers = #tpu.dot_dimension_numbers<[1], [0], [0], [1], [0, 0, 1, 1], [], []>} : vector<8x32xf32>, vector<32x4xf32>, vector<8x4xf32> -> vector<8x4xf32>
    %274 = arith.addf %273, %29 : vector<8x4xf32>
    %275 = arith.mulf %35, %154 : vector<8x4xf32>
    %276 = arith.addf %275, %274 : vector<8x4xf32>
    %277 = arith.index_cast %c1_i32 : i32 to index
    %c0_108 = arith.constant 0 : index
    %c0_109 = arith.constant 0 : index
    %278 = vector.load %arg20[%277, %c0_108, %c0_109] : memref<8x8x40xf32, #tpu.memory_space<vmem>>, vector<1x8x4xf32>
    %279 = vector.shape_cast %278 : vector<1x8x4xf32> to vector<8x4xf32>
    %280 = vector.shape_cast %274 : vector<8x4xf32> to vector<1x8x4xf32>
    tpu.vector_store %arg20[%277, %c0_108, %c0_109], %280 {strides = array<i32>} : memref<8x8x40xf32, #tpu.memory_space<vmem>>, vector<1x8x4xf32>,
    %281 = arith.index_cast %c1_i32 : i32 to index
    %c0_110 = arith.constant 0 : index
    %c4_111 = arith.constant 4 : index
    %282 = vector.load %arg20[%281, %c0_110, %c4_111] : memref<8x8x40xf32, #tpu.memory_space<vmem>>, vector<1x8x4xf32>
    %283 = vector.shape_cast %282 : vector<1x8x4xf32> to vector<8x4xf32>
    %284 = vector.shape_cast %276 : vector<8x4xf32> to vector<1x8x4xf32>
    tpu.vector_store %arg20[%281, %c0_110, %c4_111], %284 {strides = array<i32>} : memref<8x8x40xf32, #tpu.memory_space<vmem>>, vector<1x8x4xf32>,
    %285 = arith.index_cast %c1_i32 : i32 to index
    %c0_112 = arith.constant 0 : index
    %c8_113 = arith.constant 8 : index
    %286 = vector.load %arg20[%285, %c0_112, %c8_113] : memref<8x8x40xf32, #tpu.memory_space<vmem>>, vector<1x8x32xf32>
    %287 = vector.shape_cast %286 : vector<1x8x32xf32> to vector<8x32xf32>
    %288 = vector.shape_cast %265 : vector<8x32xf32> to vector<1x8x32xf32>
    tpu.vector_store %arg20[%285, %c0_112, %c8_113], %288 {strides = array<i32>} : memref<8x8x40xf32, #tpu.memory_space<vmem>>, vector<1x8x32xf32>,
    %c2_i32 = arith.constant 2 : i32
    %289 = arith.index_cast %c2_i32 : i32 to index
    %c0_114 = arith.constant 0 : index
    %c0_115 = arith.constant 0 : index
    %290 = vector.load %arg1[%289, %c0_114, %c0_115] : memref<8x8x1xf32, #tpu.memory_space<vmem>>, vector<1x8x1xf32>
    %291 = vector.shape_cast %290 : vector<1x8x1xf32> to vector<8x1xf32>
    %292 = vector.broadcast %291 : vector<8x1xf32> to vector<8x128xf32>
    %293 = arith.mulf %292, %5 : vector<8x128xf32>
    %c0_116 = arith.constant 0 : index
    %c0_117 = arith.constant 0 : index
    %294 = vector.load %arg3[%c0_116, %c0_117] : memref<32x128xf32, #tpu.memory_space<vmem>>, vector<32x128xf32>
    %cst_118 = arith.constant dense<0.000000e+00> : vector<8x128xf32>
    %295 = tpu.matmul %198, %294, %cst_118 {dimension_numbers = #tpu.dot_dimension_numbers<[1], [0], [0], [1], [0, 0, 1, 1], [], []>} : vector<8x32xf32>, vector<32x128xf32>, vector<8x128xf32> -> vector<8x128xf32>
    %296 = arith.addf %293, %295 : vector<8x128xf32>
    %297 = arith.addf %296, %8 : vector<8x128xf32>
    %298 = arith.negf %297 : vector<8x128xf32>
    %299 = math.exp %298 : vector<8x128xf32>
    %cst_119 = arith.constant 1.000000e+00 : f32
    %300 = vector.broadcast %cst_119 : f32 to vector<8x128xf32>
    %301 = arith.addf %300, %299 : vector<8x128xf32>
    %302 = arith.divf %300, %301 : vector<8x128xf32>
    %303 = vector.extract_strided_slice %302 {offsets = [0, 0], sizes = [8, 32], strides = [1, 1]} : vector<8x128xf32> to vector<8x32xf32>
    %304 = vector.extract_strided_slice %302 {offsets = [0, 32], sizes = [8, 32], strides = [1, 1]} : vector<8x128xf32> to vector<8x32xf32>
    %305 = vector.extract_strided_slice %302 {offsets = [0, 64], sizes = [8, 32], strides = [1, 1]} : vector<8x128xf32> to vector<8x32xf32>
    %cst_120 = arith.constant 2.000000e+00 : f32
    %306 = vector.broadcast %cst_120 : f32 to vector<8x32xf32>
    %307 = arith.mulf %306, %305 : vector<8x32xf32>
    %cst_121 = arith.constant 1.000000e+00 : f32
    %308 = vector.broadcast %cst_121 : f32 to vector<8x32xf32>
    %309 = arith.subf %307, %308 : vector<8x32xf32>
    %310 = vector.extract_strided_slice %302 {offsets = [0, 96], sizes = [8, 32], strides = [1, 1]} : vector<8x128xf32> to vector<8x32xf32>
    %311 = arith.cmpf ogt, %198, %17 : vector<8x32xf32>
    %312 = arith.extui %311 : vector<8x32xi1> to vector<8x32xi32>
    %313 = arith.sitofp %312 : vector<8x32xi32> to vector<8x32xf32>
    %314 = arith.mulf %304, %194 : vector<8x32xf32>
    %315 = arith.mulf %303, %309 : vector<8x32xf32>
    %316 = arith.addf %314, %315 : vector<8x32xf32>
    %317 = math.tanh %316 : vector<8x32xf32>
    %318 = arith.mulf %310, %317 : vector<8x32xf32>
    %319 = arith.mulf %313, %17 : vector<8x32xf32>
    %320 = arith.subf %318, %319 : vector<8x32xf32>
    %321 = arith.cmpf ogt, %320, %17 : vector<8x32xf32>
    %322 = arith.extui %321 : vector<8x32xi1> to vector<8x32xi32>
    %323 = arith.sitofp %322 : vector<8x32xi32> to vector<8x32xf32>
    %c0_122 = arith.constant 0 : index
    %c0_123 = arith.constant 0 : index
    %324 = vector.load %arg6[%c0_122, %c0_123] : memref<32x128xf32, #tpu.memory_space<vmem>>, vector<32x128xf32>
    %cst_124 = arith.constant dense<0.000000e+00> : vector<8x128xf32>
    %325 = tpu.matmul %323, %324, %cst_124 {dimension_numbers = #tpu.dot_dimension_numbers<[1], [0], [0], [1], [0, 0, 1, 1], [], []>} : vector<8x32xf32>, vector<32x128xf32>, vector<8x128xf32> -> vector<8x128xf32>
    %c0_125 = arith.constant 0 : index
    %c0_126 = arith.constant 0 : index
    %326 = vector.load %arg7[%c0_125, %c0_126] : memref<32x128xf32, #tpu.memory_space<vmem>>, vector<32x128xf32>
    %cst_127 = arith.constant dense<0.000000e+00> : vector<8x128xf32>
    %327 = tpu.matmul %230, %326, %cst_127 {dimension_numbers = #tpu.dot_dimension_numbers<[1], [0], [0], [1], [0, 0, 1, 1], [], []>} : vector<8x32xf32>, vector<32x128xf32>, vector<8x128xf32> -> vector<8x128xf32>
    %328 = arith.addf %325, %327 : vector<8x128xf32>
    %329 = arith.addf %328, %11 : vector<8x128xf32>
    %330 = arith.negf %329 : vector<8x128xf32>
    %331 = math.exp %330 : vector<8x128xf32>
    %cst_128 = arith.constant 1.000000e+00 : f32
    %332 = vector.broadcast %cst_128 : f32 to vector<8x128xf32>
    %333 = arith.addf %332, %331 : vector<8x128xf32>
    %334 = arith.divf %332, %333 : vector<8x128xf32>
    %335 = vector.extract_strided_slice %334 {offsets = [0, 0], sizes = [8, 32], strides = [1, 1]} : vector<8x128xf32> to vector<8x32xf32>
    %336 = vector.extract_strided_slice %334 {offsets = [0, 32], sizes = [8, 32], strides = [1, 1]} : vector<8x128xf32> to vector<8x32xf32>
    %337 = vector.extract_strided_slice %334 {offsets = [0, 64], sizes = [8, 32], strides = [1, 1]} : vector<8x128xf32> to vector<8x32xf32>
    %cst_129 = arith.constant 2.000000e+00 : f32
    %338 = vector.broadcast %cst_129 : f32 to vector<8x32xf32>
    %339 = arith.mulf %338, %337 : vector<8x32xf32>
    %cst_130 = arith.constant 1.000000e+00 : f32
    %340 = vector.broadcast %cst_130 : f32 to vector<8x32xf32>
    %341 = arith.subf %339, %340 : vector<8x32xf32>
    %342 = vector.extract_strided_slice %334 {offsets = [0, 96], sizes = [8, 32], strides = [1, 1]} : vector<8x128xf32> to vector<8x32xf32>
    %343 = arith.cmpf ogt, %230, %20 : vector<8x32xf32>
    %344 = arith.extui %343 : vector<8x32xi1> to vector<8x32xi32>
    %345 = arith.sitofp %344 : vector<8x32xi32> to vector<8x32xf32>
    %346 = arith.mulf %336, %226 : vector<8x32xf32>
    %347 = arith.mulf %335, %341 : vector<8x32xf32>
    %348 = arith.addf %346, %347 : vector<8x32xf32>
    %349 = math.tanh %348 : vector<8x32xf32>
    %350 = arith.mulf %342, %349 : vector<8x32xf32>
    %351 = arith.mulf %345, %20 : vector<8x32xf32>
    %352 = arith.subf %350, %351 : vector<8x32xf32>
    %353 = arith.cmpf ogt, %352, %20 : vector<8x32xf32>
    %354 = arith.extui %353 : vector<8x32xi1> to vector<8x32xi32>
    %355 = arith.sitofp %354 : vector<8x32xi32> to vector<8x32xf32>
    %c0_131 = arith.constant 0 : index
    %c0_132 = arith.constant 0 : index
    %356 = vector.load %arg10[%c0_131, %c0_132] : memref<32x128xf32, #tpu.memory_space<vmem>>, vector<32x128xf32>
    %cst_133 = arith.constant dense<0.000000e+00> : vector<8x128xf32>
    %357 = tpu.matmul %355, %356, %cst_133 {dimension_numbers = #tpu.dot_dimension_numbers<[1], [0], [0], [1], [0, 0, 1, 1], [], []>} : vector<8x32xf32>, vector<32x128xf32>, vector<8x128xf32> -> vector<8x128xf32>
    %c0_134 = arith.constant 0 : index
    %c0_135 = arith.constant 0 : index
    %358 = vector.load %arg11[%c0_134, %c0_135] : memref<32x128xf32, #tpu.memory_space<vmem>>, vector<32x128xf32>
    %cst_136 = arith.constant dense<0.000000e+00> : vector<8x128xf32>
    %359 = tpu.matmul %262, %358, %cst_136 {dimension_numbers = #tpu.dot_dimension_numbers<[1], [0], [0], [1], [0, 0, 1, 1], [], []>} : vector<8x32xf32>, vector<32x128xf32>, vector<8x128xf32> -> vector<8x128xf32>
    %360 = arith.addf %357, %359 : vector<8x128xf32>
    %361 = arith.addf %360, %14 : vector<8x128xf32>
    %362 = arith.negf %361 : vector<8x128xf32>
    %363 = math.exp %362 : vector<8x128xf32>
    %cst_137 = arith.constant 1.000000e+00 : f32
    %364 = vector.broadcast %cst_137 : f32 to vector<8x128xf32>
    %365 = arith.addf %364, %363 : vector<8x128xf32>
    %366 = arith.divf %364, %365 : vector<8x128xf32>
    %367 = vector.extract_strided_slice %366 {offsets = [0, 0], sizes = [8, 32], strides = [1, 1]} : vector<8x128xf32> to vector<8x32xf32>
    %368 = vector.extract_strided_slice %366 {offsets = [0, 32], sizes = [8, 32], strides = [1, 1]} : vector<8x128xf32> to vector<8x32xf32>
    %369 = vector.extract_strided_slice %366 {offsets = [0, 64], sizes = [8, 32], strides = [1, 1]} : vector<8x128xf32> to vector<8x32xf32>
    %cst_138 = arith.constant 2.000000e+00 : f32
    %370 = vector.broadcast %cst_138 : f32 to vector<8x32xf32>
    %371 = arith.mulf %370, %369 : vector<8x32xf32>
    %cst_139 = arith.constant 1.000000e+00 : f32
    %372 = vector.broadcast %cst_139 : f32 to vector<8x32xf32>
    %373 = arith.subf %371, %372 : vector<8x32xf32>
    %374 = vector.extract_strided_slice %366 {offsets = [0, 96], sizes = [8, 32], strides = [1, 1]} : vector<8x128xf32> to vector<8x32xf32>
    %375 = arith.cmpf ogt, %262, %23 : vector<8x32xf32>
    %376 = arith.extui %375 : vector<8x32xi1> to vector<8x32xi32>
    %377 = arith.sitofp %376 : vector<8x32xi32> to vector<8x32xf32>
    %378 = arith.mulf %368, %258 : vector<8x32xf32>
    %379 = arith.mulf %367, %373 : vector<8x32xf32>
    %380 = arith.addf %378, %379 : vector<8x32xf32>
    %381 = math.tanh %380 : vector<8x32xf32>
    %382 = arith.mulf %374, %381 : vector<8x32xf32>
    %383 = arith.mulf %377, %23 : vector<8x32xf32>
    %384 = arith.subf %382, %383 : vector<8x32xf32>
    %385 = arith.cmpf ogt, %384, %23 : vector<8x32xf32>
    %386 = arith.extui %385 : vector<8x32xi1> to vector<8x32xi32>
    %387 = arith.sitofp %386 : vector<8x32xi32> to vector<8x32xf32>
    %388 = arith.addf %266, %355 : vector<8x32xf32>
    %c0_140 = arith.constant 0 : index
    %c0_141 = arith.constant 0 : index
    %389 = vector.load %arg14[%c0_140, %c0_141] : memref<32x32xf32, #tpu.memory_space<vmem>>, vector<32x32xf32>
    %cst_142 = arith.constant dense<0.000000e+00> : vector<8x32xf32>
    %390 = tpu.matmul %384, %389, %cst_142 {dimension_numbers = #tpu.dot_dimension_numbers<[1], [0], [0], [1], [0, 0, 1, 1], [], []>} : vector<8x32xf32>, vector<32x32xf32>, vector<8x32xf32> -> vector<8x32xf32>
    %391 = arith.addf %390, %26 : vector<8x32xf32>
    %392 = arith.mulf %32, %271 : vector<8x32xf32>
    %393 = arith.addf %392, %391 : vector<8x32xf32>
    %c0_143 = arith.constant 0 : index
    %c0_144 = arith.constant 0 : index
    %394 = vector.load %arg17[%c0_143, %c0_144] : memref<32x4xf32, #tpu.memory_space<vmem>>, vector<32x4xf32>
    %cst_145 = arith.constant dense<0.000000e+00> : vector<8x4xf32>
    %395 = tpu.matmul %393, %394, %cst_145 {dimension_numbers = #tpu.dot_dimension_numbers<[1], [0], [0], [1], [0, 0, 1, 1], [], []>} : vector<8x32xf32>, vector<32x4xf32>, vector<8x4xf32> -> vector<8x4xf32>
    %396 = arith.addf %395, %29 : vector<8x4xf32>
    %397 = arith.mulf %35, %276 : vector<8x4xf32>
    %398 = arith.addf %397, %396 : vector<8x4xf32>
    %399 = arith.index_cast %c2_i32 : i32 to index
    %c0_146 = arith.constant 0 : index
    %c0_147 = arith.constant 0 : index
    %400 = vector.load %arg20[%399, %c0_146, %c0_147] : memref<8x8x40xf32, #tpu.memory_space<vmem>>, vector<1x8x4xf32>
    %401 = vector.shape_cast %400 : vector<1x8x4xf32> to vector<8x4xf32>
    %402 = vector.shape_cast %396 : vector<8x4xf32> to vector<1x8x4xf32>
    tpu.vector_store %arg20[%399, %c0_146, %c0_147], %402 {strides = array<i32>} : memref<8x8x40xf32, #tpu.memory_space<vmem>>, vector<1x8x4xf32>,
    %403 = arith.index_cast %c2_i32 : i32 to index
    %c0_148 = arith.constant 0 : index
    %c4_149 = arith.constant 4 : index
    %404 = vector.load %arg20[%403, %c0_148, %c4_149] : memref<8x8x40xf32, #tpu.memory_space<vmem>>, vector<1x8x4xf32>
    %405 = vector.shape_cast %404 : vector<1x8x4xf32> to vector<8x4xf32>
    %406 = vector.shape_cast %398 : vector<8x4xf32> to vector<1x8x4xf32>
    tpu.vector_store %arg20[%403, %c0_148, %c4_149], %406 {strides = array<i32>} : memref<8x8x40xf32, #tpu.memory_space<vmem>>, vector<1x8x4xf32>,
    %407 = arith.index_cast %c2_i32 : i32 to index
    %c0_150 = arith.constant 0 : index
    %c8_151 = arith.constant 8 : index
    %408 = vector.load %arg20[%407, %c0_150, %c8_151] : memref<8x8x40xf32, #tpu.memory_space<vmem>>, vector<1x8x32xf32>
    %409 = vector.shape_cast %408 : vector<1x8x32xf32> to vector<8x32xf32>
    %410 = vector.shape_cast %387 : vector<8x32xf32> to vector<1x8x32xf32>
    tpu.vector_store %arg20[%407, %c0_150, %c8_151], %410 {strides = array<i32>} : memref<8x8x40xf32, #tpu.memory_space<vmem>>, vector<1x8x32xf32>,
    %c3_i32 = arith.constant 3 : i32
    %411 = arith.index_cast %c3_i32 : i32 to index
    %c0_152 = arith.constant 0 : index
    %c0_153 = arith.constant 0 : index
    %412 = vector.load %arg1[%411, %c0_152, %c0_153] : memref<8x8x1xf32, #tpu.memory_space<vmem>>, vector<1x8x1xf32>
    %413 = vector.shape_cast %412 : vector<1x8x1xf32> to vector<8x1xf32>
    %414 = vector.broadcast %413 : vector<8x1xf32> to vector<8x128xf32>
    %415 = arith.mulf %414, %5 : vector<8x128xf32>
    %c0_154 = arith.constant 0 : index
    %c0_155 = arith.constant 0 : index
    %416 = vector.load %arg3[%c0_154, %c0_155] : memref<32x128xf32, #tpu.memory_space<vmem>>, vector<32x128xf32>
    %cst_156 = arith.constant dense<0.000000e+00> : vector<8x128xf32>
    %417 = tpu.matmul %320, %416, %cst_156 {dimension_numbers = #tpu.dot_dimension_numbers<[1], [0], [0], [1], [0, 0, 1, 1], [], []>} : vector<8x32xf32>, vector<32x128xf32>, vector<8x128xf32> -> vector<8x128xf32>
    %418 = arith.addf %415, %417 : vector<8x128xf32>
    %419 = arith.addf %418, %8 : vector<8x128xf32>
    %420 = arith.negf %419 : vector<8x128xf32>
    %421 = math.exp %420 : vector<8x128xf32>
    %cst_157 = arith.constant 1.000000e+00 : f32
    %422 = vector.broadcast %cst_157 : f32 to vector<8x128xf32>
    %423 = arith.addf %422, %421 : vector<8x128xf32>
    %424 = arith.divf %422, %423 : vector<8x128xf32>
    %425 = vector.extract_strided_slice %424 {offsets = [0, 0], sizes = [8, 32], strides = [1, 1]} : vector<8x128xf32> to vector<8x32xf32>
    %426 = vector.extract_strided_slice %424 {offsets = [0, 32], sizes = [8, 32], strides = [1, 1]} : vector<8x128xf32> to vector<8x32xf32>
    %427 = vector.extract_strided_slice %424 {offsets = [0, 64], sizes = [8, 32], strides = [1, 1]} : vector<8x128xf32> to vector<8x32xf32>
    %cst_158 = arith.constant 2.000000e+00 : f32
    %428 = vector.broadcast %cst_158 : f32 to vector<8x32xf32>
    %429 = arith.mulf %428, %427 : vector<8x32xf32>
    %cst_159 = arith.constant 1.000000e+00 : f32
    %430 = vector.broadcast %cst_159 : f32 to vector<8x32xf32>
    %431 = arith.subf %429, %430 : vector<8x32xf32>
    %432 = vector.extract_strided_slice %424 {offsets = [0, 96], sizes = [8, 32], strides = [1, 1]} : vector<8x128xf32> to vector<8x32xf32>
    %433 = arith.cmpf ogt, %320, %17 : vector<8x32xf32>
    %434 = arith.extui %433 : vector<8x32xi1> to vector<8x32xi32>
    %435 = arith.sitofp %434 : vector<8x32xi32> to vector<8x32xf32>
    %436 = arith.mulf %426, %316 : vector<8x32xf32>
    %437 = arith.mulf %425, %431 : vector<8x32xf32>
    %438 = arith.addf %436, %437 : vector<8x32xf32>
    %439 = math.tanh %438 : vector<8x32xf32>
    %440 = arith.mulf %432, %439 : vector<8x32xf32>
    %441 = arith.mulf %435, %17 : vector<8x32xf32>
    %442 = arith.subf %440, %441 : vector<8x32xf32>
    %443 = arith.cmpf ogt, %442, %17 : vector<8x32xf32>
    %444 = arith.extui %443 : vector<8x32xi1> to vector<8x32xi32>
    %445 = arith.sitofp %444 : vector<8x32xi32> to vector<8x32xf32>
    %c0_160 = arith.constant 0 : index
    %c0_161 = arith.constant 0 : index
    %446 = vector.load %arg6[%c0_160, %c0_161] : memref<32x128xf32, #tpu.memory_space<vmem>>, vector<32x128xf32>
    %cst_162 = arith.constant dense<0.000000e+00> : vector<8x128xf32>
    %447 = tpu.matmul %445, %446, %cst_162 {dimension_numbers = #tpu.dot_dimension_numbers<[1], [0], [0], [1], [0, 0, 1, 1], [], []>} : vector<8x32xf32>, vector<32x128xf32>, vector<8x128xf32> -> vector<8x128xf32>
    %c0_163 = arith.constant 0 : index
    %c0_164 = arith.constant 0 : index
    %448 = vector.load %arg7[%c0_163, %c0_164] : memref<32x128xf32, #tpu.memory_space<vmem>>, vector<32x128xf32>
    %cst_165 = arith.constant dense<0.000000e+00> : vector<8x128xf32>
    %449 = tpu.matmul %352, %448, %cst_165 {dimension_numbers = #tpu.dot_dimension_numbers<[1], [0], [0], [1], [0, 0, 1, 1], [], []>} : vector<8x32xf32>, vector<32x128xf32>, vector<8x128xf32> -> vector<8x128xf32>
    %450 = arith.addf %447, %449 : vector<8x128xf32>
    %451 = arith.addf %450, %11 : vector<8x128xf32>
    %452 = arith.negf %451 : vector<8x128xf32>
    %453 = math.exp %452 : vector<8x128xf32>
    %cst_166 = arith.constant 1.000000e+00 : f32
    %454 = vector.broadcast %cst_166 : f32 to vector<8x128xf32>
    %455 = arith.addf %454, %453 : vector<8x128xf32>
    %456 = arith.divf %454, %455 : vector<8x128xf32>
    %457 = vector.extract_strided_slice %456 {offsets = [0, 0], sizes = [8, 32], strides = [1, 1]} : vector<8x128xf32> to vector<8x32xf32>
    %458 = vector.extract_strided_slice %456 {offsets = [0, 32], sizes = [8, 32], strides = [1, 1]} : vector<8x128xf32> to vector<8x32xf32>
    %459 = vector.extract_strided_slice %456 {offsets = [0, 64], sizes = [8, 32], strides = [1, 1]} : vector<8x128xf32> to vector<8x32xf32>
    %cst_167 = arith.constant 2.000000e+00 : f32
    %460 = vector.broadcast %cst_167 : f32 to vector<8x32xf32>
    %461 = arith.mulf %460, %459 : vector<8x32xf32>
    %cst_168 = arith.constant 1.000000e+00 : f32
    %462 = vector.broadcast %cst_168 : f32 to vector<8x32xf32>
    %463 = arith.subf %461, %462 : vector<8x32xf32>
    %464 = vector.extract_strided_slice %456 {offsets = [0, 96], sizes = [8, 32], strides = [1, 1]} : vector<8x128xf32> to vector<8x32xf32>
    %465 = arith.cmpf ogt, %352, %20 : vector<8x32xf32>
    %466 = arith.extui %465 : vector<8x32xi1> to vector<8x32xi32>
    %467 = arith.sitofp %466 : vector<8x32xi32> to vector<8x32xf32>
    %468 = arith.mulf %458, %348 : vector<8x32xf32>
    %469 = arith.mulf %457, %463 : vector<8x32xf32>
    %470 = arith.addf %468, %469 : vector<8x32xf32>
    %471 = math.tanh %470 : vector<8x32xf32>
    %472 = arith.mulf %464, %471 : vector<8x32xf32>
    %473 = arith.mulf %467, %20 : vector<8x32xf32>
    %474 = arith.subf %472, %473 : vector<8x32xf32>
    %475 = arith.cmpf ogt, %474, %20 : vector<8x32xf32>
    %476 = arith.extui %475 : vector<8x32xi1> to vector<8x32xi32>
    %477 = arith.sitofp %476 : vector<8x32xi32> to vector<8x32xf32>
    %c0_169 = arith.constant 0 : index
    %c0_170 = arith.constant 0 : index
    %478 = vector.load %arg10[%c0_169, %c0_170] : memref<32x128xf32, #tpu.memory_space<vmem>>, vector<32x128xf32>
    %cst_171 = arith.constant dense<0.000000e+00> : vector<8x128xf32>
    %479 = tpu.matmul %477, %478, %cst_171 {dimension_numbers = #tpu.dot_dimension_numbers<[1], [0], [0], [1], [0, 0, 1, 1], [], []>} : vector<8x32xf32>, vector<32x128xf32>, vector<8x128xf32> -> vector<8x128xf32>
    %c0_172 = arith.constant 0 : index
    %c0_173 = arith.constant 0 : index
    %480 = vector.load %arg11[%c0_172, %c0_173] : memref<32x128xf32, #tpu.memory_space<vmem>>, vector<32x128xf32>
    %cst_174 = arith.constant dense<0.000000e+00> : vector<8x128xf32>
    %481 = tpu.matmul %384, %480, %cst_174 {dimension_numbers = #tpu.dot_dimension_numbers<[1], [0], [0], [1], [0, 0, 1, 1], [], []>} : vector<8x32xf32>, vector<32x128xf32>, vector<8x128xf32> -> vector<8x128xf32>
    %482 = arith.addf %479, %481 : vector<8x128xf32>
    %483 = arith.addf %482, %14 : vector<8x128xf32>
    %484 = arith.negf %483 : vector<8x128xf32>
    %485 = math.exp %484 : vector<8x128xf32>
    %cst_175 = arith.constant 1.000000e+00 : f32
    %486 = vector.broadcast %cst_175 : f32 to vector<8x128xf32>
    %487 = arith.addf %486, %485 : vector<8x128xf32>
    %488 = arith.divf %486, %487 : vector<8x128xf32>
    %489 = vector.extract_strided_slice %488 {offsets = [0, 0], sizes = [8, 32], strides = [1, 1]} : vector<8x128xf32> to vector<8x32xf32>
    %490 = vector.extract_strided_slice %488 {offsets = [0, 32], sizes = [8, 32], strides = [1, 1]} : vector<8x128xf32> to vector<8x32xf32>
    %491 = vector.extract_strided_slice %488 {offsets = [0, 64], sizes = [8, 32], strides = [1, 1]} : vector<8x128xf32> to vector<8x32xf32>
    %cst_176 = arith.constant 2.000000e+00 : f32
    %492 = vector.broadcast %cst_176 : f32 to vector<8x32xf32>
    %493 = arith.mulf %492, %491 : vector<8x32xf32>
    %cst_177 = arith.constant 1.000000e+00 : f32
    %494 = vector.broadcast %cst_177 : f32 to vector<8x32xf32>
    %495 = arith.subf %493, %494 : vector<8x32xf32>
    %496 = vector.extract_strided_slice %488 {offsets = [0, 96], sizes = [8, 32], strides = [1, 1]} : vector<8x128xf32> to vector<8x32xf32>
    %497 = arith.cmpf ogt, %384, %23 : vector<8x32xf32>
    %498 = arith.extui %497 : vector<8x32xi1> to vector<8x32xi32>
    %499 = arith.sitofp %498 : vector<8x32xi32> to vector<8x32xf32>
    %500 = arith.mulf %490, %380 : vector<8x32xf32>
    %501 = arith.mulf %489, %495 : vector<8x32xf32>
    %502 = arith.addf %500, %501 : vector<8x32xf32>
    %503 = math.tanh %502 : vector<8x32xf32>
    %504 = arith.mulf %496, %503 : vector<8x32xf32>
    %505 = arith.mulf %499, %23 : vector<8x32xf32>
    %506 = arith.subf %504, %505 : vector<8x32xf32>
    %507 = arith.cmpf ogt, %506, %23 : vector<8x32xf32>
    %508 = arith.extui %507 : vector<8x32xi1> to vector<8x32xi32>
    %509 = arith.sitofp %508 : vector<8x32xi32> to vector<8x32xf32>
    %510 = arith.addf %388, %477 : vector<8x32xf32>
    %c0_178 = arith.constant 0 : index
    %c0_179 = arith.constant 0 : index
    %511 = vector.load %arg14[%c0_178, %c0_179] : memref<32x32xf32, #tpu.memory_space<vmem>>, vector<32x32xf32>
    %cst_180 = arith.constant dense<0.000000e+00> : vector<8x32xf32>
    %512 = tpu.matmul %506, %511, %cst_180 {dimension_numbers = #tpu.dot_dimension_numbers<[1], [0], [0], [1], [0, 0, 1, 1], [], []>} : vector<8x32xf32>, vector<32x32xf32>, vector<8x32xf32> -> vector<8x32xf32>
    %513 = arith.addf %512, %26 : vector<8x32xf32>
    %514 = arith.mulf %32, %393 : vector<8x32xf32>
    %515 = arith.addf %514, %513 : vector<8x32xf32>
    %c0_181 = arith.constant 0 : index
    %c0_182 = arith.constant 0 : index
    %516 = vector.load %arg17[%c0_181, %c0_182] : memref<32x4xf32, #tpu.memory_space<vmem>>, vector<32x4xf32>
    %cst_183 = arith.constant dense<0.000000e+00> : vector<8x4xf32>
    %517 = tpu.matmul %515, %516, %cst_183 {dimension_numbers = #tpu.dot_dimension_numbers<[1], [0], [0], [1], [0, 0, 1, 1], [], []>} : vector<8x32xf32>, vector<32x4xf32>, vector<8x4xf32> -> vector<8x4xf32>
    %518 = arith.addf %517, %29 : vector<8x4xf32>
    %519 = arith.mulf %35, %398 : vector<8x4xf32>
    %520 = arith.addf %519, %518 : vector<8x4xf32>
    %521 = arith.index_cast %c3_i32 : i32 to index
    %c0_184 = arith.constant 0 : index
    %c0_185 = arith.constant 0 : index
    %522 = vector.load %arg20[%521, %c0_184, %c0_185] : memref<8x8x40xf32, #tpu.memory_space<vmem>>, vector<1x8x4xf32>
    %523 = vector.shape_cast %522 : vector<1x8x4xf32> to vector<8x4xf32>
    %524 = vector.shape_cast %518 : vector<8x4xf32> to vector<1x8x4xf32>
    tpu.vector_store %arg20[%521, %c0_184, %c0_185], %524 {strides = array<i32>} : memref<8x8x40xf32, #tpu.memory_space<vmem>>, vector<1x8x4xf32>,
    %525 = arith.index_cast %c3_i32 : i32 to index
    %c0_186 = arith.constant 0 : index
    %c4_187 = arith.constant 4 : index
    %526 = vector.load %arg20[%525, %c0_186, %c4_187] : memref<8x8x40xf32, #tpu.memory_space<vmem>>, vector<1x8x4xf32>
    %527 = vector.shape_cast %526 : vector<1x8x4xf32> to vector<8x4xf32>
    %528 = vector.shape_cast %520 : vector<8x4xf32> to vector<1x8x4xf32>
    tpu.vector_store %arg20[%525, %c0_186, %c4_187], %528 {strides = array<i32>} : memref<8x8x40xf32, #tpu.memory_space<vmem>>, vector<1x8x4xf32>,
    %529 = arith.index_cast %c3_i32 : i32 to index
    %c0_188 = arith.constant 0 : index
    %c8_189 = arith.constant 8 : index
    %530 = vector.load %arg20[%529, %c0_188, %c8_189] : memref<8x8x40xf32, #tpu.memory_space<vmem>>, vector<1x8x32xf32>
    %531 = vector.shape_cast %530 : vector<1x8x32xf32> to vector<8x32xf32>
    %532 = vector.shape_cast %509 : vector<8x32xf32> to vector<1x8x32xf32>
    tpu.vector_store %arg20[%529, %c0_188, %c8_189], %532 {strides = array<i32>} : memref<8x8x40xf32, #tpu.memory_space<vmem>>, vector<1x8x32xf32>,
    %c4_i32 = arith.constant 4 : i32
    %533 = arith.index_cast %c4_i32 : i32 to index
    %c0_190 = arith.constant 0 : index
    %c0_191 = arith.constant 0 : index
    %534 = vector.load %arg1[%533, %c0_190, %c0_191] : memref<8x8x1xf32, #tpu.memory_space<vmem>>, vector<1x8x1xf32>
    %535 = vector.shape_cast %534 : vector<1x8x1xf32> to vector<8x1xf32>
    %536 = vector.broadcast %535 : vector<8x1xf32> to vector<8x128xf32>
    %537 = arith.mulf %536, %5 : vector<8x128xf32>
    %c0_192 = arith.constant 0 : index
    %c0_193 = arith.constant 0 : index
    %538 = vector.load %arg3[%c0_192, %c0_193] : memref<32x128xf32, #tpu.memory_space<vmem>>, vector<32x128xf32>
    %cst_194 = arith.constant dense<0.000000e+00> : vector<8x128xf32>
    %539 = tpu.matmul %442, %538, %cst_194 {dimension_numbers = #tpu.dot_dimension_numbers<[1], [0], [0], [1], [0, 0, 1, 1], [], []>} : vector<8x32xf32>, vector<32x128xf32>, vector<8x128xf32> -> vector<8x128xf32>
    %540 = arith.addf %537, %539 : vector<8x128xf32>
    %541 = arith.addf %540, %8 : vector<8x128xf32>
    %542 = arith.negf %541 : vector<8x128xf32>
    %543 = math.exp %542 : vector<8x128xf32>
    %cst_195 = arith.constant 1.000000e+00 : f32
    %544 = vector.broadcast %cst_195 : f32 to vector<8x128xf32>
    %545 = arith.addf %544, %543 : vector<8x128xf32>
    %546 = arith.divf %544, %545 : vector<8x128xf32>
    %547 = vector.extract_strided_slice %546 {offsets = [0, 0], sizes = [8, 32], strides = [1, 1]} : vector<8x128xf32> to vector<8x32xf32>
    %548 = vector.extract_strided_slice %546 {offsets = [0, 32], sizes = [8, 32], strides = [1, 1]} : vector<8x128xf32> to vector<8x32xf32>
    %549 = vector.extract_strided_slice %546 {offsets = [0, 64], sizes = [8, 32], strides = [1, 1]} : vector<8x128xf32> to vector<8x32xf32>
    %cst_196 = arith.constant 2.000000e+00 : f32
    %550 = vector.broadcast %cst_196 : f32 to vector<8x32xf32>
    %551 = arith.mulf %550, %549 : vector<8x32xf32>
    %cst_197 = arith.constant 1.000000e+00 : f32
    %552 = vector.broadcast %cst_197 : f32 to vector<8x32xf32>
    %553 = arith.subf %551, %552 : vector<8x32xf32>
    %554 = vector.extract_strided_slice %546 {offsets = [0, 96], sizes = [8, 32], strides = [1, 1]} : vector<8x128xf32> to vector<8x32xf32>
    %555 = arith.cmpf ogt, %442, %17 : vector<8x32xf32>
    %556 = arith.extui %555 : vector<8x32xi1> to vector<8x32xi32>
    %557 = arith.sitofp %556 : vector<8x32xi32> to vector<8x32xf32>
    %558 = arith.mulf %548, %438 : vector<8x32xf32>
    %559 = arith.mulf %547, %553 : vector<8x32xf32>
    %560 = arith.addf %558, %559 : vector<8x32xf32>
    %561 = math.tanh %560 : vector<8x32xf32>
    %562 = arith.mulf %554, %561 : vector<8x32xf32>
    %563 = arith.mulf %557, %17 : vector<8x32xf32>
    %564 = arith.subf %562, %563 : vector<8x32xf32>
    %565 = arith.cmpf ogt, %564, %17 : vector<8x32xf32>
    %566 = arith.extui %565 : vector<8x32xi1> to vector<8x32xi32>
    %567 = arith.sitofp %566 : vector<8x32xi32> to vector<8x32xf32>
    %c0_198 = arith.constant 0 : index
    %c0_199 = arith.constant 0 : index
    %568 = vector.load %arg6[%c0_198, %c0_199] : memref<32x128xf32, #tpu.memory_space<vmem>>, vector<32x128xf32>
    %cst_200 = arith.constant dense<0.000000e+00> : vector<8x128xf32>
    %569 = tpu.matmul %567, %568, %cst_200 {dimension_numbers = #tpu.dot_dimension_numbers<[1], [0], [0], [1], [0, 0, 1, 1], [], []>} : vector<8x32xf32>, vector<32x128xf32>, vector<8x128xf32> -> vector<8x128xf32>
    %c0_201 = arith.constant 0 : index
    %c0_202 = arith.constant 0 : index
    %570 = vector.load %arg7[%c0_201, %c0_202] : memref<32x128xf32, #tpu.memory_space<vmem>>, vector<32x128xf32>
    %cst_203 = arith.constant dense<0.000000e+00> : vector<8x128xf32>
    %571 = tpu.matmul %474, %570, %cst_203 {dimension_numbers = #tpu.dot_dimension_numbers<[1], [0], [0], [1], [0, 0, 1, 1], [], []>} : vector<8x32xf32>, vector<32x128xf32>, vector<8x128xf32> -> vector<8x128xf32>
    %572 = arith.addf %569, %571 : vector<8x128xf32>
    %573 = arith.addf %572, %11 : vector<8x128xf32>
    %574 = arith.negf %573 : vector<8x128xf32>
    %575 = math.exp %574 : vector<8x128xf32>
    %cst_204 = arith.constant 1.000000e+00 : f32
    %576 = vector.broadcast %cst_204 : f32 to vector<8x128xf32>
    %577 = arith.addf %576, %575 : vector<8x128xf32>
    %578 = arith.divf %576, %577 : vector<8x128xf32>
    %579 = vector.extract_strided_slice %578 {offsets = [0, 0], sizes = [8, 32], strides = [1, 1]} : vector<8x128xf32> to vector<8x32xf32>
    %580 = vector.extract_strided_slice %578 {offsets = [0, 32], sizes = [8, 32], strides = [1, 1]} : vector<8x128xf32> to vector<8x32xf32>
    %581 = vector.extract_strided_slice %578 {offsets = [0, 64], sizes = [8, 32], strides = [1, 1]} : vector<8x128xf32> to vector<8x32xf32>
    %cst_205 = arith.constant 2.000000e+00 : f32
    %582 = vector.broadcast %cst_205 : f32 to vector<8x32xf32>
    %583 = arith.mulf %582, %581 : vector<8x32xf32>
    %cst_206 = arith.constant 1.000000e+00 : f32
    %584 = vector.broadcast %cst_206 : f32 to vector<8x32xf32>
    %585 = arith.subf %583, %584 : vector<8x32xf32>
    %586 = vector.extract_strided_slice %578 {offsets = [0, 96], sizes = [8, 32], strides = [1, 1]} : vector<8x128xf32> to vector<8x32xf32>
    %587 = arith.cmpf ogt, %474, %20 : vector<8x32xf32>
    %588 = arith.extui %587 : vector<8x32xi1> to vector<8x32xi32>
    %589 = arith.sitofp %588 : vector<8x32xi32> to vector<8x32xf32>
    %590 = arith.mulf %580, %470 : vector<8x32xf32>
    %591 = arith.mulf %579, %585 : vector<8x32xf32>
    %592 = arith.addf %590, %591 : vector<8x32xf32>
    %593 = math.tanh %592 : vector<8x32xf32>
    %594 = arith.mulf %586, %593 : vector<8x32xf32>
    %595 = arith.mulf %589, %20 : vector<8x32xf32>
    %596 = arith.subf %594, %595 : vector<8x32xf32>
    %597 = arith.cmpf ogt, %596, %20 : vector<8x32xf32>
    %598 = arith.extui %597 : vector<8x32xi1> to vector<8x32xi32>
    %599 = arith.sitofp %598 : vector<8x32xi32> to vector<8x32xf32>
    %c0_207 = arith.constant 0 : index
    %c0_208 = arith.constant 0 : index
    %600 = vector.load %arg10[%c0_207, %c0_208] : memref<32x128xf32, #tpu.memory_space<vmem>>, vector<32x128xf32>
    %cst_209 = arith.constant dense<0.000000e+00> : vector<8x128xf32>
    %601 = tpu.matmul %599, %600, %cst_209 {dimension_numbers = #tpu.dot_dimension_numbers<[1], [0], [0], [1], [0, 0, 1, 1], [], []>} : vector<8x32xf32>, vector<32x128xf32>, vector<8x128xf32> -> vector<8x128xf32>
    %c0_210 = arith.constant 0 : index
    %c0_211 = arith.constant 0 : index
    %602 = vector.load %arg11[%c0_210, %c0_211] : memref<32x128xf32, #tpu.memory_space<vmem>>, vector<32x128xf32>
    %cst_212 = arith.constant dense<0.000000e+00> : vector<8x128xf32>
    %603 = tpu.matmul %506, %602, %cst_212 {dimension_numbers = #tpu.dot_dimension_numbers<[1], [0], [0], [1], [0, 0, 1, 1], [], []>} : vector<8x32xf32>, vector<32x128xf32>, vector<8x128xf32> -> vector<8x128xf32>
    %604 = arith.addf %601, %603 : vector<8x128xf32>
    %605 = arith.addf %604, %14 : vector<8x128xf32>
    %606 = arith.negf %605 : vector<8x128xf32>
    %607 = math.exp %606 : vector<8x128xf32>
    %cst_213 = arith.constant 1.000000e+00 : f32
    %608 = vector.broadcast %cst_213 : f32 to vector<8x128xf32>
    %609 = arith.addf %608, %607 : vector<8x128xf32>
    %610 = arith.divf %608, %609 : vector<8x128xf32>
    %611 = vector.extract_strided_slice %610 {offsets = [0, 0], sizes = [8, 32], strides = [1, 1]} : vector<8x128xf32> to vector<8x32xf32>
    %612 = vector.extract_strided_slice %610 {offsets = [0, 32], sizes = [8, 32], strides = [1, 1]} : vector<8x128xf32> to vector<8x32xf32>
    %613 = vector.extract_strided_slice %610 {offsets = [0, 64], sizes = [8, 32], strides = [1, 1]} : vector<8x128xf32> to vector<8x32xf32>
    %cst_214 = arith.constant 2.000000e+00 : f32
    %614 = vector.broadcast %cst_214 : f32 to vector<8x32xf32>
    %615 = arith.mulf %614, %613 : vector<8x32xf32>
    %cst_215 = arith.constant 1.000000e+00 : f32
    %616 = vector.broadcast %cst_215 : f32 to vector<8x32xf32>
    %617 = arith.subf %615, %616 : vector<8x32xf32>
    %618 = vector.extract_strided_slice %610 {offsets = [0, 96], sizes = [8, 32], strides = [1, 1]} : vector<8x128xf32> to vector<8x32xf32>
    %619 = arith.cmpf ogt, %506, %23 : vector<8x32xf32>
    %620 = arith.extui %619 : vector<8x32xi1> to vector<8x32xi32>
    %621 = arith.sitofp %620 : vector<8x32xi32> to vector<8x32xf32>
    %622 = arith.mulf %612, %502 : vector<8x32xf32>
    %623 = arith.mulf %611, %617 : vector<8x32xf32>
    %624 = arith.addf %622, %623 : vector<8x32xf32>
    %625 = math.tanh %624 : vector<8x32xf32>
    %626 = arith.mulf %618, %625 : vector<8x32xf32>
    %627 = arith.mulf %621, %23 : vector<8x32xf32>
    %628 = arith.subf %626, %627 : vector<8x32xf32>
    %629 = arith.cmpf ogt, %628, %23 : vector<8x32xf32>
    %630 = arith.extui %629 : vector<8x32xi1> to vector<8x32xi32>
    %631 = arith.sitofp %630 : vector<8x32xi32> to vector<8x32xf32>
    %632 = arith.addf %510, %599 : vector<8x32xf32>
    %c0_216 = arith.constant 0 : index
    %c0_217 = arith.constant 0 : index
    %633 = vector.load %arg14[%c0_216, %c0_217] : memref<32x32xf32, #tpu.memory_space<vmem>>, vector<32x32xf32>
    %cst_218 = arith.constant dense<0.000000e+00> : vector<8x32xf32>
    %634 = tpu.matmul %628, %633, %cst_218 {dimension_numbers = #tpu.dot_dimension_numbers<[1], [0], [0], [1], [0, 0, 1, 1], [], []>} : vector<8x32xf32>, vector<32x32xf32>, vector<8x32xf32> -> vector<8x32xf32>
    %635 = arith.addf %634, %26 : vector<8x32xf32>
    %636 = arith.mulf %32, %515 : vector<8x32xf32>
    %637 = arith.addf %636, %635 : vector<8x32xf32>
    %c0_219 = arith.constant 0 : index
    %c0_220 = arith.constant 0 : index
    %638 = vector.load %arg17[%c0_219, %c0_220] : memref<32x4xf32, #tpu.memory_space<vmem>>, vector<32x4xf32>
    %cst_221 = arith.constant dense<0.000000e+00> : vector<8x4xf32>
    %639 = tpu.matmul %637, %638, %cst_221 {dimension_numbers = #tpu.dot_dimension_numbers<[1], [0], [0], [1], [0, 0, 1, 1], [], []>} : vector<8x32xf32>, vector<32x4xf32>, vector<8x4xf32> -> vector<8x4xf32>
    %640 = arith.addf %639, %29 : vector<8x4xf32>
    %641 = arith.mulf %35, %520 : vector<8x4xf32>
    %642 = arith.addf %641, %640 : vector<8x4xf32>
    %643 = arith.index_cast %c4_i32 : i32 to index
    %c0_222 = arith.constant 0 : index
    %c0_223 = arith.constant 0 : index
    %644 = vector.load %arg20[%643, %c0_222, %c0_223] : memref<8x8x40xf32, #tpu.memory_space<vmem>>, vector<1x8x4xf32>
    %645 = vector.shape_cast %644 : vector<1x8x4xf32> to vector<8x4xf32>
    %646 = vector.shape_cast %640 : vector<8x4xf32> to vector<1x8x4xf32>
    tpu.vector_store %arg20[%643, %c0_222, %c0_223], %646 {strides = array<i32>} : memref<8x8x40xf32, #tpu.memory_space<vmem>>, vector<1x8x4xf32>,
    %647 = arith.index_cast %c4_i32 : i32 to index
    %c0_224 = arith.constant 0 : index
    %c4_225 = arith.constant 4 : index
    %648 = vector.load %arg20[%647, %c0_224, %c4_225] : memref<8x8x40xf32, #tpu.memory_space<vmem>>, vector<1x8x4xf32>
    %649 = vector.shape_cast %648 : vector<1x8x4xf32> to vector<8x4xf32>
    %650 = vector.shape_cast %642 : vector<8x4xf32> to vector<1x8x4xf32>
    tpu.vector_store %arg20[%647, %c0_224, %c4_225], %650 {strides = array<i32>} : memref<8x8x40xf32, #tpu.memory_space<vmem>>, vector<1x8x4xf32>,
    %651 = arith.index_cast %c4_i32 : i32 to index
    %c0_226 = arith.constant 0 : index
    %c8_227 = arith.constant 8 : index
    %652 = vector.load %arg20[%651, %c0_226, %c8_227] : memref<8x8x40xf32, #tpu.memory_space<vmem>>, vector<1x8x32xf32>
    %653 = vector.shape_cast %652 : vector<1x8x32xf32> to vector<8x32xf32>
    %654 = vector.shape_cast %631 : vector<8x32xf32> to vector<1x8x32xf32>
    tpu.vector_store %arg20[%651, %c0_226, %c8_227], %654 {strides = array<i32>} : memref<8x8x40xf32, #tpu.memory_space<vmem>>, vector<1x8x32xf32>,
    %c5_i32 = arith.constant 5 : i32
    %655 = arith.index_cast %c5_i32 : i32 to index
    %c0_228 = arith.constant 0 : index
    %c0_229 = arith.constant 0 : index
    %656 = vector.load %arg1[%655, %c0_228, %c0_229] : memref<8x8x1xf32, #tpu.memory_space<vmem>>, vector<1x8x1xf32>
    %657 = vector.shape_cast %656 : vector<1x8x1xf32> to vector<8x1xf32>
    %658 = vector.broadcast %657 : vector<8x1xf32> to vector<8x128xf32>
    %659 = arith.mulf %658, %5 : vector<8x128xf32>
    %c0_230 = arith.constant 0 : index
    %c0_231 = arith.constant 0 : index
    %660 = vector.load %arg3[%c0_230, %c0_231] : memref<32x128xf32, #tpu.memory_space<vmem>>, vector<32x128xf32>
    %cst_232 = arith.constant dense<0.000000e+00> : vector<8x128xf32>
    %661 = tpu.matmul %564, %660, %cst_232 {dimension_numbers = #tpu.dot_dimension_numbers<[1], [0], [0], [1], [0, 0, 1, 1], [], []>} : vector<8x32xf32>, vector<32x128xf32>, vector<8x128xf32> -> vector<8x128xf32>
    %662 = arith.addf %659, %661 : vector<8x128xf32>
    %663 = arith.addf %662, %8 : vector<8x128xf32>
    %664 = arith.negf %663 : vector<8x128xf32>
    %665 = math.exp %664 : vector<8x128xf32>
    %cst_233 = arith.constant 1.000000e+00 : f32
    %666 = vector.broadcast %cst_233 : f32 to vector<8x128xf32>
    %667 = arith.addf %666, %665 : vector<8x128xf32>
    %668 = arith.divf %666, %667 : vector<8x128xf32>
    %669 = vector.extract_strided_slice %668 {offsets = [0, 0], sizes = [8, 32], strides = [1, 1]} : vector<8x128xf32> to vector<8x32xf32>
    %670 = vector.extract_strided_slice %668 {offsets = [0, 32], sizes = [8, 32], strides = [1, 1]} : vector<8x128xf32> to vector<8x32xf32>
    %671 = vector.extract_strided_slice %668 {offsets = [0, 64], sizes = [8, 32], strides = [1, 1]} : vector<8x128xf32> to vector<8x32xf32>
    %cst_234 = arith.constant 2.000000e+00 : f32
    %672 = vector.broadcast %cst_234 : f32 to vector<8x32xf32>
    %673 = arith.mulf %672, %671 : vector<8x32xf32>
    %cst_235 = arith.constant 1.000000e+00 : f32
    %674 = vector.broadcast %cst_235 : f32 to vector<8x32xf32>
    %675 = arith.subf %673, %674 : vector<8x32xf32>
    %676 = vector.extract_strided_slice %668 {offsets = [0, 96], sizes = [8, 32], strides = [1, 1]} : vector<8x128xf32> to vector<8x32xf32>
    %677 = arith.cmpf ogt, %564, %17 : vector<8x32xf32>
    %678 = arith.extui %677 : vector<8x32xi1> to vector<8x32xi32>
    %679 = arith.sitofp %678 : vector<8x32xi32> to vector<8x32xf32>
    %680 = arith.mulf %670, %560 : vector<8x32xf32>
    %681 = arith.mulf %669, %675 : vector<8x32xf32>
    %682 = arith.addf %680, %681 : vector<8x32xf32>
    %683 = math.tanh %682 : vector<8x32xf32>
    %684 = arith.mulf %676, %683 : vector<8x32xf32>
    %685 = arith.mulf %679, %17 : vector<8x32xf32>
    %686 = arith.subf %684, %685 : vector<8x32xf32>
    %687 = arith.cmpf ogt, %686, %17 : vector<8x32xf32>
    %688 = arith.extui %687 : vector<8x32xi1> to vector<8x32xi32>
    %689 = arith.sitofp %688 : vector<8x32xi32> to vector<8x32xf32>
    %c0_236 = arith.constant 0 : index
    %c0_237 = arith.constant 0 : index
    %690 = vector.load %arg6[%c0_236, %c0_237] : memref<32x128xf32, #tpu.memory_space<vmem>>, vector<32x128xf32>
    %cst_238 = arith.constant dense<0.000000e+00> : vector<8x128xf32>
    %691 = tpu.matmul %689, %690, %cst_238 {dimension_numbers = #tpu.dot_dimension_numbers<[1], [0], [0], [1], [0, 0, 1, 1], [], []>} : vector<8x32xf32>, vector<32x128xf32>, vector<8x128xf32> -> vector<8x128xf32>
    %c0_239 = arith.constant 0 : index
    %c0_240 = arith.constant 0 : index
    %692 = vector.load %arg7[%c0_239, %c0_240] : memref<32x128xf32, #tpu.memory_space<vmem>>, vector<32x128xf32>
    %cst_241 = arith.constant dense<0.000000e+00> : vector<8x128xf32>
    %693 = tpu.matmul %596, %692, %cst_241 {dimension_numbers = #tpu.dot_dimension_numbers<[1], [0], [0], [1], [0, 0, 1, 1], [], []>} : vector<8x32xf32>, vector<32x128xf32>, vector<8x128xf32> -> vector<8x128xf32>
    %694 = arith.addf %691, %693 : vector<8x128xf32>
    %695 = arith.addf %694, %11 : vector<8x128xf32>
    %696 = arith.negf %695 : vector<8x128xf32>
    %697 = math.exp %696 : vector<8x128xf32>
    %cst_242 = arith.constant 1.000000e+00 : f32
    %698 = vector.broadcast %cst_242 : f32 to vector<8x128xf32>
    %699 = arith.addf %698, %697 : vector<8x128xf32>
    %700 = arith.divf %698, %699 : vector<8x128xf32>
    %701 = vector.extract_strided_slice %700 {offsets = [0, 0], sizes = [8, 32], strides = [1, 1]} : vector<8x128xf32> to vector<8x32xf32>
    %702 = vector.extract_strided_slice %700 {offsets = [0, 32], sizes = [8, 32], strides = [1, 1]} : vector<8x128xf32> to vector<8x32xf32>
    %703 = vector.extract_strided_slice %700 {offsets = [0, 64], sizes = [8, 32], strides = [1, 1]} : vector<8x128xf32> to vector<8x32xf32>
    %cst_243 = arith.constant 2.000000e+00 : f32
    %704 = vector.broadcast %cst_243 : f32 to vector<8x32xf32>
    %705 = arith.mulf %704, %703 : vector<8x32xf32>
    %cst_244 = arith.constant 1.000000e+00 : f32
    %706 = vector.broadcast %cst_244 : f32 to vector<8x32xf32>
    %707 = arith.subf %705, %706 : vector<8x32xf32>
    %708 = vector.extract_strided_slice %700 {offsets = [0, 96], sizes = [8, 32], strides = [1, 1]} : vector<8x128xf32> to vector<8x32xf32>
    %709 = arith.cmpf ogt, %596, %20 : vector<8x32xf32>
    %710 = arith.extui %709 : vector<8x32xi1> to vector<8x32xi32>
    %711 = arith.sitofp %710 : vector<8x32xi32> to vector<8x32xf32>
    %712 = arith.mulf %702, %592 : vector<8x32xf32>
    %713 = arith.mulf %701, %707 : vector<8x32xf32>
    %714 = arith.addf %712, %713 : vector<8x32xf32>
    %715 = math.tanh %714 : vector<8x32xf32>
    %716 = arith.mulf %708, %715 : vector<8x32xf32>
    %717 = arith.mulf %711, %20 : vector<8x32xf32>
    %718 = arith.subf %716, %717 : vector<8x32xf32>
    %719 = arith.cmpf ogt, %718, %20 : vector<8x32xf32>
    %720 = arith.extui %719 : vector<8x32xi1> to vector<8x32xi32>
    %721 = arith.sitofp %720 : vector<8x32xi32> to vector<8x32xf32>
    %c0_245 = arith.constant 0 : index
    %c0_246 = arith.constant 0 : index
    %722 = vector.load %arg10[%c0_245, %c0_246] : memref<32x128xf32, #tpu.memory_space<vmem>>, vector<32x128xf32>
    %cst_247 = arith.constant dense<0.000000e+00> : vector<8x128xf32>
    %723 = tpu.matmul %721, %722, %cst_247 {dimension_numbers = #tpu.dot_dimension_numbers<[1], [0], [0], [1], [0, 0, 1, 1], [], []>} : vector<8x32xf32>, vector<32x128xf32>, vector<8x128xf32> -> vector<8x128xf32>
    %c0_248 = arith.constant 0 : index
    %c0_249 = arith.constant 0 : index
    %724 = vector.load %arg11[%c0_248, %c0_249] : memref<32x128xf32, #tpu.memory_space<vmem>>, vector<32x128xf32>
    %cst_250 = arith.constant dense<0.000000e+00> : vector<8x128xf32>
    %725 = tpu.matmul %628, %724, %cst_250 {dimension_numbers = #tpu.dot_dimension_numbers<[1], [0], [0], [1], [0, 0, 1, 1], [], []>} : vector<8x32xf32>, vector<32x128xf32>, vector<8x128xf32> -> vector<8x128xf32>
    %726 = arith.addf %723, %725 : vector<8x128xf32>
    %727 = arith.addf %726, %14 : vector<8x128xf32>
    %728 = arith.negf %727 : vector<8x128xf32>
    %729 = math.exp %728 : vector<8x128xf32>
    %cst_251 = arith.constant 1.000000e+00 : f32
    %730 = vector.broadcast %cst_251 : f32 to vector<8x128xf32>
    %731 = arith.addf %730, %729 : vector<8x128xf32>
    %732 = arith.divf %730, %731 : vector<8x128xf32>
    %733 = vector.extract_strided_slice %732 {offsets = [0, 0], sizes = [8, 32], strides = [1, 1]} : vector<8x128xf32> to vector<8x32xf32>
    %734 = vector.extract_strided_slice %732 {offsets = [0, 32], sizes = [8, 32], strides = [1, 1]} : vector<8x128xf32> to vector<8x32xf32>
    %735 = vector.extract_strided_slice %732 {offsets = [0, 64], sizes = [8, 32], strides = [1, 1]} : vector<8x128xf32> to vector<8x32xf32>
    %cst_252 = arith.constant 2.000000e+00 : f32
    %736 = vector.broadcast %cst_252 : f32 to vector<8x32xf32>
    %737 = arith.mulf %736, %735 : vector<8x32xf32>
    %cst_253 = arith.constant 1.000000e+00 : f32
    %738 = vector.broadcast %cst_253 : f32 to vector<8x32xf32>
    %739 = arith.subf %737, %738 : vector<8x32xf32>
    %740 = vector.extract_strided_slice %732 {offsets = [0, 96], sizes = [8, 32], strides = [1, 1]} : vector<8x128xf32> to vector<8x32xf32>
    %741 = arith.cmpf ogt, %628, %23 : vector<8x32xf32>
    %742 = arith.extui %741 : vector<8x32xi1> to vector<8x32xi32>
    %743 = arith.sitofp %742 : vector<8x32xi32> to vector<8x32xf32>
    %744 = arith.mulf %734, %624 : vector<8x32xf32>
    %745 = arith.mulf %733, %739 : vector<8x32xf32>
    %746 = arith.addf %744, %745 : vector<8x32xf32>
    %747 = math.tanh %746 : vector<8x32xf32>
    %748 = arith.mulf %740, %747 : vector<8x32xf32>
    %749 = arith.mulf %743, %23 : vector<8x32xf32>
    %750 = arith.subf %748, %749 : vector<8x32xf32>
    %751 = arith.cmpf ogt, %750, %23 : vector<8x32xf32>
    %752 = arith.extui %751 : vector<8x32xi1> to vector<8x32xi32>
    %753 = arith.sitofp %752 : vector<8x32xi32> to vector<8x32xf32>
    %754 = arith.addf %632, %721 : vector<8x32xf32>
    %c0_254 = arith.constant 0 : index
    %c0_255 = arith.constant 0 : index
    %755 = vector.load %arg14[%c0_254, %c0_255] : memref<32x32xf32, #tpu.memory_space<vmem>>, vector<32x32xf32>
    %cst_256 = arith.constant dense<0.000000e+00> : vector<8x32xf32>
    %756 = tpu.matmul %750, %755, %cst_256 {dimension_numbers = #tpu.dot_dimension_numbers<[1], [0], [0], [1], [0, 0, 1, 1], [], []>} : vector<8x32xf32>, vector<32x32xf32>, vector<8x32xf32> -> vector<8x32xf32>
    %757 = arith.addf %756, %26 : vector<8x32xf32>
    %758 = arith.mulf %32, %637 : vector<8x32xf32>
    %759 = arith.addf %758, %757 : vector<8x32xf32>
    %c0_257 = arith.constant 0 : index
    %c0_258 = arith.constant 0 : index
    %760 = vector.load %arg17[%c0_257, %c0_258] : memref<32x4xf32, #tpu.memory_space<vmem>>, vector<32x4xf32>
    %cst_259 = arith.constant dense<0.000000e+00> : vector<8x4xf32>
    %761 = tpu.matmul %759, %760, %cst_259 {dimension_numbers = #tpu.dot_dimension_numbers<[1], [0], [0], [1], [0, 0, 1, 1], [], []>} : vector<8x32xf32>, vector<32x4xf32>, vector<8x4xf32> -> vector<8x4xf32>
    %762 = arith.addf %761, %29 : vector<8x4xf32>
    %763 = arith.mulf %35, %642 : vector<8x4xf32>
    %764 = arith.addf %763, %762 : vector<8x4xf32>
    %765 = arith.index_cast %c5_i32 : i32 to index
    %c0_260 = arith.constant 0 : index
    %c0_261 = arith.constant 0 : index
    %766 = vector.load %arg20[%765, %c0_260, %c0_261] : memref<8x8x40xf32, #tpu.memory_space<vmem>>, vector<1x8x4xf32>
    %767 = vector.shape_cast %766 : vector<1x8x4xf32> to vector<8x4xf32>
    %768 = vector.shape_cast %762 : vector<8x4xf32> to vector<1x8x4xf32>
    tpu.vector_store %arg20[%765, %c0_260, %c0_261], %768 {strides = array<i32>} : memref<8x8x40xf32, #tpu.memory_space<vmem>>, vector<1x8x4xf32>,
    %769 = arith.index_cast %c5_i32 : i32 to index
    %c0_262 = arith.constant 0 : index
    %c4_263 = arith.constant 4 : index
    %770 = vector.load %arg20[%769, %c0_262, %c4_263] : memref<8x8x40xf32, #tpu.memory_space<vmem>>, vector<1x8x4xf32>
    %771 = vector.shape_cast %770 : vector<1x8x4xf32> to vector<8x4xf32>
    %772 = vector.shape_cast %764 : vector<8x4xf32> to vector<1x8x4xf32>
    tpu.vector_store %arg20[%769, %c0_262, %c4_263], %772 {strides = array<i32>} : memref<8x8x40xf32, #tpu.memory_space<vmem>>, vector<1x8x4xf32>,
    %773 = arith.index_cast %c5_i32 : i32 to index
    %c0_264 = arith.constant 0 : index
    %c8_265 = arith.constant 8 : index
    %774 = vector.load %arg20[%773, %c0_264, %c8_265] : memref<8x8x40xf32, #tpu.memory_space<vmem>>, vector<1x8x32xf32>
    %775 = vector.shape_cast %774 : vector<1x8x32xf32> to vector<8x32xf32>
    %776 = vector.shape_cast %753 : vector<8x32xf32> to vector<1x8x32xf32>
    tpu.vector_store %arg20[%773, %c0_264, %c8_265], %776 {strides = array<i32>} : memref<8x8x40xf32, #tpu.memory_space<vmem>>, vector<1x8x32xf32>,
    %c6_i32 = arith.constant 6 : i32
    %777 = arith.index_cast %c6_i32 : i32 to index
    %c0_266 = arith.constant 0 : index
    %c0_267 = arith.constant 0 : index
    %778 = vector.load %arg1[%777, %c0_266, %c0_267] : memref<8x8x1xf32, #tpu.memory_space<vmem>>, vector<1x8x1xf32>
    %779 = vector.shape_cast %778 : vector<1x8x1xf32> to vector<8x1xf32>
    %780 = vector.broadcast %779 : vector<8x1xf32> to vector<8x128xf32>
    %781 = arith.mulf %780, %5 : vector<8x128xf32>
    %c0_268 = arith.constant 0 : index
    %c0_269 = arith.constant 0 : index
    %782 = vector.load %arg3[%c0_268, %c0_269] : memref<32x128xf32, #tpu.memory_space<vmem>>, vector<32x128xf32>
    %cst_270 = arith.constant dense<0.000000e+00> : vector<8x128xf32>
    %783 = tpu.matmul %686, %782, %cst_270 {dimension_numbers = #tpu.dot_dimension_numbers<[1], [0], [0], [1], [0, 0, 1, 1], [], []>} : vector<8x32xf32>, vector<32x128xf32>, vector<8x128xf32> -> vector<8x128xf32>
    %784 = arith.addf %781, %783 : vector<8x128xf32>
    %785 = arith.addf %784, %8 : vector<8x128xf32>
    %786 = arith.negf %785 : vector<8x128xf32>
    %787 = math.exp %786 : vector<8x128xf32>
    %cst_271 = arith.constant 1.000000e+00 : f32
    %788 = vector.broadcast %cst_271 : f32 to vector<8x128xf32>
    %789 = arith.addf %788, %787 : vector<8x128xf32>
    %790 = arith.divf %788, %789 : vector<8x128xf32>
    %791 = vector.extract_strided_slice %790 {offsets = [0, 0], sizes = [8, 32], strides = [1, 1]} : vector<8x128xf32> to vector<8x32xf32>
    %792 = vector.extract_strided_slice %790 {offsets = [0, 32], sizes = [8, 32], strides = [1, 1]} : vector<8x128xf32> to vector<8x32xf32>
    %793 = vector.extract_strided_slice %790 {offsets = [0, 64], sizes = [8, 32], strides = [1, 1]} : vector<8x128xf32> to vector<8x32xf32>
    %cst_272 = arith.constant 2.000000e+00 : f32
    %794 = vector.broadcast %cst_272 : f32 to vector<8x32xf32>
    %795 = arith.mulf %794, %793 : vector<8x32xf32>
    %cst_273 = arith.constant 1.000000e+00 : f32
    %796 = vector.broadcast %cst_273 : f32 to vector<8x32xf32>
    %797 = arith.subf %795, %796 : vector<8x32xf32>
    %798 = vector.extract_strided_slice %790 {offsets = [0, 96], sizes = [8, 32], strides = [1, 1]} : vector<8x128xf32> to vector<8x32xf32>
    %799 = arith.cmpf ogt, %686, %17 : vector<8x32xf32>
    %800 = arith.extui %799 : vector<8x32xi1> to vector<8x32xi32>
    %801 = arith.sitofp %800 : vector<8x32xi32> to vector<8x32xf32>
    %802 = arith.mulf %792, %682 : vector<8x32xf32>
    %803 = arith.mulf %791, %797 : vector<8x32xf32>
    %804 = arith.addf %802, %803 : vector<8x32xf32>
    %805 = math.tanh %804 : vector<8x32xf32>
    %806 = arith.mulf %798, %805 : vector<8x32xf32>
    %807 = arith.mulf %801, %17 : vector<8x32xf32>
    %808 = arith.subf %806, %807 : vector<8x32xf32>
    %809 = arith.cmpf ogt, %808, %17 : vector<8x32xf32>
    %810 = arith.extui %809 : vector<8x32xi1> to vector<8x32xi32>
    %811 = arith.sitofp %810 : vector<8x32xi32> to vector<8x32xf32>
    %c0_274 = arith.constant 0 : index
    %c0_275 = arith.constant 0 : index
    %812 = vector.load %arg6[%c0_274, %c0_275] : memref<32x128xf32, #tpu.memory_space<vmem>>, vector<32x128xf32>
    %cst_276 = arith.constant dense<0.000000e+00> : vector<8x128xf32>
    %813 = tpu.matmul %811, %812, %cst_276 {dimension_numbers = #tpu.dot_dimension_numbers<[1], [0], [0], [1], [0, 0, 1, 1], [], []>} : vector<8x32xf32>, vector<32x128xf32>, vector<8x128xf32> -> vector<8x128xf32>
    %c0_277 = arith.constant 0 : index
    %c0_278 = arith.constant 0 : index
    %814 = vector.load %arg7[%c0_277, %c0_278] : memref<32x128xf32, #tpu.memory_space<vmem>>, vector<32x128xf32>
    %cst_279 = arith.constant dense<0.000000e+00> : vector<8x128xf32>
    %815 = tpu.matmul %718, %814, %cst_279 {dimension_numbers = #tpu.dot_dimension_numbers<[1], [0], [0], [1], [0, 0, 1, 1], [], []>} : vector<8x32xf32>, vector<32x128xf32>, vector<8x128xf32> -> vector<8x128xf32>
    %816 = arith.addf %813, %815 : vector<8x128xf32>
    %817 = arith.addf %816, %11 : vector<8x128xf32>
    %818 = arith.negf %817 : vector<8x128xf32>
    %819 = math.exp %818 : vector<8x128xf32>
    %cst_280 = arith.constant 1.000000e+00 : f32
    %820 = vector.broadcast %cst_280 : f32 to vector<8x128xf32>
    %821 = arith.addf %820, %819 : vector<8x128xf32>
    %822 = arith.divf %820, %821 : vector<8x128xf32>
    %823 = vector.extract_strided_slice %822 {offsets = [0, 0], sizes = [8, 32], strides = [1, 1]} : vector<8x128xf32> to vector<8x32xf32>
    %824 = vector.extract_strided_slice %822 {offsets = [0, 32], sizes = [8, 32], strides = [1, 1]} : vector<8x128xf32> to vector<8x32xf32>
    %825 = vector.extract_strided_slice %822 {offsets = [0, 64], sizes = [8, 32], strides = [1, 1]} : vector<8x128xf32> to vector<8x32xf32>
    %cst_281 = arith.constant 2.000000e+00 : f32
    %826 = vector.broadcast %cst_281 : f32 to vector<8x32xf32>
    %827 = arith.mulf %826, %825 : vector<8x32xf32>
    %cst_282 = arith.constant 1.000000e+00 : f32
    %828 = vector.broadcast %cst_282 : f32 to vector<8x32xf32>
    %829 = arith.subf %827, %828 : vector<8x32xf32>
    %830 = vector.extract_strided_slice %822 {offsets = [0, 96], sizes = [8, 32], strides = [1, 1]} : vector<8x128xf32> to vector<8x32xf32>
    %831 = arith.cmpf ogt, %718, %20 : vector<8x32xf32>
    %832 = arith.extui %831 : vector<8x32xi1> to vector<8x32xi32>
    %833 = arith.sitofp %832 : vector<8x32xi32> to vector<8x32xf32>
    %834 = arith.mulf %824, %714 : vector<8x32xf32>
    %835 = arith.mulf %823, %829 : vector<8x32xf32>
    %836 = arith.addf %834, %835 : vector<8x32xf32>
    %837 = math.tanh %836 : vector<8x32xf32>
    %838 = arith.mulf %830, %837 : vector<8x32xf32>
    %839 = arith.mulf %833, %20 : vector<8x32xf32>
    %840 = arith.subf %838, %839 : vector<8x32xf32>
    %841 = arith.cmpf ogt, %840, %20 : vector<8x32xf32>
    %842 = arith.extui %841 : vector<8x32xi1> to vector<8x32xi32>
    %843 = arith.sitofp %842 : vector<8x32xi32> to vector<8x32xf32>
    %c0_283 = arith.constant 0 : index
    %c0_284 = arith.constant 0 : index
    %844 = vector.load %arg10[%c0_283, %c0_284] : memref<32x128xf32, #tpu.memory_space<vmem>>, vector<32x128xf32>
    %cst_285 = arith.constant dense<0.000000e+00> : vector<8x128xf32>
    %845 = tpu.matmul %843, %844, %cst_285 {dimension_numbers = #tpu.dot_dimension_numbers<[1], [0], [0], [1], [0, 0, 1, 1], [], []>} : vector<8x32xf32>, vector<32x128xf32>, vector<8x128xf32> -> vector<8x128xf32>
    %c0_286 = arith.constant 0 : index
    %c0_287 = arith.constant 0 : index
    %846 = vector.load %arg11[%c0_286, %c0_287] : memref<32x128xf32, #tpu.memory_space<vmem>>, vector<32x128xf32>
    %cst_288 = arith.constant dense<0.000000e+00> : vector<8x128xf32>
    %847 = tpu.matmul %750, %846, %cst_288 {dimension_numbers = #tpu.dot_dimension_numbers<[1], [0], [0], [1], [0, 0, 1, 1], [], []>} : vector<8x32xf32>, vector<32x128xf32>, vector<8x128xf32> -> vector<8x128xf32>
    %848 = arith.addf %845, %847 : vector<8x128xf32>
    %849 = arith.addf %848, %14 : vector<8x128xf32>
    %850 = arith.negf %849 : vector<8x128xf32>
    %851 = math.exp %850 : vector<8x128xf32>
    %cst_289 = arith.constant 1.000000e+00 : f32
    %852 = vector.broadcast %cst_289 : f32 to vector<8x128xf32>
    %853 = arith.addf %852, %851 : vector<8x128xf32>
    %854 = arith.divf %852, %853 : vector<8x128xf32>
    %855 = vector.extract_strided_slice %854 {offsets = [0, 0], sizes = [8, 32], strides = [1, 1]} : vector<8x128xf32> to vector<8x32xf32>
    %856 = vector.extract_strided_slice %854 {offsets = [0, 32], sizes = [8, 32], strides = [1, 1]} : vector<8x128xf32> to vector<8x32xf32>
    %857 = vector.extract_strided_slice %854 {offsets = [0, 64], sizes = [8, 32], strides = [1, 1]} : vector<8x128xf32> to vector<8x32xf32>
    %cst_290 = arith.constant 2.000000e+00 : f32
    %858 = vector.broadcast %cst_290 : f32 to vector<8x32xf32>
    %859 = arith.mulf %858, %857 : vector<8x32xf32>
    %cst_291 = arith.constant 1.000000e+00 : f32
    %860 = vector.broadcast %cst_291 : f32 to vector<8x32xf32>
    %861 = arith.subf %859, %860 : vector<8x32xf32>
    %862 = vector.extract_strided_slice %854 {offsets = [0, 96], sizes = [8, 32], strides = [1, 1]} : vector<8x128xf32> to vector<8x32xf32>
    %863 = arith.cmpf ogt, %750, %23 : vector<8x32xf32>
    %864 = arith.extui %863 : vector<8x32xi1> to vector<8x32xi32>
    %865 = arith.sitofp %864 : vector<8x32xi32> to vector<8x32xf32>
    %866 = arith.mulf %856, %746 : vector<8x32xf32>
    %867 = arith.mulf %855, %861 : vector<8x32xf32>
    %868 = arith.addf %866, %867 : vector<8x32xf32>
    %869 = math.tanh %868 : vector<8x32xf32>
    %870 = arith.mulf %862, %869 : vector<8x32xf32>
    %871 = arith.mulf %865, %23 : vector<8x32xf32>
    %872 = arith.subf %870, %871 : vector<8x32xf32>
    %873 = arith.cmpf ogt, %872, %23 : vector<8x32xf32>
    %874 = arith.extui %873 : vector<8x32xi1> to vector<8x32xi32>
    %875 = arith.sitofp %874 : vector<8x32xi32> to vector<8x32xf32>
    %876 = arith.addf %754, %843 : vector<8x32xf32>
    %c0_292 = arith.constant 0 : index
    %c0_293 = arith.constant 0 : index
    %877 = vector.load %arg14[%c0_292, %c0_293] : memref<32x32xf32, #tpu.memory_space<vmem>>, vector<32x32xf32>
    %cst_294 = arith.constant dense<0.000000e+00> : vector<8x32xf32>
    %878 = tpu.matmul %872, %877, %cst_294 {dimension_numbers = #tpu.dot_dimension_numbers<[1], [0], [0], [1], [0, 0, 1, 1], [], []>} : vector<8x32xf32>, vector<32x32xf32>, vector<8x32xf32> -> vector<8x32xf32>
    %879 = arith.addf %878, %26 : vector<8x32xf32>
    %880 = arith.mulf %32, %759 : vector<8x32xf32>
    %881 = arith.addf %880, %879 : vector<8x32xf32>
    %c0_295 = arith.constant 0 : index
    %c0_296 = arith.constant 0 : index
    %882 = vector.load %arg17[%c0_295, %c0_296] : memref<32x4xf32, #tpu.memory_space<vmem>>, vector<32x4xf32>
    %cst_297 = arith.constant dense<0.000000e+00> : vector<8x4xf32>
    %883 = tpu.matmul %881, %882, %cst_297 {dimension_numbers = #tpu.dot_dimension_numbers<[1], [0], [0], [1], [0, 0, 1, 1], [], []>} : vector<8x32xf32>, vector<32x4xf32>, vector<8x4xf32> -> vector<8x4xf32>
    %884 = arith.addf %883, %29 : vector<8x4xf32>
    %885 = arith.mulf %35, %764 : vector<8x4xf32>
    %886 = arith.addf %885, %884 : vector<8x4xf32>
    %887 = arith.index_cast %c6_i32 : i32 to index
    %c0_298 = arith.constant 0 : index
    %c0_299 = arith.constant 0 : index
    %888 = vector.load %arg20[%887, %c0_298, %c0_299] : memref<8x8x40xf32, #tpu.memory_space<vmem>>, vector<1x8x4xf32>
    %889 = vector.shape_cast %888 : vector<1x8x4xf32> to vector<8x4xf32>
    %890 = vector.shape_cast %884 : vector<8x4xf32> to vector<1x8x4xf32>
    tpu.vector_store %arg20[%887, %c0_298, %c0_299], %890 {strides = array<i32>} : memref<8x8x40xf32, #tpu.memory_space<vmem>>, vector<1x8x4xf32>,
    %891 = arith.index_cast %c6_i32 : i32 to index
    %c0_300 = arith.constant 0 : index
    %c4_301 = arith.constant 4 : index
    %892 = vector.load %arg20[%891, %c0_300, %c4_301] : memref<8x8x40xf32, #tpu.memory_space<vmem>>, vector<1x8x4xf32>
    %893 = vector.shape_cast %892 : vector<1x8x4xf32> to vector<8x4xf32>
    %894 = vector.shape_cast %886 : vector<8x4xf32> to vector<1x8x4xf32>
    tpu.vector_store %arg20[%891, %c0_300, %c4_301], %894 {strides = array<i32>} : memref<8x8x40xf32, #tpu.memory_space<vmem>>, vector<1x8x4xf32>,
    %895 = arith.index_cast %c6_i32 : i32 to index
    %c0_302 = arith.constant 0 : index
    %c8_303 = arith.constant 8 : index
    %896 = vector.load %arg20[%895, %c0_302, %c8_303] : memref<8x8x40xf32, #tpu.memory_space<vmem>>, vector<1x8x32xf32>
    %897 = vector.shape_cast %896 : vector<1x8x32xf32> to vector<8x32xf32>
    %898 = vector.shape_cast %875 : vector<8x32xf32> to vector<1x8x32xf32>
    tpu.vector_store %arg20[%895, %c0_302, %c8_303], %898 {strides = array<i32>} : memref<8x8x40xf32, #tpu.memory_space<vmem>>, vector<1x8x32xf32>,
    %c7_i32 = arith.constant 7 : i32
    %899 = arith.index_cast %c7_i32 : i32 to index
    %c0_304 = arith.constant 0 : index
    %c0_305 = arith.constant 0 : index
    %900 = vector.load %arg1[%899, %c0_304, %c0_305] : memref<8x8x1xf32, #tpu.memory_space<vmem>>, vector<1x8x1xf32>
    %901 = vector.shape_cast %900 : vector<1x8x1xf32> to vector<8x1xf32>
    %902 = vector.broadcast %901 : vector<8x1xf32> to vector<8x128xf32>
    %903 = arith.mulf %902, %5 : vector<8x128xf32>
    %c0_306 = arith.constant 0 : index
    %c0_307 = arith.constant 0 : index
    %904 = vector.load %arg3[%c0_306, %c0_307] : memref<32x128xf32, #tpu.memory_space<vmem>>, vector<32x128xf32>
    %cst_308 = arith.constant dense<0.000000e+00> : vector<8x128xf32>
    %905 = tpu.matmul %808, %904, %cst_308 {dimension_numbers = #tpu.dot_dimension_numbers<[1], [0], [0], [1], [0, 0, 1, 1], [], []>} : vector<8x32xf32>, vector<32x128xf32>, vector<8x128xf32> -> vector<8x128xf32>
    %906 = arith.addf %903, %905 : vector<8x128xf32>
    %907 = arith.addf %906, %8 : vector<8x128xf32>
    %908 = arith.negf %907 : vector<8x128xf32>
    %909 = math.exp %908 : vector<8x128xf32>
    %cst_309 = arith.constant 1.000000e+00 : f32
    %910 = vector.broadcast %cst_309 : f32 to vector<8x128xf32>
    %911 = arith.addf %910, %909 : vector<8x128xf32>
    %912 = arith.divf %910, %911 : vector<8x128xf32>
    %913 = vector.extract_strided_slice %912 {offsets = [0, 0], sizes = [8, 32], strides = [1, 1]} : vector<8x128xf32> to vector<8x32xf32>
    %914 = vector.extract_strided_slice %912 {offsets = [0, 32], sizes = [8, 32], strides = [1, 1]} : vector<8x128xf32> to vector<8x32xf32>
    %915 = vector.extract_strided_slice %912 {offsets = [0, 64], sizes = [8, 32], strides = [1, 1]} : vector<8x128xf32> to vector<8x32xf32>
    %cst_310 = arith.constant 2.000000e+00 : f32
    %916 = vector.broadcast %cst_310 : f32 to vector<8x32xf32>
    %917 = arith.mulf %916, %915 : vector<8x32xf32>
    %cst_311 = arith.constant 1.000000e+00 : f32
    %918 = vector.broadcast %cst_311 : f32 to vector<8x32xf32>
    %919 = arith.subf %917, %918 : vector<8x32xf32>
    %920 = vector.extract_strided_slice %912 {offsets = [0, 96], sizes = [8, 32], strides = [1, 1]} : vector<8x128xf32> to vector<8x32xf32>
    %921 = arith.cmpf ogt, %808, %17 : vector<8x32xf32>
    %922 = arith.extui %921 : vector<8x32xi1> to vector<8x32xi32>
    %923 = arith.sitofp %922 : vector<8x32xi32> to vector<8x32xf32>
    %924 = arith.mulf %914, %804 : vector<8x32xf32>
    %925 = arith.mulf %913, %919 : vector<8x32xf32>
    %926 = arith.addf %924, %925 : vector<8x32xf32>
    %927 = math.tanh %926 : vector<8x32xf32>
    %928 = arith.mulf %920, %927 : vector<8x32xf32>
    %929 = arith.mulf %923, %17 : vector<8x32xf32>
    %930 = arith.subf %928, %929 : vector<8x32xf32>
    %931 = arith.cmpf ogt, %930, %17 : vector<8x32xf32>
    %932 = arith.extui %931 : vector<8x32xi1> to vector<8x32xi32>
    %933 = arith.sitofp %932 : vector<8x32xi32> to vector<8x32xf32>
    %c0_312 = arith.constant 0 : index
    %c0_313 = arith.constant 0 : index
    %934 = vector.load %arg6[%c0_312, %c0_313] : memref<32x128xf32, #tpu.memory_space<vmem>>, vector<32x128xf32>
    %cst_314 = arith.constant dense<0.000000e+00> : vector<8x128xf32>
    %935 = tpu.matmul %933, %934, %cst_314 {dimension_numbers = #tpu.dot_dimension_numbers<[1], [0], [0], [1], [0, 0, 1, 1], [], []>} : vector<8x32xf32>, vector<32x128xf32>, vector<8x128xf32> -> vector<8x128xf32>
    %c0_315 = arith.constant 0 : index
    %c0_316 = arith.constant 0 : index
    %936 = vector.load %arg7[%c0_315, %c0_316] : memref<32x128xf32, #tpu.memory_space<vmem>>, vector<32x128xf32>
    %cst_317 = arith.constant dense<0.000000e+00> : vector<8x128xf32>
    %937 = tpu.matmul %840, %936, %cst_317 {dimension_numbers = #tpu.dot_dimension_numbers<[1], [0], [0], [1], [0, 0, 1, 1], [], []>} : vector<8x32xf32>, vector<32x128xf32>, vector<8x128xf32> -> vector<8x128xf32>
    %938 = arith.addf %935, %937 : vector<8x128xf32>
    %939 = arith.addf %938, %11 : vector<8x128xf32>
    %940 = arith.negf %939 : vector<8x128xf32>
    %941 = math.exp %940 : vector<8x128xf32>
    %cst_318 = arith.constant 1.000000e+00 : f32
    %942 = vector.broadcast %cst_318 : f32 to vector<8x128xf32>
    %943 = arith.addf %942, %941 : vector<8x128xf32>
    %944 = arith.divf %942, %943 : vector<8x128xf32>
    %945 = vector.extract_strided_slice %944 {offsets = [0, 0], sizes = [8, 32], strides = [1, 1]} : vector<8x128xf32> to vector<8x32xf32>
    %946 = vector.extract_strided_slice %944 {offsets = [0, 32], sizes = [8, 32], strides = [1, 1]} : vector<8x128xf32> to vector<8x32xf32>
    %947 = vector.extract_strided_slice %944 {offsets = [0, 64], sizes = [8, 32], strides = [1, 1]} : vector<8x128xf32> to vector<8x32xf32>
    %cst_319 = arith.constant 2.000000e+00 : f32
    %948 = vector.broadcast %cst_319 : f32 to vector<8x32xf32>
    %949 = arith.mulf %948, %947 : vector<8x32xf32>
    %cst_320 = arith.constant 1.000000e+00 : f32
    %950 = vector.broadcast %cst_320 : f32 to vector<8x32xf32>
    %951 = arith.subf %949, %950 : vector<8x32xf32>
    %952 = vector.extract_strided_slice %944 {offsets = [0, 96], sizes = [8, 32], strides = [1, 1]} : vector<8x128xf32> to vector<8x32xf32>
    %953 = arith.cmpf ogt, %840, %20 : vector<8x32xf32>
    %954 = arith.extui %953 : vector<8x32xi1> to vector<8x32xi32>
    %955 = arith.sitofp %954 : vector<8x32xi32> to vector<8x32xf32>
    %956 = arith.mulf %946, %836 : vector<8x32xf32>
    %957 = arith.mulf %945, %951 : vector<8x32xf32>
    %958 = arith.addf %956, %957 : vector<8x32xf32>
    %959 = math.tanh %958 : vector<8x32xf32>
    %960 = arith.mulf %952, %959 : vector<8x32xf32>
    %961 = arith.mulf %955, %20 : vector<8x32xf32>
    %962 = arith.subf %960, %961 : vector<8x32xf32>
    %963 = arith.cmpf ogt, %962, %20 : vector<8x32xf32>
    %964 = arith.extui %963 : vector<8x32xi1> to vector<8x32xi32>
    %965 = arith.sitofp %964 : vector<8x32xi32> to vector<8x32xf32>
    %c0_321 = arith.constant 0 : index
    %c0_322 = arith.constant 0 : index
    %966 = vector.load %arg10[%c0_321, %c0_322] : memref<32x128xf32, #tpu.memory_space<vmem>>, vector<32x128xf32>
    %cst_323 = arith.constant dense<0.000000e+00> : vector<8x128xf32>
    %967 = tpu.matmul %965, %966, %cst_323 {dimension_numbers = #tpu.dot_dimension_numbers<[1], [0], [0], [1], [0, 0, 1, 1], [], []>} : vector<8x32xf32>, vector<32x128xf32>, vector<8x128xf32> -> vector<8x128xf32>
    %c0_324 = arith.constant 0 : index
    %c0_325 = arith.constant 0 : index
    %968 = vector.load %arg11[%c0_324, %c0_325] : memref<32x128xf32, #tpu.memory_space<vmem>>, vector<32x128xf32>
    %cst_326 = arith.constant dense<0.000000e+00> : vector<8x128xf32>
    %969 = tpu.matmul %872, %968, %cst_326 {dimension_numbers = #tpu.dot_dimension_numbers<[1], [0], [0], [1], [0, 0, 1, 1], [], []>} : vector<8x32xf32>, vector<32x128xf32>, vector<8x128xf32> -> vector<8x128xf32>
    %970 = arith.addf %967, %969 : vector<8x128xf32>
    %971 = arith.addf %970, %14 : vector<8x128xf32>
    %972 = arith.negf %971 : vector<8x128xf32>
    %973 = math.exp %972 : vector<8x128xf32>
    %cst_327 = arith.constant 1.000000e+00 : f32
    %974 = vector.broadcast %cst_327 : f32 to vector<8x128xf32>
    %975 = arith.addf %974, %973 : vector<8x128xf32>
    %976 = arith.divf %974, %975 : vector<8x128xf32>
    %977 = vector.extract_strided_slice %976 {offsets = [0, 0], sizes = [8, 32], strides = [1, 1]} : vector<8x128xf32> to vector<8x32xf32>
    %978 = vector.extract_strided_slice %976 {offsets = [0, 32], sizes = [8, 32], strides = [1, 1]} : vector<8x128xf32> to vector<8x32xf32>
    %979 = vector.extract_strided_slice %976 {offsets = [0, 64], sizes = [8, 32], strides = [1, 1]} : vector<8x128xf32> to vector<8x32xf32>
    %cst_328 = arith.constant 2.000000e+00 : f32
    %980 = vector.broadcast %cst_328 : f32 to vector<8x32xf32>
    %981 = arith.mulf %980, %979 : vector<8x32xf32>
    %cst_329 = arith.constant 1.000000e+00 : f32
    %982 = vector.broadcast %cst_329 : f32 to vector<8x32xf32>
    %983 = arith.subf %981, %982 : vector<8x32xf32>
    %984 = vector.extract_strided_slice %976 {offsets = [0, 96], sizes = [8, 32], strides = [1, 1]} : vector<8x128xf32> to vector<8x32xf32>
    %985 = arith.cmpf ogt, %872, %23 : vector<8x32xf32>
    %986 = arith.extui %985 : vector<8x32xi1> to vector<8x32xi32>
    %987 = arith.sitofp %986 : vector<8x32xi32> to vector<8x32xf32>
    %988 = arith.mulf %978, %868 : vector<8x32xf32>
    %989 = arith.mulf %977, %983 : vector<8x32xf32>
    %990 = arith.addf %988, %989 : vector<8x32xf32>
    %991 = math.tanh %990 : vector<8x32xf32>
    %992 = arith.mulf %984, %991 : vector<8x32xf32>
    %993 = arith.mulf %987, %23 : vector<8x32xf32>
    %994 = arith.subf %992, %993 : vector<8x32xf32>
    %995 = arith.cmpf ogt, %994, %23 : vector<8x32xf32>
    %996 = arith.extui %995 : vector<8x32xi1> to vector<8x32xi32>
    %997 = arith.sitofp %996 : vector<8x32xi32> to vector<8x32xf32>
    %998 = arith.addf %876, %965 : vector<8x32xf32>
    %c0_330 = arith.constant 0 : index
    %c0_331 = arith.constant 0 : index
    %999 = vector.load %arg14[%c0_330, %c0_331] : memref<32x32xf32, #tpu.memory_space<vmem>>, vector<32x32xf32>
    %cst_332 = arith.constant dense<0.000000e+00> : vector<8x32xf32>
    %1000 = tpu.matmul %994, %999, %cst_332 {dimension_numbers = #tpu.dot_dimension_numbers<[1], [0], [0], [1], [0, 0, 1, 1], [], []>} : vector<8x32xf32>, vector<32x32xf32>, vector<8x32xf32> -> vector<8x32xf32>
    %1001 = arith.addf %1000, %26 : vector<8x32xf32>
    %1002 = arith.mulf %32, %881 : vector<8x32xf32>
    %1003 = arith.addf %1002, %1001 : vector<8x32xf32>
    %c0_333 = arith.constant 0 : index
    %c0_334 = arith.constant 0 : index
    %1004 = vector.load %arg17[%c0_333, %c0_334] : memref<32x4xf32, #tpu.memory_space<vmem>>, vector<32x4xf32>
    %cst_335 = arith.constant dense<0.000000e+00> : vector<8x4xf32>
    %1005 = tpu.matmul %1003, %1004, %cst_335 {dimension_numbers = #tpu.dot_dimension_numbers<[1], [0], [0], [1], [0, 0, 1, 1], [], []>} : vector<8x32xf32>, vector<32x4xf32>, vector<8x4xf32> -> vector<8x4xf32>
    %1006 = arith.addf %1005, %29 : vector<8x4xf32>
    %1007 = arith.mulf %35, %886 : vector<8x4xf32>
    %1008 = arith.addf %1007, %1006 : vector<8x4xf32>
    %1009 = arith.index_cast %c7_i32 : i32 to index
    %c0_336 = arith.constant 0 : index
    %c0_337 = arith.constant 0 : index
    %1010 = vector.load %arg20[%1009, %c0_336, %c0_337] : memref<8x8x40xf32, #tpu.memory_space<vmem>>, vector<1x8x4xf32>
    %1011 = vector.shape_cast %1010 : vector<1x8x4xf32> to vector<8x4xf32>
    %1012 = vector.shape_cast %1006 : vector<8x4xf32> to vector<1x8x4xf32>
    tpu.vector_store %arg20[%1009, %c0_336, %c0_337], %1012 {strides = array<i32>} : memref<8x8x40xf32, #tpu.memory_space<vmem>>, vector<1x8x4xf32>,
    %1013 = arith.index_cast %c7_i32 : i32 to index
    %c0_338 = arith.constant 0 : index
    %c4_339 = arith.constant 4 : index
    %1014 = vector.load %arg20[%1013, %c0_338, %c4_339] : memref<8x8x40xf32, #tpu.memory_space<vmem>>, vector<1x8x4xf32>
    %1015 = vector.shape_cast %1014 : vector<1x8x4xf32> to vector<8x4xf32>
    %1016 = vector.shape_cast %1008 : vector<8x4xf32> to vector<1x8x4xf32>
    tpu.vector_store %arg20[%1013, %c0_338, %c4_339], %1016 {strides = array<i32>} : memref<8x8x40xf32, #tpu.memory_space<vmem>>, vector<1x8x4xf32>,
    %1017 = arith.index_cast %c7_i32 : i32 to index
    %c0_340 = arith.constant 0 : index
    %c8_341 = arith.constant 8 : index
    %1018 = vector.load %arg20[%1017, %c0_340, %c8_341] : memref<8x8x40xf32, #tpu.memory_space<vmem>>, vector<1x8x32xf32>
    %1019 = vector.shape_cast %1018 : vector<1x8x32xf32> to vector<8x32xf32>
    %1020 = vector.shape_cast %997 : vector<8x32xf32> to vector<1x8x32xf32>
    tpu.vector_store %arg20[%1017, %c0_340, %c8_341], %1020 {strides = array<i32>} : memref<8x8x40xf32, #tpu.memory_space<vmem>>, vector<1x8x32xf32>,
    %c8_i32 = arith.constant 8 : i32
    %c0_342 = arith.constant 0 : index
    %c0_343 = arith.constant 0 : index
    %1021 = vector.load %arg22[%c0_342, %c0_343] : memref<8x32xf32, #tpu.memory_space<vmem>>, vector<8x32xf32>
    tpu.vector_store %arg22[%c0_342, %c0_343], %926 {strides = array<i32>} : memref<8x32xf32, #tpu.memory_space<vmem>>, vector<8x32xf32>,
    %c0_344 = arith.constant 0 : index
    %c0_345 = arith.constant 0 : index
    %1022 = vector.load %arg23[%c0_344, %c0_345] : memref<8x32xf32, #tpu.memory_space<vmem>>, vector<8x32xf32>
    tpu.vector_store %arg23[%c0_344, %c0_345], %930 {strides = array<i32>} : memref<8x32xf32, #tpu.memory_space<vmem>>, vector<8x32xf32>,
    %c0_346 = arith.constant 0 : index
    %c0_347 = arith.constant 0 : index
    %1023 = vector.load %arg24[%c0_346, %c0_347] : memref<8x32xf32, #tpu.memory_space<vmem>>, vector<8x32xf32>
    tpu.vector_store %arg24[%c0_346, %c0_347], %958 {strides = array<i32>} : memref<8x32xf32, #tpu.memory_space<vmem>>, vector<8x32xf32>,
    %c0_348 = arith.constant 0 : index
    %c0_349 = arith.constant 0 : index
    %1024 = vector.load %arg25[%c0_348, %c0_349] : memref<8x32xf32, #tpu.memory_space<vmem>>, vector<8x32xf32>
    tpu.vector_store %arg25[%c0_348, %c0_349], %962 {strides = array<i32>} : memref<8x32xf32, #tpu.memory_space<vmem>>, vector<8x32xf32>,
    %c0_350 = arith.constant 0 : index
    %c0_351 = arith.constant 0 : index
    %1025 = vector.load %arg26[%c0_350, %c0_351] : memref<8x32xf32, #tpu.memory_space<vmem>>, vector<8x32xf32>
    tpu.vector_store %arg26[%c0_350, %c0_351], %990 {strides = array<i32>} : memref<8x32xf32, #tpu.memory_space<vmem>>, vector<8x32xf32>,
    %c0_352 = arith.constant 0 : index
    %c0_353 = arith.constant 0 : index
    %1026 = vector.load %arg27[%c0_352, %c0_353] : memref<8x32xf32, #tpu.memory_space<vmem>>, vector<8x32xf32>
    tpu.vector_store %arg27[%c0_352, %c0_353], %994 {strides = array<i32>} : memref<8x32xf32, #tpu.memory_space<vmem>>, vector<8x32xf32>,
    %c0_354 = arith.constant 0 : index
    %c0_355 = arith.constant 0 : index
    %1027 = vector.load %arg28[%c0_354, %c0_355] : memref<8x32xf32, #tpu.memory_space<vmem>>, vector<8x32xf32>
    tpu.vector_store %arg28[%c0_354, %c0_355], %1003 {strides = array<i32>} : memref<8x32xf32, #tpu.memory_space<vmem>>, vector<8x32xf32>,
    %c0_356 = arith.constant 0 : index
    %c0_357 = arith.constant 0 : index
    %1028 = vector.load %arg29[%c0_356, %c0_357] : memref<8x4xf32, #tpu.memory_space<vmem>>, vector<8x4xf32>
    tpu.vector_store %arg29[%c0_356, %c0_357], %1008 {strides = array<i32>} : memref<8x4xf32, #tpu.memory_space<vmem>>, vector<8x4xf32>,
    %c0_358 = arith.constant 0 : index
    %c0_359 = arith.constant 0 : index
    %1029 = vector.load %arg30[%c0_358, %c0_359] : memref<8x32xf32, #tpu.memory_space<vmem>>, vector<8x32xf32>
    tpu.vector_store %arg30[%c0_358, %c0_359], %998 {strides = array<i32>} : memref<8x32xf32, #tpu.memory_space<vmem>>, vector<8x32xf32>,
    %c0_i32_360 = arith.constant 0 : i32
    %1030 = arith.cmpi eq, %arg0, %c0_i32_360 : i32
    %1031 = arith.extui %1030 : i1 to i32
    %c0_i32_361 = arith.constant 0 : i32
    %1032 = arith.cmpi ne, %1031, %c0_i32_361 : i32
    scf.if %1032 {
      %1033 = vector.extract_strided_slice %998 {offsets = [0, 0], sizes = [2, 32], strides = [1, 1]} : vector<8x32xf32> to vector<2x32xf32>
      %1034 = vector.shape_cast %1033 : vector<2x32xf32> to vector<1x2x32xf32>
      %cst_362 = arith.constant dense<0.000000e+00> : vector<1xf32>
      %1035 = vector.multi_reduction <add>, %1034, %cst_362 [1, 2] : vector<1x2x32xf32> to vector<1xf32>
      %1036 = vector.shape_cast %1035 : vector<1xf32> to vector<1x1x1xf32>
      %1037 = vector.extract %1036[0, 0, 0] : f32 from vector<1x1x1xf32>
      %1038 = vector.broadcast %1037 : f32 to vector<1x1xf32>
      %cst_363 = arith.constant 0.001953125 : f32
      %1039 = vector.broadcast %cst_363 : f32 to vector<1x1xf32>
      %1040 = arith.mulf %1038, %1039 : vector<1x1xf32>
      %c0_364 = arith.constant 0 : index
      %c0_365 = arith.constant 0 : index
      %1041 = vector.load %arg21[%c0_364, %c0_365] : memref<1x1xf32, #tpu.memory_space<vmem>>, vector<1x1xf32>
      tpu.vector_store %arg21[%c0_364, %c0_365], %1040 {strides = array<i32>} : memref<1x1xf32, #tpu.memory_space<vmem>>, vector<1x1xf32>,
    } else {
    }
    return
  }
  func.func @transform_0(%arg0: i32) -> (i32, i32, i32) {
    %c0_i32 = arith.constant 0 : i32
    %c0_i32_0 = arith.constant 0 : i32
    %c0_i32_1 = arith.constant 0 : i32
    return %arg0, %c0_i32, %c0_i32_0 : i32, i32, i32
  }
  func.func @transform_1(%arg0: i32) -> (i32, i32) {
    %c0_i32 = arith.constant 0 : i32
    %c0_i32_0 = arith.constant 0 : i32
    %c0_i32_1 = arith.constant 0 : i32
    return %c0_i32, %c0_i32_0 : i32, i32
  }
  func.func @transform_2(%arg0: i32) -> (i32, i32) {
    %c0_i32 = arith.constant 0 : i32
    %c0_i32_0 = arith.constant 0 : i32
    %c0_i32_1 = arith.constant 0 : i32
    return %c0_i32, %c0_i32_0 : i32, i32
  }
  func.func @transform_3(%arg0: i32) -> (i32, i32) {
    %c0_i32 = arith.constant 0 : i32
    %c0_i32_0 = arith.constant 0 : i32
    %c0_i32_1 = arith.constant 0 : i32
    return %c0_i32, %c0_i32_0 : i32, i32
  }
  func.func @transform_4(%arg0: i32) -> (i32, i32) {
    %c0_i32 = arith.constant 0 : i32
    %c0_i32_0 = arith.constant 0 : i32
    %c0_i32_1 = arith.constant 0 : i32
    return %c0_i32, %c0_i32_0 : i32, i32
  }
  func.func @transform_5(%arg0: i32) -> (i32, i32) {
    %c0_i32 = arith.constant 0 : i32
    %c0_i32_0 = arith.constant 0 : i32
    %c0_i32_1 = arith.constant 0 : i32
    return %c0_i32, %c0_i32_0 : i32, i32
  }
  func.func @transform_6(%arg0: i32) -> (i32, i32) {
    %c0_i32 = arith.constant 0 : i32
    %c0_i32_0 = arith.constant 0 : i32
    %c0_i32_1 = arith.constant 0 : i32
    return %c0_i32, %c0_i32_0 : i32, i32
  }
  func.func @transform_7(%arg0: i32) -> (i32, i32) {
    %c0_i32 = arith.constant 0 : i32
    %c0_i32_0 = arith.constant 0 : i32
    %c0_i32_1 = arith.constant 0 : i32
    return %c0_i32, %c0_i32_0 : i32, i32
  }
  func.func @transform_8(%arg0: i32) -> (i32, i32) {
    %c0_i32 = arith.constant 0 : i32
    %c0_i32_0 = arith.constant 0 : i32
    %c0_i32_1 = arith.constant 0 : i32
    return %c0_i32, %c0_i32_0 : i32, i32
  }
  func.func @transform_9(%arg0: i32) -> (i32, i32) {
    %c0_i32 = arith.constant 0 : i32
    %c0_i32_0 = arith.constant 0 : i32
    %c0_i32_1 = arith.constant 0 : i32
    return %c0_i32, %c0_i32_0 : i32, i32
  }
  func.func @transform_10(%arg0: i32) -> (i32, i32) {
    %c0_i32 = arith.constant 0 : i32
    %c0_i32_0 = arith.constant 0 : i32
    %c0_i32_1 = arith.constant 0 : i32
    return %c0_i32, %c0_i32_0 : i32, i32
  }
  func.func @transform_11(%arg0: i32) -> (i32, i32) {
    %c0_i32 = arith.constant 0 : i32
    %c0_i32_0 = arith.constant 0 : i32
    %c0_i32_1 = arith.constant 0 : i32
    return %c0_i32, %c0_i32_0 : i32, i32
  }
  func.func @transform_12(%arg0: i32) -> (i32, i32) {
    %c0_i32 = arith.constant 0 : i32
    %c0_i32_0 = arith.constant 0 : i32
    %c0_i32_1 = arith.constant 0 : i32
    return %c0_i32, %c0_i32_0 : i32, i32
  }
  func.func @transform_13(%arg0: i32) -> (i32, i32) {
    %c0_i32 = arith.constant 0 : i32
    %c0_i32_0 = arith.constant 0 : i32
    %c0_i32_1 = arith.constant 0 : i32
    return %c0_i32, %c0_i32_0 : i32, i32
  }
  func.func @transform_14(%arg0: i32) -> (i32, i32) {
    %c0_i32 = arith.constant 0 : i32
    %c0_i32_0 = arith.constant 0 : i32
    %c0_i32_1 = arith.constant 0 : i32
    return %c0_i32, %c0_i32_0 : i32, i32
  }
  func.func @transform_15(%arg0: i32) -> (i32, i32) {
    %c0_i32 = arith.constant 0 : i32
    %c0_i32_0 = arith.constant 0 : i32
    %c0_i32_1 = arith.constant 0 : i32
    return %c0_i32, %c0_i32_0 : i32, i32
  }
  func.func @transform_16(%arg0: i32) -> (i32, i32) {
    %c0_i32 = arith.constant 0 : i32
    %c0_i32_0 = arith.constant 0 : i32
    %c0_i32_1 = arith.constant 0 : i32
    return %c0_i32, %c0_i32_0 : i32, i32
  }
  func.func @transform_17(%arg0: i32) -> (i32, i32) {
    %c0_i32 = arith.constant 0 : i32
    %c0_i32_0 = arith.constant 0 : i32
    %c0_i32_1 = arith.constant 0 : i32
    return %c0_i32, %c0_i32_0 : i32, i32
  }
  func.func @transform_18(%arg0: i32) -> (i32, i32) {
    %c0_i32 = arith.constant 0 : i32
    %c0_i32_0 = arith.constant 0 : i32
    %c0_i32_1 = arith.constant 0 : i32
    return %c0_i32, %c0_i32_0 : i32, i32
  }
  func.func @transform_19(%arg0: i32) -> (i32, i32, i32) {
    %c0_i32 = arith.constant 0 : i32
    %c0_i32_0 = arith.constant 0 : i32
    %c0_i32_1 = arith.constant 0 : i32
    return %arg0, %c0_i32, %c0_i32_0 : i32, i32, i32
  }
  func.func @transform_20(%arg0: i32) -> (i32, i32) {
    %c0_i32 = arith.constant 0 : i32
    %c0_i32_0 = arith.constant 0 : i32
    %c0_i32_1 = arith.constant 0 : i32
    return %c0_i32, %c0_i32_0 : i32, i32
  }
}

</mosaic_0001>

<bundles_post_ra>
// kernel: slstm_forward.1
= control target key start
LH: loop header
LB: loop body
LE: loop exit
PB: predicated region body
PF: predicated region fallthrough
CT: control target
= control target key end

     0   :  { %s5174_s0 = inlined_call_operand.vmem [shape: f32[8,8,1], index: 0, kind: input, shape index: {}]   ;;  %s5175_s1 = inlined_call_operand.vmem [shape: f32[1,128], index: 1, kind: input, shape index: {}]   ;;  %s5176_s2 = inlined_call_operand.vmem [shape: f32[32,128], index: 2, kind: input, shape index: {}]   ;;  %s5177_s3 = inlined_call_operand.vmem [shape: f32[1,128], index: 3, kind: input, shape index: {}]   ;;  %s5178_s4 = inlined_call_operand.vmem [shape: f32[1,32], index: 4, kind: input, shape index: {}]   ;;  %s5179_s5 = inlined_call_operand.vmem [shape: f32[32,128], index: 5, kind: input, shape index: {}]   ;;  %s5180_s6 = inlined_call_operand.vmem [shape: f32[32,128], index: 6, kind: input, shape index: {}]   ;;  %s5181_s7 = inlined_call_operand.vmem [shape: f32[1,128], index: 7, kind: input, shape index: {}]   ;;  %s5182_s8 = inlined_call_operand.vmem [shape: f32[1,32], index: 8, kind: input, shape index: {}]   ;;  %s5183_s9 = inlined_call_operand.vmem [shape: f32[32,128], index: 9, kind: input, shape index: {}]   ;;  %s5184_s10 = inlined_call_operand.vmem [shape: f32[32,128], index: 10, kind: input, shape index: {}]   ;;  %s5185_s11 = inlined_call_operand.vmem [shape: f32[1,128], index: 11, kind: input, shape index: {}]   ;;  %s5186_s12 = inlined_call_operand.vmem [shape: f32[1,32], index: 12, kind: input, shape index: {}]   ;;  %s5187_s13 = inlined_call_operand.vmem [shape: f32[32,32], index: 13, kind: input, shape index: {}]   ;;  %s5188_s14 = inlined_call_operand.vmem [shape: f32[1,32], index: 14, kind: input, shape index: {}]   ;;  %s5189_s15 = inlined_call_operand.vmem [shape: f32[1,32], index: 15, kind: input, shape index: {}]   ;;  %s5190_s16 = inlined_call_operand.vmem [shape: f32[32,4], index: 16, kind: input, shape index: {}]   ;;  %s5191_s17 = inlined_call_operand.vmem [shape: f32[1,4], index: 17, kind: input, shape index: {}]   ;;  %s5192_s18 = inlined_call_operand.vmem [shape: f32[1,4], index: 18, kind: input, shape index: {}]   ;;  %s5193_s19 = inlined_call_operand.vmem [shape: f32[8,8,40], index: 19, kind: output, shape index: {0}]   ;;  %s5194_s20 = inlined_call_operand.hbm [shape: f32[1,1], index: 20, kind: output, shape index: {1}]  }
   0x1   :  { %5199 = sst [smem:[#allocation14_spill]] %s5174_s0 }
   0x2   :  { %5200 = sst [smem:[#allocation15_spill]] %s5175_s1 }
   0x3   :  { %5201 = sst [smem:[#allocation16_spill]] %s5176_s2 }
   0x4   :  { %5202 = sst [smem:[#allocation17_spill]] %s5177_s3 }
   0x5   :  { %5203 = sst [smem:[#allocation18_spill]] %s5178_s4 }
   0x6   :  { %s5204_s23 = sld [smem:[#allocation16_spill]]  ;;  %vm69_vm0 = vcmask 261120   ;;  %v3471_v2 = vmov 0.0   ;;  %v3472_v3 = vmov 0  }
   0x7   :  { %71 = vst.msk [vmem:[#allocation3] sm:$0xff] %vm69_vm0, %v3471_v2  ;;  %3253 = vset.pattern.permute.xlu0 %v3472_v3  ;;  %s5205_s28 = sld [smem:[#allocation14_spill]]  ;;  %3254 = vset.pattern.permute.xlu1 %v3472_v3 }
   0x8   :  { %70 = vst.msk [vmem:[#allocation2] sm:$0xff] %vm69_vm0, %v3471_v2 }
   0x9   :  { %72 = vst.msk [vmem:[#allocation4] sm:$0xff] %vm69_vm0, %v3471_v2 }
   0xa   :  { %73 = vst.msk [vmem:[#allocation5] sm:$0xff] %vm69_vm0, %v3471_v2 }
   0xb   :  { %74 = vst.msk [vmem:[#allocation6] sm:$0xff] %vm69_vm0, %v3471_v2 }
   0xc   :  { %v3587_v0 = vld [vmem:[%s5204_s23 + $0x18] sm:$0xff]  ;;  %v3592_v1 = vld [vmem:[%s5204_s23 + $0x10] sm:$0xff]  ;;  %v3600_v4 = vld [vmem:[%s5204_s23 + $0x8] sm:$0xff]  ;;  %75 = vst.msk [vmem:[#allocation7] sm:$0xff] %vm69_vm0, %v3471_v2 }
   0xd   :  { %160 = vmatpush.msra.mxu0 %v3587_v0  ;;  %v133_v5 = vld [vmem:[%s5205_s28] sm:$0xff]  ;;  %76 = vst.msk [vmem:[#allocation8] sm:$0xff] %vm69_vm0, %v3471_v2 }
   0xe   :  { %136 = vperm.xlu0 %3253, %v133_v5   ;;  %v3613_v6 = vld [vmem:[%s5204_s23] sm:$0xff] }
   0xf   :  { %161 = vmatpush.msra.mxu0 %v3592_v1 }
  0x11   :  { %162 = vmatpush.msra.mxu0 %v3600_v4 }
  0x13   :  { %163 = vmatpush.msra.mxu0 %v3613_v6 }
  0x14   :  { %26 = vsyncpa [#allocation12], 0  ;;  %v125_v7 = vld [vmem:[#allocation3] sm:$0xff]  ;;  %79 = vst.msk [vmem:[#allocation10] sm:$0xff] %vm69_vm0, %v3471_v2  ;;  %v124_v8 = vld [vmem:[#allocation2] sm:$0xff]  ;;  %s3473_s30 = smov 32  }
  0x15   :  { %3084 = vmatmul.msk.f32.vlgmr.msra.gmra.mxu0 %vm69_vm0, %v125_v7  ;;  %195 = vrot.lane.b32.xlu1 %v124_v8, %s3473_s30  ;;  %s5206_s1 = sld [smem:[#allocation15_spill]]  ;;  %s3474_s25 = smov 64   ;;  %v126_v34 = vld [vmem:[#allocation4] sm:$0xff]  ;;  %v3657_v42 = vld [vmem:[%s5182_s8] ss:$0 sm:$0xff]  ;;  %v127_v43 = vld [vmem:[#allocation5] sm:$0xff] }
  0x16   :  { %s5207_s2 = sld [smem:[#allocation17_spill]]  ;;  %s3475_s4 = smov 96   ;;  %vm305_vm6 = vcmp.gt.f32.partialorder %v127_v43, %v3657_v42  ;;  %v3666_v46 = vld [vmem:[%s5184_s10 + $0x18] sm:$0xff]  ;;  %v3671_v47 = vld [vmem:[%s5184_s10 + $0x10] sm:$0xff]  ;;  %v3677_v48 = vld [vmem:[%s5184_s10 + $0x8] sm:$0xff] }
  0x17   :  { %s5208_s27 = sld [smem:[#allocation18_spill]]  ;;  %v3093_v44 = vsel %vm305_vm6, 1.0, %v3471_v2  ;;  %364 = vmatpush.msra.mxu3 %v3666_v46  ;;  %v3683_v49 = vld [vmem:[%s5184_s10] sm:$0xff]  ;;  %v3700_v56 = vld [vmem:[#allocation7] sm:$0xff]  ;;  %v3705_v57 = vld [vmem:[%s5179_s5 + $0x18] sm:$0xff]  ;;  %s3477_s3 = smov 40  }
  0x18   :  { %v329_v45 = vmul.f32 %v3657_v42, %v3093_v44  ;;  %275 = vmatpush.msra.mxu2 %v3705_v57  ;;  %v3713_v58 = vld [vmem:[%s5179_s5 + $0x10] sm:$0xff]  ;;  %v3718_v59 = vld [vmem:[%s5179_s5 + $0x8] sm:$0xff]  ;;  %v3725_v60 = vld [vmem:[%s5180_s6 + $0x18] sm:$0xff] }
  0x19   :  { %365 = vmatpush.msra.mxu3 %v3671_v47  ;;  %v3730_v61 = vld [vmem:[%s5179_s5] sm:$0xff]  ;;  %250 = vmatpush.msra.mxu1 %v3725_v60  ;;  %v3737_v62 = vld [vmem:[%s5180_s6 + $0x10] sm:$0xff]  ;;  %v3742_v63 = vld [vmem:[%s5180_s6 + $0x8] sm:$0xff] }
  0x1a   :  { %276 = vmatpush.msra.mxu2 %v3713_v58  ;;  %v3748_v3 = vld [vmem:[%s5180_s6] sm:$0xff] }
  0x1b   :  { %v3632_v9 = vld [vmem:[%s5206_s1] ss:$0 sm:$0xff]  ;;  %366 = vmatpush.msra.mxu3 %v3677_v48  ;;  %251 = vmatpush.msra.mxu1 %v3737_v62 }
  0x1c   :  { %v3638_v12 = vld [vmem:[%s5207_s2] ss:$0 sm:$0xff]  ;;  %277 = vmatpush.msra.mxu2 %v3718_v59 }
  0x1d   :  { %v3275_v31 = vld [vmem:[%s5208_s27] ss:$0 sm:$0xff]  ;;  %367 = vmatpush.msra.mxu3 %v3683_v49  ;;  %252 = vmatpush.msra.mxu1 %v3742_v63 }
  0x1e   :  { %vm191_vm5 = vcmp.gt.f32.partialorder %v125_v7, %v3275_v31  ;;  %3095 = vmatmul.msk.f32.vlgmr.msra.gmra.mxu3 %vm69_vm0, %v3700_v56  ;;  %278 = vmatpush.msra.mxu2 %v3730_v61 }
  0x1f   :  { %v3087_v40 = vsel %vm191_vm5, 1.0, %v3471_v2  ;;  %560 = vmatpush.msrb.mxu3 %v3587_v0  ;;  %253 = vmatpush.msra.mxu1 %v3748_v3 }
  0x20   :  { %v215_v41 = vmul.f32 %v3275_v31, %v3087_v40  ;;  %3089 = vmatmul.msk.f32.vlgmr.msra.gmra.mxu1 %vm69_vm0, %v127_v43 }
  0x21   :  { %561 = vmatpush.msrb.mxu3 %v3592_v1 }
  0x23   :  { %562 = vmatpush.msrb.mxu3 %v3600_v4 }
  0x25   :  { %563 = vmatpush.msrb.mxu3 %v3613_v6 }
  0x80   :  { %v137_v10 = vpop.permute.xlu0 %136 }
  0x81   :  { %v139_v11 = vmul.f32 %v3632_v9, %v137_v10 }
  0x87   :  { %v196_v35 = vpop.permute.xlu1 %195 }
  0x92   :  { %v165_v13 = vpop.f32.mrf.mxu0 }
  0x93   :  { %v168_v14 = vadd.f32 %v165_v13, %v139_v11  ;;  %v3760_v13 = vld [vmem:[%s5181_s7] ss:$0 sm:$0xff] }
  0x95   :  { %v169_v15 = vadd.f32 %v3638_v12, %v168_v14 }
  0x97   :  { %v3085_v16 = vmul.f32 -1.442695, %v169_v15 }
  0x99   :  { %3286 = vpow2.f32 %v3085_v16 }
  0x9d   :  { %v255_v11 = vpop.f32.mrf.mxu1 }
  0x9f   :  { %v3287_v17 = vpop.eup %3286 }
  0xa0   :  { %v173_v18 = vadd.f32 1.0, %v3287_v17 }
  0xa2   :  { %3288 = vrcp.f32 %v173_v18  ;;  %v185_v22 = vand.u32 2147483648, %v173_v18  ;;  %v183_v24 = vand.u32 2147483647, %v173_v18  ;;  %vm179_vm2 = vweird.f32 %v173_v18 }
  0xa4   :  { %v186_v26 = vor.u32 1.1754944e-38, %v185_v22  ;;  %vm184_vm4 = vcmp.eq.f32.partialorder %v183_v24, 8.507059e+37 }
  0xa8   :  { %v3289_v19 = vpop.eup %3288 }
  0xa9   :  { %v175_v20 = vmul.f32 %v3289_v19, %v173_v18  ;;  %vm180_vm1 = vweird.f32 %v3289_v19 }
  0xaa   :  { %vm181_vm3 = vmor %vm179_vm2, %vm180_vm1 }
  0xab   :  { %v176_v21 = vsub.f32 1.0, %v175_v20 }
  0xad   :  { %v177_v23 = vmul.f32 %v3289_v19, %v176_v21 }
  0xaf   :  { %v178_v25 = vadd.f32 %v3289_v19, %v177_v23 }
  0xb1   :  { %v182_v27 = vsel %vm181_vm3, %v3289_v19, %v178_v25 }
  0xb2   :  { %v187_v28 = vsel %vm184_vm4, %v186_v26, %v182_v27 }
  0xb3   :  { %v189_v29 = vmul.f32 2.0, %v187_v28  ;;  %v198_v36 = vmul.f32 %v196_v35, %v187_v28 }
  0xb5   :  { %v3086_v30 = vadd.f32 -1.0, %v189_v29 }
  0xb7   :  { %200 = vrot.lane.b32.xlu0 %v3086_v30, %s3474_s25 }
  0xbf   :  { %221 = vrot.lane.b32.xlu0 %v3275_v31, %s3475_s4 }
  0xc7   :  { %309 = vrot.lane.b32.xlu0 %v126_v34, %s3473_s30  ;;  %v3103_v34 = vld [vmem:[%s5205_s28 + $0x8] sm:$0xff] }
  0xcf   :  { %331 = vrot.lane.b32.xlu0 %v329_v45, %s3475_s4 }
 0x129   :  { %v201_v32 = vpop.permute.xlu0 %200 }
 0x12a   :  { %v203_v33 = vmul.f32 %v201_v32, %v187_v28 }
 0x12c   :  { %205 = vrot.lane.b32.xlu1 %v203_v33, %s3473_s30 }
 0x131   :  { %v3691_v53 = vpop.permute.xlu0 %221 }
 0x139   :  { %v310_v5 = vpop.permute.xlu0 %309 }
 0x141   :  { %v3753_v7 = vpop.permute.xlu0 %331 }
 0x19e   :  { %v206_v37 = vpop.permute.xlu1 %205 }
 0x19f   :  { %v3648_v38 = vadd.f32 %v206_v37, %v198_v36 }
 0x1a1   :  { %3290 = vtanh.f32 %v3648_v38 }
 0x1a7   :  { %v3291_v39 = vpop.eup %3290 }
 0x1a8   :  { %211 = vrot.lane.b32.xlu2 %v3291_v39, %s3474_s25  ;;  %v3773_v39 = vpop.f32.mrf.mxu3 }
 0x1b0   :  { %217 = vrot.lane.b32.xlu2 %v215_v41, %s3475_s4 }
 0x202   :  { %v212_v50 = vpop.permute.xlu2 %211 }
 0x203   :  { %v214_v51 = vmul.f32 %v212_v50, %v187_v28 }
 0x20a   :  { %v218_v52 = vpop.permute.xlu2 %217 }
 0x20b   :  { %v220_v54 = vsub.f32 %v214_v51, %v218_v52 }
 0x20d   :  { %544 = vrot.lane.b32.xlu0 %v220_v54, %s3473_s30  ;;  %vm224_vm7 = vcmp.gt.f32.partialorder %v220_v54, %v3691_v53 }
 0x20e   :  { %v3696_v55 = vsel %vm224_vm7, 1.0, %v3471_v2 }
 0x20f   :  { %259 = vrot.lane.b32.xlu1 %v3696_v55, %s3473_s30 }
 0x27f   :  { %v545_v8 = vpop.permute.xlu0 %544 }
 0x280   :  { %3104 = vmatmul.msk.f32.vlgmr.msrb.gmra.mxu3 %vm69_vm0, %v545_v8 }
 0x281   :  { %v260_v10 = vpop.permute.xlu1 %259 }
 0x282   :  { %3090 = vmatmul.msk.f32.vlgmr.msra.gmra.mxu2 %vm69_vm0, %v260_v10 }
 0x303   :  { %v565_v44 = vpop.f32.mrf.mxu3 }
 0x305   :  { %v280_v14 = vpop.f32.mrf.mxu2 }
 0x306   :  { %v281_v15 = vadd.f32 %v280_v14, %v255_v11 }
 0x308   :  { %v283_v16 = vadd.f32 %v3760_v13, %v281_v15 }
 0x30a   :  { %v3091_v17 = vmul.f32 -1.442695, %v283_v16 }
 0x30c   :  { %3292 = vpow2.f32 %v3091_v17 }
 0x312   :  { %v3293_v18 = vpop.eup %3292 }
 0x313   :  { %v287_v19 = vadd.f32 1.0, %v3293_v18 }
 0x315   :  { %3294 = vrcp.f32 %v287_v19  ;;  %v299_v23 = vand.u32 2147483648, %v287_v19  ;;  %v297_v25 = vand.u32 2147483647, %v287_v19  ;;  %vm293_vm9 = vweird.f32 %v287_v19 }
 0x317   :  { %v300_v27 = vor.u32 1.1754944e-38, %v299_v23  ;;  %vm298_vm11 = vcmp.eq.f32.partialorder %v297_v25, 8.507059e+37 }
 0x31b   :  { %v3295_v20 = vpop.eup %3294 }
 0x31c   :  { %v289_v21 = vmul.f32 %v3295_v20, %v287_v19  ;;  %vm294_vm8 = vweird.f32 %v3295_v20 }
 0x31d   :  { %vm295_vm10 = vmor %vm293_vm9, %vm294_vm8  ;;  %vm77_vm8 = vcmask 31744  }
 0x31e   :  { %v290_v22 = vsub.f32 1.0, %v289_v21  ;;  %78 = vst.msk [vmem:[#allocation9] sm:$0xff] %vm77_vm8, %v3471_v2 }
 0x320   :  { %v291_v24 = vmul.f32 %v3295_v20, %v290_v22 }
 0x322   :  { %v292_v26 = vadd.f32 %v3295_v20, %v291_v24 }
 0x324   :  { %v296_v28 = vsel %vm295_vm10, %v3295_v20, %v292_v26  ;;  %v3797_v26 = vld [vmem:[%s5183_s9 + $0x18] sm:$0xff] }
 0x325   :  { %v301_v29 = vsel %vm298_vm11, %v300_v27, %v296_v28  ;;  %v3802_v27 = vld [vmem:[%s5183_s9 + $0x10] sm:$0xff]  ;;  %389 = vmatpush.msrb.mxu0 %v3797_v26  ;;  %760 = vmatpush.msra.mxu3 %v3797_v26  ;;  %v3816_v28 = vld [vmem:[%s5183_s9] sm:$0xff] }
 0x326   :  { %v303_v30 = vmul.f32 2.0, %v301_v29  ;;  %v312_v35 = vmul.f32 %v310_v5, %v301_v29 }
 0x327   :  { %390 = vmatpush.msrb.mxu0 %v3802_v27  ;;  %761 = vmatpush.msra.mxu3 %v3802_v27 }
 0x328   :  { %v3092_v31 = vadd.f32 -1.0, %v303_v30 }
 0x32a   :  { %314 = vrot.lane.b32.xlu2 %v3092_v31, %s3474_s25 }
 0x384   :  { %v315_v32 = vpop.permute.xlu2 %314 }
 0x385   :  { %v317_v33 = vmul.f32 %v315_v32, %v301_v29 }
 0x387   :  { %319 = vrot.lane.b32.xlu1 %v317_v33, %s3473_s30  ;;  %v3846_v33 = vld [vmem:[%s5185_s11] ss:$0 sm:$0xff] }
 0x38f   :  { %335 = vrot.lane.b32.xlu1 %v3657_v42, %s3475_s4 }
 0x397   :  { %535 = vperm.xlu1 %3254, %v3103_v34  }
 0x3f9   :  { %v320_v36 = vpop.permute.xlu1 %319 }
 0x3fa   :  { %v3770_v37 = vadd.f32 %v320_v36, %v312_v35 }
 0x3fc   :  { %3296 = vtanh.f32 %v3770_v37 }
 0x401   :  { %v3775_v40 = vpop.permute.xlu1 %335 }
 0x402   :  { %v3297_v41 = vpop.eup %3296 }
 0x403   :  { %325 = vrot.lane.b32.xlu2 %v3297_v41, %s3474_s25 }
 0x409   :  { %v536_v43 = vpop.permute.xlu1 %535 }
 0x40a   :  { %v538_v42 = vmul.f32 %v3632_v9, %v536_v43 }
 0x40c   :  { %v568_v45 = vadd.f32 %v565_v44, %v538_v42 }
 0x40e   :  { %v569_v50 = vadd.f32 %v3638_v12, %v568_v45 }
 0x410   :  { %v3105_v51 = vmul.f32 -1.442695, %v569_v50 }
 0x412   :  { %3298 = vpow2.f32 %v3105_v51 }
 0x418   :  { %v3299_v52 = vpop.eup %3298 }
 0x419   :  { %v573_v54 = vadd.f32 1.0, %v3299_v52 }
 0x41b   :  { %3300 = vrcp.f32 %v573_v54  ;;  %v585_v11 = vand.u32 2147483648, %v573_v54  ;;  %v583_v15 = vand.u32 2147483647, %v573_v54  ;;  %vm579_vm13 = vweird.f32 %v573_v54 }
 0x41d   :  { %v586_v17 = vor.u32 1.1754944e-38, %v585_v11  ;;  %vm584_vm15 = vcmp.eq.f32.partialorder %v583_v15, 8.507059e+37  ;;  %v608_v15 = vmul.f32 %v3696_v55, %v3691_v53 }
 0x421   :  { %v3301_v5 = vpop.eup %3300 }
 0x422   :  { %v575_v8 = vmul.f32 %v3301_v5, %v573_v54  ;;  %vm580_vm12 = vweird.f32 %v3301_v5 }
 0x423   :  { %vm581_vm14 = vmor %vm579_vm13, %vm580_vm12 }
 0x424   :  { %v576_v10 = vsub.f32 1.0, %v575_v8 }
 0x426   :  { %v577_v14 = vmul.f32 %v3301_v5, %v576_v10 }
 0x428   :  { %v578_v16 = vadd.f32 %v3301_v5, %v577_v14 }
 0x42a   :  { %v582_v18 = vsel %vm581_vm14, %v3301_v5, %v578_v16 }
 0x42b   :  { %v3780_v19 = vsel %vm584_vm15, %v586_v17, %v582_v18 }
 0x42c   :  { %v589_v20 = vmul.f32 2.0, %v3780_v19 }
 0x42e   :  { %v3106_v21 = vadd.f32 -1.0, %v589_v20  ;;  %v3866_v20 = vld [vmem:[%s5186_s12] ss:$0 sm:$0xff]  ;;  %s3478_s12 = smov [#allocation11]  }
 0x42f   :  { %vm419_vm7 = vcmp.gt.f32.partialorder %v3700_v56, %v3866_v20 }
 0x430   :  { %593 = vrot.lane.b32.xlu0 %v3106_v21, %s3474_s25 }
 0x45d   :  { %v326_v22 = vpop.permute.xlu2 %325 }
 0x45e   :  { %v328_v23 = vmul.f32 %v326_v22, %v301_v29  ;;  %v128_v29 = vld [vmem:[#allocation6] sm:$0xff] }
 0x45f   :  { %423 = vrot.lane.b32.xlu1 %v128_v29, %s3473_s30 }
 0x460   :  { %v3785_v24 = vsub.f32 %v328_v23, %v3753_v7  ;;  %v3809_v7 = vld [vmem:[%s5183_s9 + $0x8] sm:$0xff] }
 0x461   :  { %391 = vmatpush.msrb.mxu0 %v3809_v7  ;;  %762 = vmatpush.msra.mxu3 %v3809_v7 }
 0x462   :  { %vm338_vm1 = vcmp.gt.f32.partialorder %v3785_v24, %v3775_v40 }
 0x463   :  { %v3790_v25 = vsel %vm338_vm1, 1.0, %v3471_v2  ;;  %392 = vmatpush.msrb.mxu0 %v3816_v28  ;;  %763 = vmatpush.msra.mxu3 %v3816_v28 }
 0x464   :  { %373 = vrot.lane.b32.xlu2 %v3790_v25, %s3473_s30 }
 0x465   :  { %638 = vmatpush.msra.mxu0 %v3725_v60  ;;  %993 = vmatpush.msrb.mxu3 %v3725_v60 }
 0x467   :  { %639 = vmatpush.msra.mxu0 %v3737_v62  ;;  %994 = vmatpush.msrb.mxu3 %v3737_v62  ;;  %v591_v62 = vmul.f32 %v3780_v19, %v3648_v38 }
 0x469   :  { %640 = vmatpush.msra.mxu0 %v3742_v63  ;;  %995 = vmatpush.msrb.mxu3 %v3742_v63 }
 0x46b   :  { %641 = vmatpush.msra.mxu0 %v3748_v3  ;;  %996 = vmatpush.msrb.mxu3 %v3748_v3 }
 0x4a2   :  { %v594_v30 = vpop.permute.xlu0 %593 }
 0x4a3   :  { %v596_v31 = vmul.f32 %v594_v30, %v3780_v19 }
 0x4a5   :  { %598 = vrot.lane.b32.xlu0 %v596_v31, %s3473_s30 }
 0x4be   :  { %v3833_v60 = vpop.permute.xlu2 %373 }
 0x4bf   :  { %3096 = vmatmul.msk.f32.vlgmr.msrb.gmra.mxu0 %vm69_vm0, %v3833_v60 }
 0x4d1   :  { %v424_v23 = vpop.permute.xlu1 %423 }
 0x517   :  { %v599_v63 = vpop.permute.xlu0 %598 }
 0x518   :  { %v3839_v32 = vadd.f32 %v599_v63, %v591_v62 }
 0x51a   :  { %3302 = vtanh.f32 %v3839_v32 }
 0x520   :  { %v3303_v3 = vpop.eup %3302 }
 0x521   :  { %604 = vrot.lane.b32.xlu0 %v3303_v3, %s3474_s25  ;;  %v3884_v3 = vld [vmem:[%s5187_s13 + $0x18] sm:$0xff] }
 0x522   :  { %478 = vmatpush.msrb.mxu1 %v3884_v3  ;;  %835 = vmatpush.msrb.mxu0 %v3884_v3 }
 0x53c   :  { %v394_v34 = vpop.f32.mrf.mxu0 }
 0x53d   :  { %v395_v35 = vadd.f32 %v394_v34, %v3773_v39  ;;  %v3896_v34 = vld [vmem:[%s5187_s13 + $0x8] sm:$0xff] }
 0x53f   :  { %v397_v36 = vadd.f32 %v3846_v33, %v395_v35  ;;  %v3903_v35 = vld [vmem:[%s5187_s13] sm:$0xff] }
 0x541   :  { %v3097_v41 = vmul.f32 -1.442695, %v397_v36 }
 0x543   :  { %3304 = vpow2.f32 %v3097_v41 }
 0x549   :  { %v3305_v38 = vpop.eup %3304 }
 0x54a   :  { %v401_v43 = vadd.f32 1.0, %v3305_v38 }
 0x54c   :  { %3306 = vrcp.f32 %v401_v43  ;;  %v413_v50 = vand.u32 2147483648, %v401_v43  ;;  %v411_v52 = vand.u32 2147483647, %v401_v43  ;;  %vm407_vm3 = vweird.f32 %v401_v43 }
 0x54e   :  { %v414_v5 = vor.u32 1.1754944e-38, %v413_v50  ;;  %vm412_vm5 = vcmp.eq.f32.partialorder %v411_v52, 8.507059e+37 }
 0x552   :  { %v3307_v42 = vpop.eup %3306 }
 0x553   :  { %v403_v44 = vmul.f32 %v3307_v42, %v401_v43  ;;  %vm408_vm2 = vweird.f32 %v3307_v42  ;;  %v3940_v43 = vld [vmem:[%s5190_s16 + $0x8] sm:$0xff] }
 0x554   :  { %vm409_vm4 = vmor %vm407_vm3, %vm408_vm2 }
 0x555   :  { %v404_v45 = vsub.f32 1.0, %v403_v44  ;;  %v3962_v44 = vld [vmem:[%s5189_s15] ss:$0 sm:$0xff] }
 0x557   :  { %v405_v51 = vmul.f32 %v3307_v42, %v404_v45  ;;  %v130_v45 = vld [vmem:[#allocation8] sm:$0xff] }
 0x559   :  { %v406_v54 = vadd.f32 %v3307_v42, %v405_v51 }
 0x55b   :  { %v410_v8 = vsel %vm409_vm4, %v3307_v42, %v406_v54  ;;  %v3947_v42 = vld [vmem:[%s5190_s16] sm:$0xff] }
 0x55c   :  { %v415_v39 = vsel %vm412_vm5, %v414_v5, %v410_v8 }
 0x55d   :  { %v417_v10 = vmul.f32 2.0, %v415_v39  ;;  %v426_v29 = vmul.f32 %v424_v23, %v415_v39 }
 0x55f   :  { %v3098_v11 = vadd.f32 -1.0, %v417_v10 }
 0x561   :  { %428 = vrot.lane.b32.xlu2 %v3098_v11, %s3474_s25 }
 0x593   :  { %v605_v14 = vpop.permute.xlu0 %604 }
 0x594   :  { %v607_v16 = vmul.f32 %v605_v14, %v3780_v19  ;;  %v3099_v19 = vsel %vm419_vm7, 1.0, %v3471_v2 }
 0x595   :  { %v443_v22 = vmul.f32 %v3866_v20, %v3099_v19 }
 0x596   :  { %v3854_v17 = vsub.f32 %v607_v16, %v608_v15 }
 0x598   :  { %vm610_vm6 = vcmp.gt.f32.partialorder %v3854_v17, %v3691_v53 }
 0x599   :  { %v3859_v18 = vsel %vm610_vm6, 1.0, %v3471_v2 }
 0x59a   :  { %647 = vrot.lane.b32.xlu0 %v3859_v18, %s3473_s30 }
 0x5bb   :  { %v429_v21 = vpop.permute.xlu2 %428 }
 0x5bc   :  { %v431_v55 = vmul.f32 %v429_v21, %v415_v39 }
 0x5be   :  { %433 = vrot.lane.b32.xlu2 %v431_v55, %s3473_s30 }
 0x5c6   :  { %445 = vrot.lane.b32.xlu2 %v443_v22, %s3475_s4 }
 0x5ce   :  { %622 = vrot.lane.b32.xlu2 %v3785_v24, %s3473_s30  ;;  %v3889_v24 = vld [vmem:[%s5187_s13 + $0x10] sm:$0xff] }
 0x5cf   :  { %479 = vmatpush.msrb.mxu1 %v3889_v24  ;;  %836 = vmatpush.msrb.mxu0 %v3889_v24 }
 0x5d1   :  { %480 = vmatpush.msrb.mxu1 %v3896_v34  ;;  %837 = vmatpush.msrb.mxu0 %v3896_v34 }
 0x5d3   :  { %481 = vmatpush.msrb.mxu1 %v3903_v35  ;;  %838 = vmatpush.msrb.mxu0 %v3903_v35 }
 0x5d5   :  { %663 = vmatpush.msra.mxu1 %v3705_v57 }
 0x5d7   :  { %664 = vmatpush.msra.mxu1 %v3713_v58 }
 0x5d9   :  { %665 = vmatpush.msra.mxu1 %v3718_v59 }
 0x5db   :  { %666 = vmatpush.msra.mxu1 %v3730_v61 }
 0x618   :  { %v434_v30 = vpop.permute.xlu2 %433 }
 0x619   :  { %v3876_v31 = vadd.f32 %v434_v30, %v426_v29 }
 0x61b   :  { %3308 = vtanh.f32 %v3876_v31 }
 0x620   :  { %v446_v56 = vpop.permute.xlu2 %445 }
 0x621   :  { %v3309_v62 = vpop.eup %3308 }
 0x622   :  { %439 = vrot.lane.b32.xlu1 %v3309_v62, %s3474_s25 }
 0x628   :  { %v623_v63 = vpop.permute.xlu2 %622 }
 0x629   :  { %3108 = vmatmul.msk.f32.vlgmr.msra.gmra.mxu0 %vm69_vm0, %v623_v63 }
 0x62a   :  { %1018 = vmatpush.msra.mxu0 %v3705_v57  ;;  %v3924_v57 = vld [vmem:[%s5190_s16 + $0x18] sm:$0xff] }
 0x62b   :  { %507 = vmatpush.msrb.mxu2 %v3924_v57 }
 0x62c   :  { %1019 = vmatpush.msra.mxu0 %v3713_v58 }
 0x62e   :  { %1020 = vmatpush.msra.mxu0 %v3718_v59  ;;  %v648_v59 = vpop.permute.xlu0 %647 }
 0x630   :  { %1021 = vmatpush.msra.mxu0 %v3730_v61  ;;  %v3933_v61 = vld [vmem:[%s5190_s16 + $0x10] sm:$0xff] }
 0x631   :  { %508 = vmatpush.msrb.mxu2 %v3933_v61 }
 0x633   :  { %509 = vmatpush.msrb.mxu2 %v3940_v43 }
 0x635   :  { %510 = vmatpush.msrb.mxu2 %v3947_v42 }
 0x637   :  { %735 = vmatpush.msra.mxu2 %v3666_v46 }
 0x639   :  { %736 = vmatpush.msra.mxu2 %v3671_v47 }
 0x63b   :  { %737 = vmatpush.msra.mxu2 %v3677_v48 }
 0x63d   :  { %738 = vmatpush.msra.mxu2 %v3683_v49 }
 0x694   :  { %v440_v36 = vpop.permute.xlu1 %439 }
 0x695   :  { %v442_v41 = vmul.f32 %v440_v36, %v415_v39  ;;  %v3123_v36 = vld [vmem:[%s5205_s28 + $0x10] sm:$0xff] }
 0x697   :  { %v3917_v38 = vsub.f32 %v442_v41, %v446_v56 }
 0x699   :  { %462 = vrot.lane.b32.xlu1 %v3917_v38, %s3473_s30 }
 0x70b   :  { %v463_v58 = vpop.permute.xlu1 %462 }
 0x70c   :  { %3101 = vmatmul.msk.f32.vlgmr.msrb.gmra.mxu1 %vm69_vm0, %v463_v58 }
 0x70d   :  { %864 = vmatpush.msrb.mxu1 %v3924_v57 }
 0x70f   :  { %865 = vmatpush.msrb.mxu1 %v3933_v61 }
 0x711   :  { %866 = vmatpush.msrb.mxu1 %v3940_v43 }
 0x713   :  { %867 = vmatpush.msrb.mxu1 %v3947_v42 }
 0x714   :  { %3109 = vmatmul.msk.f32.vlgmr.msra.gmra.mxu1 %vm69_vm0, %v648_v59 }
 0x715   :  { %1090 = vmatpush.msra.mxu1 %v3666_v46  ;;  %v3967_v46 = vld [vmem:[%s5188_s14] ss:$0 sm:$0xff] }
 0x717   :  { %1091 = vmatpush.msra.mxu1 %v3671_v47  ;;  %v486_v47 = vmul.f32 %v3962_v44, %v130_v45 }
 0x719   :  { %1092 = vmatpush.msra.mxu1 %v3677_v48 }
 0x71b   :  { %1093 = vmatpush.msra.mxu1 %v3683_v49  ;;  %v643_v49 = vpop.f32.mrf.mxu0 }
 0x789   :  { %v483_v50 = vpop.f32.mrf.mxu1 }
 0x78a   :  { %v484_v48 = vadd.f32 %v3967_v46, %v483_v50 }
 0x78c   :  { %v3971_v51 = vadd.f32 %v486_v47, %v484_v48 }
 0x78e   :  { %3102 = vmatmul.msk.f32.vlgmr.msrb.gmra.mxu2 %vm69_vm0, %v3971_v51 }
 0x78f   :  { %915 = vmatpush.msrb.mxu2 %v3587_v0 }
 0x791   :  { %v668_v52 = vpop.f32.mrf.mxu1  ;;  %916 = vmatpush.msrb.mxu2 %v3592_v1 }
 0x792   :  { %v669_v54 = vadd.f32 %v668_v52, %v643_v49 }
 0x793   :  { %917 = vmatpush.msrb.mxu2 %v3600_v4 }
 0x794   :  { %v671_v5 = vadd.f32 %v3760_v13, %v669_v54 }
 0x795   :  { %918 = vmatpush.msrb.mxu2 %v3613_v6 }
 0x796   :  { %v3110_v8 = vmul.f32 -1.442695, %v671_v5  ;;  %3113 = vmatmul.msk.f32.vlgmr.msra.gmra.mxu2 %vm69_vm0, %v463_v58 }
 0x797   :  { %1115 = vmatpush.msra.mxu2 %v3797_v26 }
 0x798   :  { %3310 = vpow2.f32 %v3110_v8 }
 0x799   :  { %1116 = vmatpush.msra.mxu2 %v3802_v27 }
 0x79b   :  { %1117 = vmatpush.msra.mxu2 %v3809_v7 }
 0x79d   :  { %1118 = vmatpush.msra.mxu2 %v3816_v28  ;;  %v3991_v28 = vld [vmem:[%s5191_s17] ss:$0 sm:$0xff] }
 0x79e   :  { %v3311_v0 = vpop.eup %3310 }
 0x79f   :  { %v675_v1 = vadd.f32 1.0, %v3311_v0 }
 0x7a1   :  { %3312 = vrcp.f32 %v675_v1  ;;  %v687_v10 = vand.u32 2147483648, %v675_v1  ;;  %v685_v14 = vand.u32 2147483647, %v675_v1  ;;  %vm681_vm10 = vweird.f32 %v675_v1 }
 0x7a3   :  { %v688_v26 = vor.u32 1.1754944e-38, %v687_v10  ;;  %vm686_vm12 = vcmp.eq.f32.partialorder %v685_v14, 8.507059e+37 }
 0x7a7   :  { %v3313_v4 = vpop.eup %3312 }
 0x7a8   :  { %v677_v6 = vmul.f32 %v3313_v4, %v675_v1  ;;  %vm682_vm9 = vweird.f32 %v3313_v4 }
 0x7a9   :  { %vm683_vm11 = vmor %vm681_vm10, %vm682_vm9 }
 0x7aa   :  { %v678_v39 = vsub.f32 1.0, %v677_v6 }
 0x7ac   :  { %v679_v11 = vmul.f32 %v3313_v4, %v678_v39 }
 0x7ae   :  { %v680_v15 = vadd.f32 %v3313_v4, %v679_v11 }
 0x7b0   :  { %v684_v16 = vsel %vm683_vm11, %v3313_v4, %v680_v15 }
 0x7b1   :  { %v689_v27 = vsel %vm686_vm12, %v688_v26, %v684_v16 }
 0x7b2   :  { %v691_v7 = vmul.f32 2.0, %v689_v27  ;;  %v693_v29 = vmul.f32 %v689_v27, %v3770_v37  ;;  %v710_v37 = vmul.f32 %v3790_v25, %v3775_v40 }
 0x7b4   :  { %v3111_v21 = vadd.f32 -1.0, %v691_v7 }
 0x7b6   :  { %695 = vrot.lane.b32.xlu1 %v3111_v21, %s3474_s25 }
 0x811   :  { %v512_v55 = vpop.f32.mrf.mxu2 }
 0x812   :  { %v3994_v19 = vadd.f32 %v3991_v28, %v512_v55 }
 0x814   :  { %518 = vst.msk [vmem:[%s5193_s19] sm:$0xff] %vm77_vm8, %v3994_v19 }
 0x819   :  { %v740_v45 = vpop.f32.mrf.mxu2 }
 0x828   :  { %v696_v22 = vpop.permute.xlu1 %695 }
 0x829   :  { %v698_v23 = vmul.f32 %v696_v22, %v689_v27 }
 0x82b   :  { %700 = vrot.lane.b32.xlu2 %v698_v23, %s3473_s30 }
 0x833   :  { %899 = vrot.lane.b32.xlu2 %v3854_v17, %s3473_s30 }
 0x885   :  { %v701_v30 = vpop.permute.xlu2 %700 }
 0x886   :  { %v4005_v56 = vadd.f32 %v701_v30, %v693_v29 }
 0x888   :  { %3314 = vtanh.f32 %v4005_v56 }
 0x88d   :  { %v900_v62 = vpop.permute.xlu2 %899 }
 0x88e   :  { %v3315_v63 = vpop.eup %3314  ;;  %3124 = vmatmul.msk.f32.vlgmr.msrb.gmra.mxu2 %vm69_vm0, %v900_v62 }
 0x88f   :  { %706 = vrot.lane.b32.xlu0 %v3315_v63, %s3474_s25 }
 0x897   :  { %890 = vperm.xlu0 %3253, %v3123_v36  }
 0x901   :  { %v707_v41 = vpop.permute.xlu0 %706 }
 0x902   :  { %v709_v17 = vmul.f32 %v707_v41, %v689_v27 }
 0x904   :  { %v4015_v58 = vsub.f32 %v709_v17, %v710_v37 }
 0x906   :  { %vm712_vm13 = vcmp.gt.f32.partialorder %v4015_v58, %v3775_v40 }
 0x907   :  { %v4020_v59 = vsel %vm712_vm13, 1.0, %v3471_v2 }
 0x908   :  { %744 = vrot.lane.b32.xlu1 %v4020_v59, %s3473_s30 }
 0x909   :  { %v891_v47 = vpop.permute.xlu0 %890 }
 0x90a   :  { %v893_v50 = vmul.f32 %v3632_v9, %v891_v47 }
 0x911   :  { %v920_v48 = vpop.f32.mrf.mxu2 }
 0x912   :  { %v923_v49 = vadd.f32 %v920_v48, %v893_v50 }
 0x914   :  { %v924_v25 = vadd.f32 %v3638_v12, %v923_v49 }
 0x916   :  { %v3125_v52 = vmul.f32 -1.442695, %v924_v25 }
 0x918   :  { %3316 = vpow2.f32 %v3125_v52 }
 0x91e   :  { %v3317_v54 = vpop.eup %3316 }
 0x91f   :  { %v928_v5 = vadd.f32 1.0, %v3317_v54 }
 0x921   :  { %3318 = vrcp.f32 %v928_v5  ;;  %v940_v4 = vand.u32 2147483648, %v928_v5  ;;  %v938_v39 = vand.u32 2147483647, %v928_v5  ;;  %vm934_vm15 = vweird.f32 %v928_v5 }
 0x923   :  { %v941_v9 = vor.u32 1.1754944e-38, %v940_v4  ;;  %vm939_vm2 = vcmp.eq.f32.partialorder %v938_v39, 8.507059e+37 }
 0x927   :  { %v3319_v8 = vpop.eup %3318 }
 0x928   :  { %v930_v0 = vmul.f32 %v3319_v8, %v928_v5  ;;  %vm935_vm14 = vweird.f32 %v3319_v8 }
 0x929   :  { %vm936_vm1 = vmor %vm934_vm15, %vm935_vm14 }
 0x92a   :  { %v931_v1 = vsub.f32 1.0, %v930_v0 }
 0x92c   :  { %v932_v6 = vmul.f32 %v3319_v8, %v931_v1 }
 0x92e   :  { %v933_v10 = vadd.f32 %v3319_v8, %v932_v6 }
 0x930   :  { %v937_v11 = vsel %vm936_vm1, %v3319_v8, %v933_v10 }
 0x931   :  { %v942_v14 = vsel %vm939_vm2, %v941_v9, %v937_v11 }
 0x932   :  { %v944_v12 = vmul.f32 2.0, %v942_v14  ;;  %v946_v50 = vmul.f32 %v942_v14, %v3839_v32  ;;  %v963_v32 = vmul.f32 %v3859_v18, %v3691_v53 }
 0x934   :  { %v3126_v15 = vadd.f32 -1.0, %v944_v12 }
 0x936   :  { %948 = vrot.lane.b32.xlu2 %v3126_v15, %s3474_s25 }
 0x93e   :  { %449 = vrot.lane.b32.xlu2 %v3866_v20, %s3475_s4 }
 0x97a   :  { %v4029_v26 = vpop.permute.xlu1 %744 }
 0x97b   :  { %3114 = vmatmul.msk.f32.vlgmr.msra.gmra.mxu3 %vm69_vm0, %v4029_v26 }
 0x97c   :  { %1190 = vmatpush.msra.mxu3 %v3884_v3 }
 0x97e   :  { %1191 = vmatpush.msra.mxu3 %v3889_v24 }
 0x980   :  { %1192 = vmatpush.msra.mxu3 %v3896_v34 }
 0x982   :  { %1193 = vmatpush.msra.mxu3 %v3903_v35 }
 0x990   :  { %v949_v37 = vpop.permute.xlu2 %948 }
 0x991   :  { %v951_v17 = vmul.f32 %v949_v37, %v942_v14 }
 0x998   :  { %v4064_v6 = vpop.permute.xlu2 %449 }
 0x999   :  { %vm452_vm9 = vcmp.gt.f32.partialorder %v3917_v38, %v4064_v6 }
 0x99a   :  { %v4069_v18 = vsel %vm452_vm9, 1.0, %v3471_v2 }
 0x9fe   :  { %v765_v16 = vpop.f32.mrf.mxu3 }
 0x9ff   :  { %v766_v27 = vadd.f32 %v765_v16, %v740_v45  ;;  %v843_v16 = vmul.f32 %v3962_v44, %v3971_v51 }
 0xa01   :  { %v768_v7 = vadd.f32 %v3846_v33, %v766_v27 }
 0xa03   :  { %v3115_v21 = vmul.f32 -1.442695, %v768_v7 }
 0xa05   :  { %3320 = vpow2.f32 %v3115_v21 }
 0xa0b   :  { %v3321_v20 = vpop.eup %3320 }
 0xa0c   :  { %v772_v55 = vadd.f32 1.0, %v3321_v20 }
 0xa0e   :  { %3322 = vrcp.f32 %v772_v55  ;;  %v784_v30 = vand.u32 2147483648, %v772_v55  ;;  %v782_v24 = vand.u32 2147483647, %v772_v55  ;;  %vm778_vm4 = vweird.f32 %v772_v55 }
 0xa10   :  { %v785_v34 = vor.u32 1.1754944e-38, %v784_v30  ;;  %vm783_vm6 = vcmp.eq.f32.partialorder %v782_v24, 8.507059e+37 }
 0xa14   :  { %v3323_v22 = vpop.eup %3322 }
 0xa15   :  { %v774_v23 = vmul.f32 %v3323_v22, %v772_v55  ;;  %vm779_vm3 = vweird.f32 %v3323_v22 }
 0xa16   :  { %vm780_vm5 = vmor %vm778_vm4, %vm779_vm3 }
 0xa17   :  { %v775_v29 = vsub.f32 1.0, %v774_v23 }
 0xa19   :  { %v776_v3 = vmul.f32 %v3323_v22, %v775_v29 }
 0xa1b   :  { %v777_v62 = vadd.f32 %v3323_v22, %v776_v3 }
 0xa1d   :  { %v781_v35 = vsel %vm780_vm5, %v3323_v22, %v777_v62 }
 0xa1e   :  { %v786_v63 = vsel %vm783_vm6, %v785_v34, %v781_v35 }
 0xa1f   :  { %v788_v36 = vmul.f32 2.0, %v786_v63  ;;  %v790_v52 = vmul.f32 %v786_v63, %v3876_v31 }
 0xa21   :  { %v3116_v41 = vadd.f32 -1.0, %v788_v36  ;;  %v131_v36 = vld [vmem:[#allocation9] sm:$0xff] }
 0xa23   :  { %792 = vrot.lane.b32.xlu1 %v3116_v41, %s3474_s25 }
 0xa2b   :  { %953 = vrot.lane.b32.xlu1 %v951_v17, %s3473_s30 }
 0xa95   :  { %v793_v45 = vpop.permute.xlu1 %792 }
 0xa96   :  { %v795_v47 = vmul.f32 %v793_v45, %v786_v63 }
 0xa98   :  { %797 = vrot.lane.b32.xlu0 %v795_v47, %s3473_s30 }
 0xa9d   :  { %v954_v48 = vpop.permute.xlu1 %953 }
 0xa9e   :  { %v4042_v49 = vadd.f32 %v954_v48, %v946_v50 }
 0xaa0   :  { %3324 = vtanh.f32 %v4042_v49 }
 0xaa6   :  { %v3325_v25 = vpop.eup %3324 }
 0xaa7   :  { %959 = vrot.lane.b32.xlu1 %v3325_v25, %s3474_s25 }
 0xb0a   :  { %v798_v54 = vpop.permute.xlu0 %797 }
 0xb0b   :  { %v4047_v5 = vadd.f32 %v798_v54, %v790_v52  ;;  %v4124_v52 = vld [vmem:[%s5204_s23 + $0x10] sm:$0xff]  ;;  %v4129_v54 = vld [vmem:[%s5204_s23 + $0x8] sm:$0xff] }
 0xb0d   :  { %3326 = vtanh.f32 %v4047_v5 }
 0xb13   :  { %v3327_v8 = vpop.eup %3326 }
 0xb14   :  { %803 = vrot.lane.b32.xlu0 %v3327_v8, %s3474_s25  ;;  %v4135_v8 = vld [vmem:[%s5204_s23] sm:$0xff] }
 0xb19   :  { %v960_v0 = vpop.permute.xlu1 %959 }
 0xb1a   :  { %v962_v1 = vmul.f32 %v960_v0, %v942_v14 }
 0xb1c   :  { %v4053_v4 = vsub.f32 %v962_v1, %v963_v32  ;;  %977 = vrot.lane.b32.xlu0 %v4015_v58, %s3473_s30  ;;  %v807_v58 = vmul.f32 %v4069_v18, %v4064_v6 }
 0xb1e   :  { %vm965_vm7 = vcmp.gt.f32.partialorder %v4053_v4, %v3691_v53 }
 0xb1f   :  { %v4060_v31 = vsel %vm965_vm7, 1.0, %v3471_v2 }
 0xb20   :  { %1002 = vrot.lane.b32.xlu1 %v4060_v31, %s3473_s30 }
 0xb86   :  { %v804_v39 = vpop.permute.xlu0 %803 }
 0xb87   :  { %v806_v10 = vmul.f32 %v804_v39, %v786_v63  ;;  %v4097_v63 = vld [vmem:[%s5192_s18] ss:$0 sm:$0xff] }
 0xb88   :  { %v515_v41 = vmul.f32 %v4097_v63, %v131_v36 }
 0xb89   :  { %v4073_v9 = vsub.f32 %v806_v10, %v807_v58  ;;  %v3143_v10 = vld [vmem:[%s5205_s28 + $0x18] sm:$0xff] }
 0xb8a   :  { %v4101_v37 = vadd.f32 %v515_v41, %v3994_v19  ;;  %v4118_v19 = vld [vmem:[%s5204_s23 + $0x18] sm:$0xff] }
 0xb8b   :  { %819 = vrot.lane.b32.xlu2 %v4073_v9, %s3473_s30 }
 0xb8c   :  { %v872_v47 = vmul.f32 %v4097_v63, %v4101_v37 }
 0xb8e   :  { %v978_v11 = vpop.permute.xlu0 %977 }
 0xb8f   :  { %3128 = vmatmul.msk.f32.vlgmr.msrb.gmra.mxu3 %vm69_vm0, %v978_v11 }
 0xb92   :  { %v1003_v38 = vpop.permute.xlu1 %1002 }
 0xbe5   :  { %v820_v14 = vpop.permute.xlu2 %819 }
 0xbe6   :  { %3118 = vmatmul.msk.f32.vlgmr.msrb.gmra.mxu0 %vm69_vm0, %v820_v14 }
 0xbe7   :  { %1219 = vmatpush.msrb.mxu0 %v3924_v57 }
 0xbe9   :  { %1220 = vmatpush.msrb.mxu0 %v3933_v61 }
 0xbeb   :  { %1221 = vmatpush.msrb.mxu0 %v3940_v43 }
 0xbed   :  { %1222 = vmatpush.msrb.mxu0 %v3947_v42 }
 0xbee   :  { %3129 = vmatmul.msk.f32.vlgmr.msra.gmra.mxu0 %vm69_vm0, %v1003_v38 }
 0xc12   :  { %v998_v57 = vpop.f32.mrf.mxu3 }
 0xc63   :  { %v840_v12 = vpop.f32.mrf.mxu0 }
 0xc64   :  { %v841_v15 = vadd.f32 %v3967_v46, %v840_v12 }
 0xc66   :  { %v4087_v27 = vadd.f32 %v843_v16, %v841_v15  ;;  %v4162_v16 = vld [vmem:[%s5206_s1] ss:$0 sm:$0xff] }
 0xc68   :  { %3119 = vmatmul.msk.f32.vlgmr.msrb.gmra.mxu1 %vm69_vm0, %v4087_v27 }
 0xc69   :  { %1270 = vmatpush.msrb.mxu1 %v4118_v19 }
 0xc6b   :  { %v1023_v61 = vpop.f32.mrf.mxu0  ;;  %1271 = vmatpush.msrb.mxu1 %v4124_v52 }
 0xc6c   :  { %v1024_v7 = vadd.f32 %v1023_v61, %v998_v57 }
 0xc6d   :  { %1272 = vmatpush.msrb.mxu1 %v4129_v54 }
 0xc6e   :  { %v1026_v43 = vadd.f32 %v3760_v13, %v1024_v7  ;;  %v4168_v7 = vld [vmem:[%s5207_s2] ss:$0 sm:$0xff] }
 0xc6f   :  { %1273 = vmatpush.msrb.mxu1 %v4135_v8 }
 0xc70   :  { %v3130_v21 = vmul.f32 -1.442695, %v1026_v43  ;;  %3133 = vmatmul.msk.f32.vlgmr.msra.gmra.mxu1 %vm69_vm0, %v820_v14 }
 0xc72   :  { %3328 = vpow2.f32 %v3130_v21 }
 0xc78   :  { %v3329_v42 = vpop.eup %3328 }
 0xc79   :  { %v1030_v20 = vadd.f32 1.0, %v3329_v42 }
 0xc7b   :  { %3330 = vrcp.f32 %v1030_v20  ;;  %v1042_v23 = vand.u32 2147483648, %v1030_v20  ;;  %v1040_v30 = vand.u32 2147483647, %v1030_v20  ;;  %vm1036_vm11 = vweird.f32 %v1030_v20 }
 0xc7d   :  { %v1043_v24 = vor.u32 1.1754944e-38, %v1042_v23  ;;  %vm1041_vm13 = vcmp.eq.f32.partialorder %v1040_v30, 8.507059e+37 }
 0xc81   :  { %v3331_v55 = vpop.eup %3330 }
 0xc82   :  { %v1032_v22 = vmul.f32 %v3331_v55, %v1030_v20  ;;  %vm1037_vm10 = vweird.f32 %v3331_v55 }
 0xc83   :  { %vm1038_vm12 = vmor %vm1036_vm11, %vm1037_vm10  ;;  %vm809_vm10 = vcmp.gt.f32.partialorder %v4073_v9, %v4064_v6  ;;  %v4242_v9 = vld [vmem:[%s5179_s5 + $0x18] sm:$0xff] }
 0xc84   :  { %v1033_v51 = vsub.f32 1.0, %v1032_v22  ;;  %1373 = vmatpush.msrb.mxu3 %v4242_v9 }
 0xc86   :  { %v1034_v29 = vmul.f32 %v3331_v55, %v1033_v51 }
 0xc88   :  { %v1035_v3 = vadd.f32 %v3331_v55, %v1034_v29 }
 0xc8a   :  { %v1039_v62 = vsel %vm1038_vm12, %v3331_v55, %v1035_v3 }
 0xc8b   :  { %v1044_v13 = vsel %vm1041_vm13, %v1043_v24, %v1039_v62 }
 0xc8c   :  { %v1046_v34 = vmul.f32 2.0, %v1044_v13  ;;  %v1048_v0 = vmul.f32 %v1044_v13, %v4005_v56  ;;  %v1065_v56 = vmul.f32 %v4020_v59, %v3775_v40 }
 0xc8e   :  { %v3131_v35 = vadd.f32 -1.0, %v1046_v34 }
 0xc90   :  { %1050 = vrot.lane.b32.xlu2 %v3131_v35, %s3474_s25 }
 0xce5   :  { %v869_v17 = vpop.f32.mrf.mxu1 }
 0xce6   :  { %v870_v45 = vadd.f32 %v3991_v28, %v869_v17 }
 0xce8   :  { %v4106_v50 = vadd.f32 %v872_v47, %v870_v45  ;;  %3120 = vst.msk [vmem:[%s5193_s19 + $0x8] sm:$0xff] %vm77_vm8, %v870_v45 }
 0xcea   :  { %v1051_v48 = vpop.permute.xlu2 %1050 }
 0xceb   :  { %v1053_v25 = vmul.f32 %v1051_v48, %v1044_v13 }
 0xced   :  { %1055 = vrot.lane.b32.xlu0 %v1053_v25, %s3473_s30  ;;  %v1095_v14 = vpop.f32.mrf.mxu1 }
 0xcf5   :  { %1254 = vrot.lane.b32.xlu0 %v4053_v4, %s3473_s30 }
 0xd5f   :  { %v1056_v32 = vpop.permute.xlu0 %1055 }
 0xd60   :  { %v4140_v1 = vadd.f32 %v1056_v32, %v1048_v0 }
 0xd62   :  { %3332 = vtanh.f32 %v4140_v1 }
 0xd67   :  { %v1255_v4 = vpop.permute.xlu0 %1254 }
 0xd68   :  { %v3333_v39 = vpop.eup %3332  ;;  %3144 = vmatmul.msk.f32.vlgmr.msrb.gmra.mxu1 %vm69_vm0, %v1255_v4 }
 0xd69   :  { %1061 = vrot.lane.b32.xlu1 %v3333_v39, %s3474_s25 }
 0xd71   :  { %1245 = vperm.xlu1 %3254, %v3143_v10  }
 0xddb   :  { %v1062_v58 = vpop.permute.xlu1 %1061 }
 0xddc   :  { %v1064_v11 = vmul.f32 %v1062_v58, %v1044_v13 }
 0xdde   :  { %v4150_v38 = vsub.f32 %v1064_v11, %v1065_v56 }
 0xde0   :  { %vm1067_vm14 = vcmp.gt.f32.partialorder %v4150_v38, %v3775_v40 }
 0xde1   :  { %v4155_v12 = vsel %vm1067_vm14, 1.0, %v3471_v2 }
 0xde2   :  { %1099 = vrot.lane.b32.xlu2 %v4155_v12, %s3473_s30 }
 0xde3   :  { %v1246_v15 = vpop.permute.xlu1 %1245 }
 0xde4   :  { %v1248_v59 = vmul.f32 %v4162_v16, %v1246_v15 }
 0xde5   :  { %v1275_v57 = vpop.f32.mrf.mxu1 }
 0xde6   :  { %v1278_v61 = vadd.f32 %v1275_v57, %v1248_v59 }
 0xde8   :  { %v1279_v43 = vadd.f32 %v4168_v7, %v1278_v61 }
 0xdea   :  { %v3145_v21 = vmul.f32 -1.442695, %v1279_v43 }
 0xdec   :  { %3334 = vpow2.f32 %v3145_v21 }
 0xdf2   :  { %v3335_v42 = vpop.eup %3334 }
 0xdf3   :  { %v1283_v20 = vadd.f32 1.0, %v3335_v42 }
 0xdf5   :  { %3336 = vrcp.f32 %v1283_v20  ;;  %v1295_v23 = vand.u32 2147483648, %v1283_v20  ;;  %v1293_v30 = vand.u32 2147483647, %v1283_v20  ;;  %vm1289_vm1 = vweird.f32 %v1283_v20 }
 0xdf7   :  { %v1296_v24 = vor.u32 1.1754944e-38, %v1295_v23  ;;  %vm1294_vm3 = vcmp.eq.f32.partialorder %v1293_v30, 8.507059e+37 }
 0xdfb   :  { %v3337_v55 = vpop.eup %3336 }
 0xdfc   :  { %v1285_v22 = vmul.f32 %v3337_v55, %v1283_v20  ;;  %vm1290_vm15 = vweird.f32 %v3337_v55 }
 0xdfd   :  { %vm1291_vm2 = vmor %vm1289_vm1, %vm1290_vm15 }
 0xdfe   :  { %v1286_v51 = vsub.f32 1.0, %v1285_v22 }
 0xe00   :  { %v1287_v29 = vmul.f32 %v3337_v55, %v1286_v51 }
 0xe02   :  { %v1288_v3 = vadd.f32 %v3337_v55, %v1287_v29 }
 0xe04   :  { %v1292_v62 = vsel %vm1291_vm2, %v3337_v55, %v1288_v3 }
 0xe05   :  { %v1297_v13 = vsel %vm1294_vm3, %v1296_v24, %v1292_v62 }
 0xe06   :  { %v1299_v34 = vmul.f32 2.0, %v1297_v13  ;;  %v1301_v42 = vmul.f32 %v1297_v13, %v4042_v49  ;;  %v1318_v49 = vmul.f32 %v4060_v31, %v3691_v53  ;;  %v4212_v31 = vld [vmem:[%s5180_s6 + $0x10] sm:$0xff] }
 0xe08   :  { %v3146_v35 = vadd.f32 -1.0, %v1299_v34  ;;  %v4206_v34 = vld [vmem:[%s5180_s6 + $0x18] sm:$0xff] }
 0xe09   :  { %1348 = vmatpush.msrb.mxu2 %v4206_v34 }
 0xe0a   :  { %1303 = vrot.lane.b32.xlu0 %v3146_v35, %s3474_s25  ;;  %v4230_v35 = vsel %vm809_vm10, 1.0, %v3471_v2 }
 0xe0b   :  { %1349 = vmatpush.msrb.mxu2 %v4212_v31 }
 0xe3c   :  { %v4172_v36 = vpop.permute.xlu2 %1099 }
 0xe3d   :  { %3134 = vmatmul.msk.f32.vlgmr.msra.gmra.mxu2 %vm69_vm0, %v4172_v36 }
 0xe7c   :  { %v1304_v57 = vpop.permute.xlu0 %1303 }
 0xe7d   :  { %v1306_v61 = vmul.f32 %v1304_v57, %v1297_v13 }
 0xec0   :  { %v1120_v41 = vpop.f32.mrf.mxu2 }
 0xec1   :  { %v1121_v17 = vadd.f32 %v1120_v41, %v1095_v14 }
 0xec3   :  { %v1123_v45 = vadd.f32 %v3846_v33, %v1121_v17  ;;  %v1162_v17 = vmul.f32 %v4230_v35, %v4064_v6 }
 0xec5   :  { %v3135_v47 = vmul.f32 -1.442695, %v1123_v45 }
 0xec7   :  { %3338 = vpow2.f32 %v3135_v47 }
 0xecd   :  { %v3339_v48 = vpop.eup %3338 }
 0xece   :  { %v1127_v25 = vadd.f32 1.0, %v3339_v48 }
 0xed0   :  { %3340 = vrcp.f32 %v1127_v25  ;;  %v1139_v39 = vand.u32 2147483648, %v1127_v25  ;;  %v1137_v58 = vand.u32 2147483647, %v1127_v25  ;;  %vm1133_vm5 = vweird.f32 %v1127_v25 }
 0xed2   :  { %v1140_v11 = vor.u32 1.1754944e-38, %v1139_v39  ;;  %vm1138_vm7 = vcmp.eq.f32.partialorder %v1137_v58, 8.507059e+37  ;;  %v4274_v58 = vld [vmem:[%s5184_s10 + $0x10] sm:$0xff] }
 0xed6   :  { %v3341_v0 = vpop.eup %3340 }
 0xed7   :  { %v1129_v32 = vmul.f32 %v3341_v0, %v1127_v25  ;;  %vm1134_vm4 = vweird.f32 %v3341_v0  ;;  %v4247_v25 = vld [vmem:[%s5179_s5 + $0x10] sm:$0xff] }
 0xed8   :  { %vm1135_vm6 = vmor %vm1133_vm5, %vm1134_vm4  ;;  %1374 = vmatpush.msrb.mxu3 %v4247_v25 }
 0xed9   :  { %v1130_v4 = vsub.f32 1.0, %v1129_v32  ;;  %v4259_v32 = vld [vmem:[%s5179_s5] sm:$0xff] }
 0xedb   :  { %v1131_v10 = vmul.f32 %v3341_v0, %v1130_v4 }
 0xedd   :  { %v1132_v56 = vadd.f32 %v3341_v0, %v1131_v10  ;;  %v4268_v10 = vld [vmem:[%s5184_s10 + $0x18] sm:$0xff] }
 0xede   :  { %1445 = vmatpush.msra.mxu0 %v4268_v10 }
 0xedf   :  { %v1136_v15 = vsel %vm1135_vm6, %v3341_v0, %v1132_v56  ;;  %v4253_v0 = vld [vmem:[%s5179_s5 + $0x8] sm:$0xff] }
 0xee0   :  { %v1141_v14 = vsel %vm1138_vm7, %v1140_v11, %v1136_v15  ;;  %1375 = vmatpush.msrb.mxu3 %v4253_v0  ;;  %1446 = vmatpush.msra.mxu0 %v4274_v58  ;;  %v4280_v56 = vld [vmem:[%s5184_s10 + $0x8] sm:$0xff]  ;;  %v4286_v11 = vld [vmem:[%s5184_s10] sm:$0xff] }
 0xee1   :  { %v1143_v33 = vmul.f32 2.0, %v1141_v14  ;;  %v1145_v51 = vmul.f32 %v1141_v14, %v4047_v5 }
 0xee2   :  { %1376 = vmatpush.msrb.mxu3 %v4259_v32  ;;  %1447 = vmatpush.msra.mxu0 %v4280_v56 }
 0xee3   :  { %v3136_v59 = vadd.f32 -1.0, %v1143_v33  ;;  %v1198_v33 = vmul.f32 %v3962_v44, %v4087_v27 }
 0xee4   :  { %1448 = vmatpush.msra.mxu0 %v4286_v11 }
 0xee5   :  { %1147 = vrot.lane.b32.xlu2 %v3136_v59, %s3474_s25 }
 0xeed   :  { %1308 = vrot.lane.b32.xlu2 %v1306_v61, %s3473_s30 }
 0xf3f   :  { %v1148_v43 = vpop.permute.xlu2 %1147 }
 0xf40   :  { %v1150_v21 = vmul.f32 %v1148_v43, %v1141_v14 }
 0xf42   :  { %1152 = vrot.lane.b32.xlu1 %v1150_v21, %s3473_s30 }
 0xf47   :  { %v1309_v20 = vpop.permute.xlu2 %1308 }
 0xf48   :  { %v4181_v55 = vadd.f32 %v1309_v20, %v1301_v42 }
 0xf4a   :  { %3342 = vtanh.f32 %v4181_v55 }
 0xf50   :  { %v3343_v22 = vpop.eup %3342 }
 0xf51   :  { %1314 = vrot.lane.b32.xlu1 %v3343_v22, %s3474_s25 }
 0xfb4   :  { %v1153_v23 = vpop.permute.xlu1 %1152 }
 0xfb5   :  { %v4186_v29 = vadd.f32 %v1153_v23, %v1145_v51 }
 0xfb7   :  { %3344 = vtanh.f32 %v4186_v29 }
 0xfbd   :  { %v3345_v30 = vpop.eup %3344 }
 0xfbe   :  { %1158 = vrot.lane.b32.xlu0 %v3345_v30, %s3474_s25 }
 0xfc3   :  { %v1315_v3 = vpop.permute.xlu1 %1314 }
 0xfc4   :  { %v1317_v24 = vmul.f32 %v1315_v3, %v1297_v13  ;;  %v4223_v13 = vld [vmem:[%s5180_s6] sm:$0xff] }
 0xfc6   :  { %v4192_v62 = vsub.f32 %v1317_v24, %v1318_v49  ;;  %1332 = vrot.lane.b32.xlu0 %v4150_v38, %s3473_s30  ;;  %v4218_v38 = vld [vmem:[%s5180_s6 + $0x8] sm:$0xff] }
 0xfc7   :  { %1350 = vmatpush.msrb.mxu2 %v4218_v38 }
 0xfc8   :  { %vm1320_vm9 = vcmp.gt.f32.partialorder %v4192_v62, %v3691_v53 }
 0xfc9   :  { %v4199_v5 = vsel %vm1320_vm9, 1.0, %v3471_v2  ;;  %1351 = vmatpush.msrb.mxu2 %v4223_v13 }
 0xfca   :  { %1357 = vrot.lane.b32.xlu1 %v4199_v5, %s3473_s30 }
0x1030   :  { %v1159_v41 = vpop.permute.xlu0 %1158 }
0x1031   :  { %v1161_v45 = vmul.f32 %v1159_v41, %v1141_v14 }
0x1033   :  { %v4234_v47 = vsub.f32 %v1161_v45, %v1162_v17 }
0x1035   :  { %1174 = vrot.lane.b32.xlu2 %v4234_v47, %s3473_s30 }
0x1038   :  { %v1333_v48 = vpop.permute.xlu0 %1332 }
0x1039   :  { %3148 = vmatmul.msk.f32.vlgmr.msrb.gmra.mxu2 %vm69_vm0, %v1333_v48 }
0x103c   :  { %v1358_v39 = vpop.permute.xlu1 %1357 }
0x108f   :  { %v1175_v4 = vpop.permute.xlu2 %1174 }
0x1090   :  { %3138 = vmatmul.msk.f32.vlgmr.msra.gmra.mxu3 %vm69_vm0, %v1175_v4 }
0x1098   :  { %3149 = vmatmul.msk.f32.vlgmr.msrb.gmra.mxu3 %vm69_vm0, %v1358_v39 }
0x10bc   :  { %v1353_v57 = vpop.f32.mrf.mxu2 }
0x1113   :  { %v1195_v15 = vpop.f32.mrf.mxu3 }
0x1114   :  { %v1196_v14 = vadd.f32 %v3967_v46, %v1195_v15  ;;  %v4302_v46 = vld [vmem:[%s5181_s7] ss:$0 sm:$0xff]  ;;  %v1227_v15 = vmul.f32 %v4097_v63, %v4106_v50 }
0x1116   :  { %v4292_v59 = vadd.f32 %v1198_v33, %v1196_v14 }
0x1118   :  { %3139 = vmatmul.msk.f32.vlgmr.msrb.gmra.mxu0 %vm69_vm0, %v4292_v59 }
0x1119   :  { %1625 = vmatpush.msrb.mxu0 %v4118_v19 }
0x111b   :  { %v1378_v61 = vpop.f32.mrf.mxu3  ;;  %1626 = vmatpush.msrb.mxu0 %v4124_v52 }
0x111c   :  { %v1379_v43 = vadd.f32 %v1378_v61, %v1353_v57 }
0x111d   :  { %1627 = vmatpush.msrb.mxu0 %v4129_v54 }
0x111e   :  { %v1381_v44 = vadd.f32 %v4302_v46, %v1379_v43 }
0x111f   :  { %1628 = vmatpush.msrb.mxu0 %v4135_v8 }
0x1120   :  { %v3150_v27 = vmul.f32 -1.442695, %v1381_v44  ;;  %3153 = vmatmul.msk.f32.vlgmr.msra.gmra.mxu0 %vm69_vm0, %v1175_v4 }
0x1122   :  { %3346 = vpow2.f32 %v3150_v27  ;;  %v3163_v27 = vld [vmem:[%s5205_s28 + $0x20] sm:$0xff] }
0x1128   :  { %v3347_v21 = vpop.eup %3346 }
0x1129   :  { %v1385_v42 = vadd.f32 1.0, %v3347_v21 }
0x112b   :  { %3348 = vrcp.f32 %v1385_v42  ;;  %v1397_v23 = vand.u32 2147483648, %v1385_v42  ;;  %v1395_v3 = vand.u32 2147483647, %v1385_v42  ;;  %vm1391_vm12 = vweird.f32 %v1385_v42 }
0x112d   :  { %v1398_v24 = vor.u32 1.1754944e-38, %v1397_v23  ;;  %vm1396_vm14 = vcmp.eq.f32.partialorder %v1395_v3, 8.507059e+37 }
0x1131   :  { %v3349_v20 = vpop.eup %3348 }
0x1132   :  { %v1387_v22 = vmul.f32 %v3349_v20, %v1385_v42  ;;  %vm1392_vm11 = vweird.f32 %v3349_v20 }
0x1133   :  { %vm1393_vm13 = vmor %vm1391_vm12, %vm1392_vm11  ;;  %vm1164_vm11 = vcmp.gt.f32.partialorder %v4234_v47, %v4064_v6 }
0x1134   :  { %v1388_v51 = vsub.f32 1.0, %v1387_v22 }
0x1136   :  { %v1389_v30 = vmul.f32 %v3349_v20, %v1388_v51 }
0x1138   :  { %v1390_v49 = vadd.f32 %v3349_v20, %v1389_v30 }
0x113a   :  { %v1394_v41 = vsel %vm1393_vm13, %v3349_v20, %v1390_v49 }
0x113b   :  { %v1399_v17 = vsel %vm1396_vm14, %v1398_v24, %v1394_v41  ;;  %v4345_v24 = vld [vmem:[%s5183_s9 + $0x18] sm:$0xff]  ;;  %v4350_v41 = vld [vmem:[%s5183_s9 + $0x10] sm:$0xff] }
0x113c   :  { %v1401_v45 = vmul.f32 2.0, %v1399_v17  ;;  %v1403_v61 = vmul.f32 %v1399_v17, %v4140_v1  ;;  %v1420_v1 = vmul.f32 %v4155_v12, %v3775_v40  ;;  %1470 = vmatpush.msra.mxu1 %v4345_v24  ;;  %1825 = vmatpush.msra.mxu0 %v4345_v24 }
0x113e   :  { %v3151_v48 = vadd.f32 -1.0, %v1401_v45  ;;  %1471 = vmatpush.msra.mxu1 %v4350_v41  ;;  %1826 = vmatpush.msra.mxu0 %v4350_v41  ;;  %v4364_v45 = vld [vmem:[%s5183_s9] sm:$0xff] }
0x1140   :  { %1405 = vrot.lane.b32.xlu2 %v3151_v48, %s3474_s25 }
0x1195   :  { %v1224_v4 = vpop.f32.mrf.mxu0 }
0x1196   :  { %v1225_v39 = vadd.f32 %v3991_v28, %v1224_v4 }
0x1198   :  { %v4311_v14 = vadd.f32 %v1227_v15, %v1225_v39  ;;  %3140 = vst.msk [vmem:[%s5193_s19 + $0x10] sm:$0xff] %vm77_vm8, %v1225_v39 }
0x119a   :  { %v1406_v33 = vpop.permute.xlu2 %1405 }
0x119b   :  { %v1408_v57 = vmul.f32 %v1406_v33, %v1399_v17 }
0x119d   :  { %1410 = vrot.lane.b32.xlu0 %v1408_v57, %s3473_s30  ;;  %v1450_v42 = vpop.f32.mrf.mxu0 }
0x11a5   :  { %1609 = vrot.lane.b32.xlu0 %v4192_v62, %s3473_s30 }
0x120f   :  { %v1411_v28 = vpop.permute.xlu0 %1410 }
0x1210   :  { %v4321_v43 = vadd.f32 %v1411_v28, %v1403_v61 }
0x1212   :  { %3350 = vtanh.f32 %v4321_v43 }
0x1217   :  { %v1610_v63 = vpop.permute.xlu0 %1609 }
0x1218   :  { %v3351_v44 = vpop.eup %3350  ;;  %3164 = vmatmul.msk.f32.vlgmr.msrb.gmra.mxu0 %vm69_vm0, %v1610_v63 }
0x1219   :  { %1416 = vrot.lane.b32.xlu1 %v3351_v44, %s3474_s25 }
0x1221   :  { %1600 = vperm.xlu1 %3254, %v3163_v27  }
0x128b   :  { %v1417_v21 = vpop.permute.xlu1 %1416 }
0x128c   :  { %v1419_v62 = vmul.f32 %v1417_v21, %v1399_v17  ;;  %v4357_v17 = vld [vmem:[%s5183_s9 + $0x8] sm:$0xff] }
0x128d   :  { %1472 = vmatpush.msra.mxu1 %v4357_v17  ;;  %1827 = vmatpush.msra.mxu0 %v4357_v17 }
0x128e   :  { %v4331_v20 = vsub.f32 %v1419_v62, %v1420_v1  ;;  %v4386_v62 = vld [vmem:[%s5185_s11] ss:$0 sm:$0xff] }
0x128f   :  { %1473 = vmatpush.msra.mxu1 %v4364_v45  ;;  %1828 = vmatpush.msra.mxu0 %v4364_v45 }
0x1290   :  { %vm1422_vm15 = vcmp.gt.f32.partialorder %v4331_v20, %v3775_v40 }
0x1291   :  { %v4336_v22 = vsel %vm1422_vm15, 1.0, %v3471_v2  ;;  %1703 = vmatpush.msrb.mxu1 %v4206_v34  ;;  %2058 = vmatpush.msrb.mxu0 %v4206_v34 }
0x1292   :  { %1454 = vrot.lane.b32.xlu2 %v4336_v22, %s3473_s30 }
0x1293   :  { %v1601_v51 = vpop.permute.xlu1 %1600  ;;  %1704 = vmatpush.msrb.mxu1 %v4212_v31  ;;  %2059 = vmatpush.msrb.mxu0 %v4212_v31 }
0x1294   :  { %v1603_v23 = vmul.f32 %v4162_v16, %v1601_v51 }
0x1295   :  { %v1630_v30 = vpop.f32.mrf.mxu0  ;;  %1705 = vmatpush.msrb.mxu1 %v4218_v38  ;;  %2060 = vmatpush.msrb.mxu0 %v4218_v38 }
0x1296   :  { %v1633_v3 = vadd.f32 %v1630_v30, %v1603_v23 }
0x1297   :  { %1706 = vmatpush.msrb.mxu1 %v4223_v13  ;;  %2061 = vmatpush.msrb.mxu0 %v4223_v13 }
0x1298   :  { %v1634_v12 = vadd.f32 %v4168_v7, %v1633_v3 }
0x129a   :  { %v3165_v49 = vmul.f32 -1.442695, %v1634_v12 }
0x129c   :  { %3352 = vpow2.f32 %v3165_v49 }
0x12a2   :  { %v3353_v48 = vpop.eup %3352 }
0x12a3   :  { %v1638_v4 = vadd.f32 1.0, %v3353_v48 }
0x12a5   :  { %3354 = vrcp.f32 %v1638_v4  ;;  %v1650_v57 = vand.u32 2147483648, %v1638_v4  ;;  %v1648_v34 = vand.u32 2147483647, %v1638_v4  ;;  %vm1644_vm2 = vweird.f32 %v1638_v4 }
0x12a7   :  { %v1651_v31 = vor.u32 1.1754944e-38, %v1650_v57  ;;  %vm1649_vm4 = vcmp.eq.f32.partialorder %v1648_v34, 8.507059e+37 }
0x12ab   :  { %v3355_v39 = vpop.eup %3354 }
0x12ac   :  { %v1640_v15 = vmul.f32 %v3355_v39, %v1638_v4  ;;  %vm1645_vm1 = vweird.f32 %v3355_v39 }
0x12ad   :  { %vm1646_vm3 = vmor %vm1644_vm2, %vm1645_vm1 }
0x12ae   :  { %v1641_v33 = vsub.f32 1.0, %v1640_v15 }
0x12b0   :  { %v1642_v61 = vmul.f32 %v3355_v39, %v1641_v33 }
0x12b2   :  { %v1643_v28 = vadd.f32 %v3355_v39, %v1642_v61 }
0x12b4   :  { %v1647_v63 = vsel %vm1646_vm3, %v3355_v39, %v1643_v28 }
0x12b5   :  { %v1652_v44 = vsel %vm1649_vm4, %v1651_v31, %v1647_v63 }
0x12b6   :  { %v1654_v27 = vmul.f32 2.0, %v1652_v44 }
0x12b8   :  { %v3166_v38 = vadd.f32 -1.0, %v1654_v27 }
0x12ba   :  { %1658 = vrot.lane.b32.xlu0 %v3166_v38, %s3474_s25 }
0x12ec   :  { %v4379_v21 = vpop.permute.xlu2 %1454 }
0x12ed   :  { %3154 = vmatmul.msk.f32.vlgmr.msra.gmra.mxu1 %vm69_vm0, %v4379_v21 }
0x132c   :  { %v1659_v31 = vpop.permute.xlu0 %1658 }
0x132d   :  { %v1661_v63 = vmul.f32 %v1659_v31, %v1652_v44  ;;  %v4489_v31 = vld [vmem:[%s5190_s16] sm:$0xff] }
0x136a   :  { %v1475_v13 = vpop.f32.mrf.mxu1 }
0x136b   :  { %v1476_v1 = vadd.f32 %v1475_v13, %v1450_v42  ;;  %v1656_v13 = vmul.f32 %v1652_v44, %v4181_v55 }
0x136d   :  { %v1478_v51 = vadd.f32 %v4386_v62, %v1476_v1 }
0x136f   :  { %v3155_v23 = vmul.f32 -1.442695, %v1478_v51 }
0x1371   :  { %3356 = vpow2.f32 %v3155_v23 }
0x1377   :  { %v3357_v30 = vpop.eup %3356 }
0x1378   :  { %v1482_v3 = vadd.f32 1.0, %v3357_v30 }
0x137a   :  { %3358 = vrcp.f32 %v1482_v3  ;;  %v1494_v4 = vand.u32 2147483648, %v1482_v3  ;;  %v1492_v15 = vand.u32 2147483647, %v1482_v3  ;;  %vm1488_vm6 = vweird.f32 %v1482_v3 }
0x137c   :  { %v1495_v33 = vor.u32 1.1754944e-38, %v1494_v4  ;;  %vm1493_vm9 = vcmp.eq.f32.partialorder %v1492_v15, 8.507059e+37  ;;  %v4419_v15 = vld [vmem:[%s5187_s13 + $0x18] sm:$0xff] }
0x137d   :  { %1545 = vmatpush.msra.mxu2 %v4419_v15  ;;  %1900 = vmatpush.msra.mxu1 %v4419_v15 }
0x1380   :  { %v3359_v12 = vpop.eup %3358 }
0x1381   :  { %v1484_v49 = vmul.f32 %v3359_v12, %v1482_v3  ;;  %vm1489_vm5 = vweird.f32 %v3359_v12 }
0x1382   :  { %vm1490_vm7 = vmor %vm1488_vm6, %vm1489_vm5 }
0x1383   :  { %v1485_v48 = vsub.f32 1.0, %v1484_v49 }
0x1385   :  { %v1486_v39 = vmul.f32 %v3359_v12, %v1485_v48  ;;  %v1673_v48 = vmul.f32 %v4199_v5, %v3691_v53  ;;  %v4424_v5 = vld [vmem:[%s5187_s13 + $0x10] sm:$0xff] }
0x1386   :  { %1546 = vmatpush.msra.mxu2 %v4424_v5  ;;  %1901 = vmatpush.msra.mxu1 %v4424_v5 }
0x1387   :  { %v1487_v42 = vadd.f32 %v3359_v12, %v1486_v39 }
0x1389   :  { %v1491_v57 = vsel %vm1490_vm7, %v3359_v12, %v1487_v42  ;;  %v4440_v42 = vld [vmem:[%s5187_s13] sm:$0xff] }
0x138a   :  { %v1496_v61 = vsel %vm1493_vm9, %v1495_v33, %v1491_v57  ;;  %v4443_v33 = vsel %vm1164_vm11, 1.0, %v3471_v2 }
0x138b   :  { %v1498_v34 = vmul.f32 2.0, %v1496_v61  ;;  %v1500_v30 = vmul.f32 %v1496_v61, %v4186_v29  ;;  %v1517_v57 = vmul.f32 %v4443_v33, %v4064_v6 }
0x138d   :  { %v3156_v28 = vadd.f32 -1.0, %v1498_v34 }
0x138f   :  { %1502 = vrot.lane.b32.xlu2 %v3156_v28, %s3474_s25 }
0x1397   :  { %1663 = vrot.lane.b32.xlu2 %v1661_v63, %s3473_s30 }
0x13e9   :  { %v1503_v27 = vpop.permute.xlu2 %1502 }
0x13ea   :  { %v1505_v38 = vmul.f32 %v1503_v27, %v1496_v61  ;;  %v4504_v27 = vld [vmem:[%s5188_s14] ss:$0 sm:$0xff] }
0x13ec   :  { %1507 = vrot.lane.b32.xlu1 %v1505_v38, %s3473_s30 }
0x13f1   :  { %v1664_v1 = vpop.permute.xlu2 %1663 }
0x13f2   :  { %v4393_v51 = vadd.f32 %v1664_v1, %v1656_v13 }
0x13f4   :  { %3360 = vtanh.f32 %v4393_v51 }
0x13fa   :  { %v3361_v23 = vpop.eup %3360 }
0x13fb   :  { %1669 = vrot.lane.b32.xlu1 %v3361_v23, %s3474_s25 }
0x1403   :  { %1687 = vrot.lane.b32.xlu1 %v4331_v20, %s3473_s30 }
0x145e   :  { %v1508_v3 = vpop.permute.xlu1 %1507 }
0x145f   :  { %v4400_v12 = vadd.f32 %v1508_v3, %v1500_v30 }
0x1461   :  { %3362 = vtanh.f32 %v4400_v12 }
0x1467   :  { %v3363_v49 = vpop.eup %3362 }
0x1468   :  { %1513 = vrot.lane.b32.xlu0 %v3363_v49, %s3474_s25 }
0x146d   :  { %v1670_v55 = vpop.permute.xlu1 %1669 }
0x146e   :  { %v1672_v4 = vmul.f32 %v1670_v55, %v1652_v44  ;;  %v4433_v44 = vld [vmem:[%s5187_s13 + $0x8] sm:$0xff] }
0x146f   :  { %1547 = vmatpush.msra.mxu2 %v4433_v44  ;;  %1902 = vmatpush.msra.mxu1 %v4433_v44 }
0x1470   :  { %v4406_v39 = vsub.f32 %v1672_v4, %v1673_v48 }
0x1471   :  { %1548 = vmatpush.msra.mxu2 %v4440_v42  ;;  %1903 = vmatpush.msra.mxu1 %v4440_v42 }
0x1472   :  { %vm1675_vm10 = vcmp.gt.f32.partialorder %v4406_v39, %v3691_v53 }
0x1473   :  { %v4411_v29 = vsel %vm1675_vm10, 1.0, %v3471_v2  ;;  %1728 = vmatpush.msrb.mxu2 %v4242_v9 }
0x1474   :  { %1712 = vrot.lane.b32.xlu0 %v4411_v29, %s3473_s30 }
0x1475   :  { %v1688_v20 = vpop.permute.xlu1 %1687  ;;  %1729 = vmatpush.msrb.mxu2 %v4247_v25 }
0x1476   :  { %3168 = vmatmul.msk.f32.vlgmr.msrb.gmra.mxu1 %vm69_vm0, %v1688_v20 }
0x1477   :  { %2083 = vmatpush.msrb.mxu1 %v4242_v9  ;;  %1730 = vmatpush.msrb.mxu2 %v4253_v0  ;;  %v4466_v9 = vld [vmem:[%s5190_s16 + $0x18] sm:$0xff] }
0x1478   :  { %1574 = vmatpush.msra.mxu3 %v4466_v9 }
0x1479   :  { %2084 = vmatpush.msrb.mxu1 %v4247_v25  ;;  %1731 = vmatpush.msrb.mxu2 %v4259_v32 }
0x147b   :  { %2085 = vmatpush.msrb.mxu1 %v4253_v0  ;;  %v4475_v0 = vld [vmem:[%s5190_s16 + $0x10] sm:$0xff] }
0x147c   :  { %1575 = vmatpush.msra.mxu3 %v4475_v0 }
0x147d   :  { %2086 = vmatpush.msrb.mxu1 %v4259_v32  ;;  %v4482_v32 = vld [vmem:[%s5190_s16 + $0x8] sm:$0xff] }
0x147e   :  { %1576 = vmatpush.msra.mxu3 %v4482_v32 }
0x1480   :  { %1577 = vmatpush.msra.mxu3 %v4489_v31 }
0x1482   :  { %1800 = vmatpush.msrb.mxu3 %v4268_v10 }
0x1484   :  { %1801 = vmatpush.msrb.mxu3 %v4274_v58 }
0x1486   :  { %1802 = vmatpush.msrb.mxu3 %v4280_v56 }
0x1488   :  { %1803 = vmatpush.msrb.mxu3 %v4286_v11 }
0x14da   :  { %v1514_v47 = vpop.permute.xlu0 %1513 }
0x14db   :  { %v1516_v34 = vmul.f32 %v1514_v47, %v1496_v61 }
0x14dd   :  { %v4453_v28 = vsub.f32 %v1516_v34, %v1517_v57  ;;  %v4532_v34 = vld [vmem:[%s5191_s17] ss:$0 sm:$0xff] }
0x14df   :  { %1529 = vrot.lane.b32.xlu2 %v4453_v28, %s3473_s30 }
0x14e6   :  { %v1713_v25 = vpop.permute.xlu0 %1712 }
0x1539   :  { %v1530_v61 = vpop.permute.xlu2 %1529 }
0x153a   :  { %3158 = vmatmul.msk.f32.vlgmr.msra.gmra.mxu2 %vm69_vm0, %v1530_v61 }
0x153b   :  { %1929 = vmatpush.msra.mxu2 %v4466_v9 }
0x153d   :  { %1930 = vmatpush.msra.mxu2 %v4475_v0 }
0x153f   :  { %1931 = vmatpush.msra.mxu2 %v4482_v32 }
0x1541   :  { %1932 = vmatpush.msra.mxu2 %v4489_v31 }
0x1542   :  { %3169 = vmatmul.msk.f32.vlgmr.msrb.gmra.mxu2 %vm69_vm0, %v1713_v25 }
0x1543   :  { %2155 = vmatpush.msrb.mxu2 %v4268_v10 }
0x1545   :  { %2156 = vmatpush.msrb.mxu2 %v4274_v58  ;;  %v4510_v58 = vld [vmem:[%s5189_s15] ss:$0 sm:$0xff] }
0x1547   :  { %2157 = vmatpush.msrb.mxu2 %v4280_v56  ;;  %v1553_v56 = vmul.f32 %v4510_v58, %v4292_v59 }
0x1549   :  { %2158 = vmatpush.msrb.mxu2 %v4286_v11  ;;  %v1708_v11 = vpop.f32.mrf.mxu1 }
0x15bd   :  { %v1550_v63 = vpop.f32.mrf.mxu2 }
0x15be   :  { %v1551_v10 = vadd.f32 %v4504_v27, %v1550_v63 }
0x15c0   :  { %v4514_v38 = vadd.f32 %v1553_v56, %v1551_v10 }
0x15c2   :  { %3159 = vmatmul.msk.f32.vlgmr.msra.gmra.mxu3 %vm69_vm0, %v4514_v38 }
0x15c3   :  { %1980 = vmatpush.msra.mxu3 %v4118_v19 }
0x15c5   :  { %v1733_v13 = vpop.f32.mrf.mxu2  ;;  %1981 = vmatpush.msra.mxu3 %v4124_v52 }
0x15c6   :  { %v1734_v1 = vadd.f32 %v1733_v13, %v1708_v11  ;;  %v3183_v13 = vld [vmem:[%s5205_s28 + $0x28] sm:$0xff] }
0x15c7   :  { %1982 = vmatpush.msra.mxu3 %v4129_v54 }
0x15c8   :  { %v1736_v23 = vadd.f32 %v4302_v46, %v1734_v1 }
0x15c9   :  { %1983 = vmatpush.msra.mxu3 %v4135_v8 }
0x15ca   :  { %v3170_v30 = vmul.f32 -1.442695, %v1736_v23  ;;  %3173 = vmatmul.msk.f32.vlgmr.msrb.gmra.mxu3 %vm69_vm0, %v1530_v61 }
0x15cb   :  { %2180 = vmatpush.msrb.mxu3 %v4345_v24 }
0x15cc   :  { %3364 = vpow2.f32 %v3170_v30 }
0x15cd   :  { %2181 = vmatpush.msrb.mxu3 %v4350_v41 }
0x15cf   :  { %2182 = vmatpush.msrb.mxu3 %v4357_v17 }
0x15d1   :  { %2183 = vmatpush.msrb.mxu3 %v4364_v45 }
0x15d2   :  { %v3365_v19 = vpop.eup %3364 }
0x15d3   :  { %v1740_v52 = vadd.f32 1.0, %v3365_v19 }
0x15d5   :  { %3366 = vrcp.f32 %v1740_v52  ;;  %v1752_v49 = vand.u32 2147483648, %v1740_v52  ;;  %v1750_v55 = vand.u32 2147483647, %v1740_v52  ;;  %vm1746_vm13 = vweird.f32 %v1740_v52 }
0x15d7   :  { %v1753_v24 = vor.u32 1.1754944e-38, %v1752_v49  ;;  %vm1751_vm15 = vcmp.eq.f32.partialorder %v1750_v55, 8.507059e+37 }
0x15db   :  { %v3367_v54 = vpop.eup %3366 }
0x15dc   :  { %v1742_v59 = vmul.f32 %v3367_v54, %v1740_v52  ;;  %vm1747_vm12 = vweird.f32 %v3367_v54 }
0x15dd   :  { %vm1748_vm14 = vmor %vm1746_vm13, %vm1747_vm12  ;;  %vm1519_vm12 = vcmp.gt.f32.partialorder %v4453_v28, %v4064_v6 }
0x15de   :  { %v1743_v3 = vsub.f32 1.0, %v1742_v59 }
0x15e0   :  { %v1744_v8 = vmul.f32 %v3367_v54, %v1743_v3 }
0x15e2   :  { %v1745_v48 = vadd.f32 %v3367_v54, %v1744_v8 }
0x15e4   :  { %v1749_v4 = vsel %vm1748_vm14, %v3367_v54, %v1745_v48 }
0x15e5   :  { %v1754_v41 = vsel %vm1751_vm15, %v1753_v24, %v1749_v4 }
0x15e6   :  { %v1756_v17 = vmul.f32 2.0, %v1754_v41  ;;  %v1758_v25 = vmul.f32 %v1754_v41, %v4321_v43  ;;  %v1775_v43 = vmul.f32 %v4336_v22, %v3775_v40 }
0x15e8   :  { %v3171_v20 = vadd.f32 -1.0, %v1756_v17 }
0x15ea   :  { %1760 = vrot.lane.b32.xlu2 %v3171_v20, %s3474_s25 }
0x1644   :  { %v1761_v45 = vpop.permute.xlu2 %1760 }
0x1645   :  { %v1763_v47 = vmul.f32 %v1761_v45, %v1754_v41  ;;  %v1579_v57 = vpop.f32.mrf.mxu3 }
0x1646   :  { %v4535_v61 = vadd.f32 %v4532_v34, %v1579_v57 }
0x1647   :  { %1765 = vrot.lane.b32.xlu0 %v1763_v47, %s3473_s30 }
0x1648   :  { %3160 = vst.msk [vmem:[%s5193_s19 + $0x18] sm:$0xff] %vm77_vm8, %v4535_v61 }
0x164d   :  { %v1805_v19 = vpop.f32.mrf.mxu3 }
0x164f   :  { %1964 = vrot.lane.b32.xlu0 %v4406_v39, %s3473_s30 }
0x16b9   :  { %v1766_v63 = vpop.permute.xlu0 %1765 }
0x16ba   :  { %v4546_v10 = vadd.f32 %v1766_v63, %v1758_v25 }
0x16bc   :  { %3368 = vtanh.f32 %v4546_v10 }
0x16c1   :  { %v1965_v56 = vpop.permute.xlu0 %1964 }
0x16c2   :  { %v3369_v11 = vpop.eup %3368  ;;  %3184 = vmatmul.msk.f32.vlgmr.msra.gmra.mxu3 %vm69_vm0, %v1965_v56 }
0x16c3   :  { %1771 = vrot.lane.b32.xlu1 %v3369_v11, %s3474_s25 }
0x16cb   :  { %1955 = vperm.xlu1 %3254, %v3183_v13  }
0x1735   :  { %v1772_v1 = vpop.permute.xlu1 %1771 }
0x1736   :  { %v1774_v39 = vmul.f32 %v1772_v1, %v1754_v41 }
0x1738   :  { %v4556_v23 = vsub.f32 %v1774_v39, %v1775_v43 }
0x173a   :  { %vm1777_vm1 = vcmp.gt.f32.partialorder %v4556_v23, %v3775_v40 }
0x173b   :  { %v4561_v30 = vsel %vm1777_vm1, 1.0, %v3471_v2 }
0x173c   :  { %1809 = vrot.lane.b32.xlu2 %v4561_v30, %s3473_s30 }
0x173d   :  { %v1956_v52 = vpop.permute.xlu1 %1955 }
0x173e   :  { %v1958_v54 = vmul.f32 %v4162_v16, %v1956_v52 }
0x1745   :  { %v1985_v59 = vpop.f32.mrf.mxu3 }
0x1746   :  { %v1988_v3 = vadd.f32 %v1985_v59, %v1958_v54 }
0x1748   :  { %v1989_v22 = vadd.f32 %v4168_v7, %v1988_v3 }
0x174a   :  { %v3185_v49 = vmul.f32 -1.442695, %v1989_v22 }
0x174c   :  { %3370 = vpow2.f32 %v3185_v49 }
0x1752   :  { %v3371_v8 = vpop.eup %3370 }
0x1753   :  { %v1993_v55 = vadd.f32 1.0, %v3371_v8 }
0x1755   :  { %3372 = vrcp.f32 %v1993_v55  ;;  %v2005_v41 = vand.u32 2147483648, %v1993_v55  ;;  %v2003_v20 = vand.u32 2147483647, %v1993_v55  ;;  %vm1999_vm3 = vweird.f32 %v1993_v55 }
0x1757   :  { %v2006_v16 = vor.u32 1.1754944e-38, %v2005_v41  ;;  %vm2004_vm5 = vcmp.eq.f32.partialorder %v2003_v20, 8.507059e+37 }
0x175b   :  { %v3373_v48 = vpop.eup %3372 }
0x175c   :  { %v1995_v24 = vmul.f32 %v3373_v48, %v1993_v55  ;;  %vm2000_vm2 = vweird.f32 %v3373_v48 }
0x175d   :  { %vm2001_vm4 = vmor %vm1999_vm3, %vm2000_vm2 }
0x175e   :  { %v1996_v4 = vsub.f32 1.0, %v1995_v24 }
0x1760   :  { %v1997_v17 = vmul.f32 %v3373_v48, %v1996_v4 }
0x1762   :  { %v1998_v45 = vadd.f32 %v3373_v48, %v1997_v17 }
0x1764   :  { %v2002_v47 = vsel %vm2001_vm4, %v3373_v48, %v1998_v45 }
0x1765   :  { %v2007_v57 = vsel %vm2004_vm5, %v2006_v16, %v2002_v47 }
0x1766   :  { %v2009_v7 = vmul.f32 2.0, %v2007_v57  ;;  %v2011_v41 = vmul.f32 %v2007_v57, %v4393_v51  ;;  %v2028_v51 = vmul.f32 %v4411_v29, %v3691_v53 }
0x1768   :  { %v3186_v25 = vadd.f32 -1.0, %v2009_v7 }
0x176a   :  { %2013 = vrot.lane.b32.xlu0 %v3186_v25, %s3474_s25 }
0x1796   :  { %v4568_v63 = vpop.permute.xlu2 %1809 }
0x1797   :  { %3174 = vmatmul.msk.f32.vlgmr.msra.gmra.mxu0 %vm69_vm0, %v4568_v63 }
0x1798   :  { %2255 = vmatpush.msra.mxu0 %v4419_v15 }
0x179a   :  { %2256 = vmatpush.msra.mxu0 %v4424_v5 }
0x179c   :  { %2257 = vmatpush.msra.mxu0 %v4433_v44 }
0x179e   :  { %2258 = vmatpush.msra.mxu0 %v4440_v42 }
0x17dc   :  { %v2014_v55 = vpop.permute.xlu0 %2013 }
0x17dd   :  { %v2016_v48 = vmul.f32 %v2014_v55, %v2007_v57 }
0x1814   :  { %v1830_v56 = vpop.f32.mrf.mxu0 }
0x1815   :  { %v1831_v11 = vadd.f32 %v1830_v56, %v1805_v19 }
0x1817   :  { %v1833_v13 = vadd.f32 %v4386_v62, %v1831_v11 }
0x1819   :  { %v3175_v1 = vmul.f32 -1.442695, %v1833_v13 }
0x181b   :  { %3374 = vpow2.f32 %v3175_v1  ;;  %v4603_v1 = vsel %vm1519_vm12, 1.0, %v3471_v2 }
0x1821   :  { %v3375_v43 = vpop.eup %3374 }
0x1822   :  { %v1837_v39 = vadd.f32 1.0, %v3375_v43 }
0x1824   :  { %3376 = vrcp.f32 %v1837_v39  ;;  %v1849_v3 = vand.u32 2147483648, %v1837_v39  ;;  %v1847_v5 = vand.u32 2147483647, %v1837_v39  ;;  %vm1843_vm7 = vweird.f32 %v1837_v39 }
0x1826   :  { %v1850_v44 = vor.u32 1.1754944e-38, %v1849_v3  ;;  %vm1848_vm10 = vcmp.eq.f32.partialorder %v1847_v5, 8.507059e+37  ;;  %v1908_v3 = vmul.f32 %v4510_v58, %v4514_v38 }
0x182a   :  { %v3377_v52 = vpop.eup %3376 }
0x182b   :  { %v1839_v54 = vmul.f32 %v3377_v52, %v1837_v39  ;;  %vm1844_vm6 = vweird.f32 %v3377_v52 }
0x182c   :  { %vm1845_vm9 = vmor %vm1843_vm7, %vm1844_vm6 }
0x182d   :  { %v1840_v59 = vsub.f32 1.0, %v1839_v54 }
0x182f   :  { %v1841_v15 = vmul.f32 %v3377_v52, %v1840_v59 }
0x1831   :  { %v1842_v22 = vadd.f32 %v3377_v52, %v1841_v15 }
0x1833   :  { %v1846_v42 = vsel %vm1845_vm9, %v3377_v52, %v1842_v22 }
0x1834   :  { %v1851_v19 = vsel %vm1848_vm10, %v1850_v44, %v1846_v42 }
0x1835   :  { %v1853_v49 = vmul.f32 2.0, %v1851_v19  ;;  %v1855_v16 = vmul.f32 %v1851_v19, %v4400_v12 }
0x1837   :  { %v3176_v8 = vadd.f32 -1.0, %v1853_v49 }
0x1839   :  { %1857 = vrot.lane.b32.xlu2 %v3176_v8, %s3474_s25 }
0x1841   :  { %2018 = vrot.lane.b32.xlu2 %v2016_v48, %s3473_s30 }
0x1893   :  { %v1858_v24 = vpop.permute.xlu2 %1857 }
0x1894   :  { %v1860_v4 = vmul.f32 %v1858_v24, %v1851_v19 }
0x1896   :  { %1862 = vrot.lane.b32.xlu1 %v1860_v4, %s3473_s30 }
0x189b   :  { %v2019_v17 = vpop.permute.xlu2 %2018 }
0x189c   :  { %v4581_v20 = vadd.f32 %v2019_v17, %v2011_v41 }
0x189e   :  { %3378 = vtanh.f32 %v4581_v20 }
0x18a4   :  { %v3379_v45 = vpop.eup %3378 }
0x18a5   :  { %2024 = vrot.lane.b32.xlu1 %v3379_v45, %s3474_s25 }
0x1908   :  { %v1863_v47 = vpop.permute.xlu1 %1862 }
0x1909   :  { %v4586_v7 = vadd.f32 %v1863_v47, %v1855_v16 }
0x190b   :  { %3380 = vtanh.f32 %v4586_v7 }
0x1911   :  { %v3381_v25 = vpop.eup %3380 }
0x1912   :  { %1868 = vrot.lane.b32.xlu0 %v3381_v25, %s3474_s25 }
0x1917   :  { %v2025_v56 = vpop.permute.xlu1 %2024 }
0x1918   :  { %v2027_v11 = vmul.f32 %v2025_v56, %v2007_v57  ;;  %v1872_v57 = vmul.f32 %v4603_v1, %v4064_v6  ;;  %v4641_v56 = vld [vmem:[%s5204_s23 + $0x18] sm:$0xff] }
0x191a   :  { %v2029_v13 = vsub.f32 %v2027_v11, %v2028_v51  ;;  %2042 = vrot.lane.b32.xlu0 %v4556_v23, %s3473_s30  ;;  %v4647_v51 = vld [vmem:[%s5204_s23 + $0x10] sm:$0xff]  ;;  %v4652_v11 = vld [vmem:[%s5204_s23 + $0x8] sm:$0xff] }
0x191c   :  { %vm2030_vm11 = vcmp.gt.f32.partialorder %v2029_v13, %v3691_v53 }
0x191d   :  { %v4596_v12 = vsel %vm2030_vm11, 1.0, %v3471_v2 }
0x191e   :  { %2067 = vrot.lane.b32.xlu1 %v4596_v12, %s3473_s30 }
0x1984   :  { %v1869_v29 = vpop.permute.xlu0 %1868 }
0x1985   :  { %v1871_v43 = vmul.f32 %v1869_v29, %v1851_v19 }
0x1987   :  { %v4607_v23 = vsub.f32 %v1871_v43, %v1872_v57 }
0x1989   :  { %1884 = vrot.lane.b32.xlu2 %v4607_v23, %s3473_s30 }
0x198c   :  { %v2043_v39 = vpop.permute.xlu0 %2042 }
0x198d   :  { %3188 = vmatmul.msk.f32.vlgmr.msrb.gmra.mxu0 %vm69_vm0, %v2043_v39 }
0x1990   :  { %v2068_v28 = vpop.permute.xlu1 %2067 }
0x19e3   :  { %v1885_v52 = vpop.permute.xlu2 %1884 }
0x19e4   :  { %3178 = vmatmul.msk.f32.vlgmr.msra.gmra.mxu1 %vm69_vm0, %v1885_v52 }
0x19e5   :  { %2284 = vmatpush.msra.mxu1 %v4466_v9 }
0x19e7   :  { %2285 = vmatpush.msra.mxu1 %v4475_v0 }
0x19e9   :  { %2286 = vmatpush.msra.mxu1 %v4482_v32 }
0x19eb   :  { %2287 = vmatpush.msra.mxu1 %v4489_v31 }
0x19ec   :  { %3189 = vmatmul.msk.f32.vlgmr.msrb.gmra.mxu1 %vm69_vm0, %v2068_v28  ;;  %v3203_v28 = vld [vmem:[%s5205_s28 + $0x30] sm:$0xff] }
0x1a0a   :  { %v2063_v9 = vpop.f32.mrf.mxu0 }
0x1a61   :  { %v1905_v54 = vpop.f32.mrf.mxu1 }
0x1a62   :  { %v1906_v59 = vadd.f32 %v4504_v27, %v1905_v54 }
0x1a64   :  { %v4621_v15 = vadd.f32 %v1908_v3, %v1906_v59 }
0x1a66   :  { %3179 = vmatmul.msk.f32.vlgmr.msra.gmra.mxu2 %vm69_vm0, %v4621_v15 }
0x1a67   :  { %2335 = vmatpush.msra.mxu2 %v4641_v56 }
0x1a69   :  { %v2088_v0 = vpop.f32.mrf.mxu1  ;;  %2336 = vmatpush.msra.mxu2 %v4647_v51 }
0x1a6a   :  { %v2089_v5 = vadd.f32 %v2088_v0, %v2063_v9 }
0x1a6b   :  { %2337 = vmatpush.msra.mxu2 %v4652_v11 }
0x1a6c   :  { %v2091_v32 = vadd.f32 %v4302_v46, %v2089_v5 }
0x1a6e   :  { %v3190_v22 = vmul.f32 -1.442695, %v2091_v32  ;;  %3193 = vmatmul.msk.f32.vlgmr.msrb.gmra.mxu2 %vm69_vm0, %v1885_v52  ;;  %v4685_v32 = vld [vmem:[%s5206_s1] ss:$0 sm:$0xff] }
0x1a70   :  { %3382 = vpow2.f32 %v3190_v22 }
0x1a76   :  { %v3383_v31 = vpop.eup %3382 }
0x1a77   :  { %v2095_v44 = vadd.f32 1.0, %v3383_v31 }
0x1a79   :  { %3384 = vrcp.f32 %v2095_v44  ;;  %v2107_v49 = vand.u32 2147483648, %v2095_v44  ;;  %v2105_v55 = vand.u32 2147483647, %v2095_v44  ;;  %vm2101_vm14 = vweird.f32 %v2095_v44 }
0x1a7b   :  { %v2108_v24 = vor.u32 1.1754944e-38, %v2107_v49  ;;  %vm2106_vm1 = vcmp.eq.f32.partialorder %v2105_v55, 8.507059e+37 }
0x1a7f   :  { %v3385_v42 = vpop.eup %3384 }
0x1a80   :  { %v2097_v19 = vmul.f32 %v3385_v42, %v2095_v44  ;;  %vm2102_vm13 = vweird.f32 %v3385_v42  ;;  %v4691_v44 = vld [vmem:[%s5207_s2] ss:$0 sm:$0xff] }
0x1a81   :  { %vm2103_vm15 = vmor %vm2101_vm14, %vm2102_vm13  ;;  %vm1874_vm13 = vcmp.gt.f32.partialorder %v4607_v23, %v4064_v6  ;;  %v4765_v23 = vld [vmem:[%s5179_s5 + $0x18] sm:$0xff] }
0x1a82   :  { %v2098_v38 = vsub.f32 1.0, %v2097_v19  ;;  %2438 = vmatpush.msrb.mxu0 %v4765_v23 }
0x1a84   :  { %v2099_v8 = vmul.f32 %v3385_v42, %v2098_v38 }
0x1a86   :  { %v2100_v48 = vadd.f32 %v3385_v42, %v2099_v8 }
0x1a88   :  { %v2104_v4 = vsel %vm2103_vm15, %v3385_v42, %v2100_v48 }
0x1a89   :  { %v2109_v46 = vsel %vm2106_vm1, %v2108_v24, %v2104_v4 }
0x1a8a   :  { %v2111_v41 = vmul.f32 2.0, %v2109_v46  ;;  %v2113_v29 = vmul.f32 %v2109_v46, %v4546_v10  ;;  %v2130_v10 = vmul.f32 %v4561_v30, %v3775_v40 }
0x1a8c   :  { %v3191_v17 = vadd.f32 -1.0, %v2111_v41 }
0x1a8e   :  { %2115 = vrot.lane.b32.xlu2 %v3191_v17, %s3474_s25 }
0x1ae8   :  { %v2116_v45 = vpop.permute.xlu2 %2115 }
0x1ae9   :  { %v2118_v16 = vmul.f32 %v2116_v45, %v2109_v46  ;;  %v1934_v47 = vpop.f32.mrf.mxu2 }
0x1aea   :  { %v4629_v25 = vadd.f32 %v4532_v34, %v1934_v47 }
0x1aeb   :  { %2120 = vrot.lane.b32.xlu0 %v2118_v16, %s3473_s30 }
0x1aec   :  { %3180 = vst.msk [vmem:[%s5193_s19 + $0x20] sm:$0xff] %vm77_vm8, %v4629_v25 }
0x1af1   :  { %v2160_v0 = vpop.f32.mrf.mxu2 }
0x1af3   :  { %2319 = vrot.lane.b32.xlu0 %v2029_v13, %s3473_s30  ;;  %v4658_v13 = vld [vmem:[%s5204_s23] sm:$0xff]  ;;  %s3073_s23 = sshll.u32 %s5194_s20, 4  ;;  %s3074_s23 = int_to_ptr.hbm [resolvable:$true] %s3073_s23 }
0x1af4   :  { %2338 = vmatpush.msra.mxu2 %v4658_v13 }
0x1b5d   :  { %v2121_v57 = vpop.permute.xlu0 %2120 }
0x1b5e   :  { %v4663_v43 = vadd.f32 %v2121_v57, %v2113_v29 }
0x1b60   :  { %3386 = vtanh.f32 %v4663_v43 }
0x1b65   :  { %v2320_v39 = vpop.permute.xlu0 %2319 }
0x1b66   :  { %v3387_v52 = vpop.eup %3386  ;;  %3204 = vmatmul.msk.f32.vlgmr.msra.gmra.mxu2 %vm69_vm0, %v2320_v39 }
0x1b67   :  { %2126 = vrot.lane.b32.xlu1 %v3387_v52, %s3474_s25 }
0x1b6f   :  { %2310 = vperm.xlu1 %3254, %v3203_v28  }
0x1bd9   :  { %v2127_v54 = vpop.permute.xlu1 %2126 }
0x1bda   :  { %v2129_v59 = vmul.f32 %v2127_v54, %v2109_v46 }
0x1bdc   :  { %v4673_v3 = vsub.f32 %v2129_v59, %v2130_v10 }
0x1bde   :  { %vm2132_vm2 = vcmp.gt.f32.partialorder %v4673_v3, %v3775_v40 }
0x1bdf   :  { %v4678_v9 = vsel %vm2132_vm2, 1.0, %v3471_v2 }
0x1be0   :  { %2164 = vrot.lane.b32.xlu2 %v4678_v9, %s3473_s30 }
0x1be1   :  { %v2311_v5 = vpop.permute.xlu1 %2310 }
0x1be2   :  { %v2313_v30 = vmul.f32 %v4685_v32, %v2311_v5 }
0x1be9   :  { %v2340_v22 = vpop.f32.mrf.mxu2 }
0x1bea   :  { %v2343_v31 = vadd.f32 %v2340_v22, %v2313_v30 }
0x1bec   :  { %v2344_v42 = vadd.f32 %v4691_v44, %v2343_v31 }
0x1bee   :  { %v3205_v19 = vmul.f32 -1.442695, %v2344_v42 }
0x1bf0   :  { %3388 = vpow2.f32 %v3205_v19 }
0x1bf6   :  { %v3389_v38 = vpop.eup %3388 }
0x1bf7   :  { %v2348_v49 = vadd.f32 1.0, %v3389_v38 }
0x1bf9   :  { %3390 = vrcp.f32 %v2348_v49  ;;  %v2360_v24 = vand.u32 2147483648, %v2348_v49  ;;  %v2358_v46 = vand.u32 2147483647, %v2348_v49  ;;  %vm2354_vm4 = vweird.f32 %v2348_v49 }
0x1bfb   :  { %v2361_v17 = vor.u32 1.1754944e-38, %v2360_v24  ;;  %vm2359_vm6 = vcmp.eq.f32.partialorder %v2358_v46, 8.507059e+37 }
0x1bff   :  { %v3391_v8 = vpop.eup %3390 }
0x1c00   :  { %v2350_v55 = vmul.f32 %v3391_v8, %v2348_v49  ;;  %vm2355_vm3 = vweird.f32 %v3391_v8 }
0x1c01   :  { %vm2356_vm5 = vmor %vm2354_vm4, %vm2355_vm3 }
0x1c02   :  { %v2351_v48 = vsub.f32 1.0, %v2350_v55 }
0x1c04   :  { %v2352_v4 = vmul.f32 %v3391_v8, %v2351_v48 }
0x1c06   :  { %v2353_v41 = vadd.f32 %v3391_v8, %v2352_v4 }
0x1c08   :  { %v2357_v45 = vsel %vm2356_vm5, %v3391_v8, %v2353_v41 }
0x1c09   :  { %v2362_v16 = vsel %vm2359_vm6, %v2361_v17, %v2357_v45 }
0x1c0a   :  { %v2364_v47 = vmul.f32 2.0, %v2362_v16  ;;  %v2366_v41 = vmul.f32 %v2362_v16, %v4581_v20  ;;  %v2383_v20 = vmul.f32 %v4596_v12, %v3691_v53  ;;  %v4735_v12 = vld [vmem:[%s5180_s6 + $0x10] sm:$0xff] }
0x1c0c   :  { %v3206_v29 = vadd.f32 -1.0, %v2364_v47 }
0x1c0e   :  { %2368 = vrot.lane.b32.xlu0 %v3206_v29, %s3474_s25 }
0x1c3a   :  { %v4695_v57 = vpop.permute.xlu2 %2164 }
0x1c3b   :  { %3194 = vmatmul.msk.f32.vlgmr.msrb.gmra.mxu3 %vm69_vm0, %v4695_v57 }
0x1c80   :  { %v2369_v48 = vpop.permute.xlu0 %2368 }
0x1c81   :  { %v2371_v24 = vmul.f32 %v2369_v48, %v2362_v16  ;;  %v4791_v48 = vld [vmem:[%s5184_s10 + $0x18] sm:$0xff] }
0x1c82   :  { %2510 = vmatpush.msrb.mxu1 %v4791_v48 }
0x1cbe   :  { %v2185_v39 = vpop.f32.mrf.mxu3 }
0x1cbf   :  { %v2186_v52 = vadd.f32 %v2185_v39, %v2160_v0 }
0x1cc1   :  { %v2188_v28 = vadd.f32 %v4386_v62, %v2186_v52 }
0x1cc3   :  { %v3195_v54 = vmul.f32 -1.442695, %v2188_v28 }
0x1cc5   :  { %3392 = vpow2.f32 %v3195_v54 }
0x1ccb   :  { %v3393_v10 = vpop.eup %3392 }
0x1ccc   :  { %v2192_v59 = vadd.f32 1.0, %v3393_v10 }
0x1cce   :  { %3394 = vrcp.f32 %v2192_v59  ;;  %v2204_v31 = vand.u32 2147483648, %v2192_v59  ;;  %v2202_v19 = vand.u32 2147483647, %v2192_v59  ;;  %vm2198_vm9 = vweird.f32 %v2192_v59 }
0x1cd0   :  { %v2205_v49 = vor.u32 1.1754944e-38, %v2204_v31  ;;  %vm2203_vm11 = vcmp.eq.f32.partialorder %v2202_v19, 8.507059e+37 }
0x1cd4   :  { %v3395_v5 = vpop.eup %3394 }
0x1cd5   :  { %v2194_v30 = vmul.f32 %v3395_v5, %v2192_v59  ;;  %vm2199_vm7 = vweird.f32 %v3395_v5 }
0x1cd6   :  { %vm2200_vm10 = vmor %vm2198_vm9, %vm2199_vm7 }
0x1cd7   :  { %v2195_v22 = vsub.f32 1.0, %v2194_v30  ;;  %v4753_v30 = vsel %vm1874_vm13, 1.0, %v3471_v2 }
0x1cd8   :  { %v2227_v31 = vmul.f32 %v4753_v30, %v4064_v6 }
0x1cd9   :  { %v2196_v42 = vmul.f32 %v3395_v5, %v2195_v22 }
0x1cdb   :  { %v2197_v38 = vadd.f32 %v3395_v5, %v2196_v42 }
0x1cdd   :  { %v2201_v8 = vsel %vm2200_vm10, %v3395_v5, %v2197_v38  ;;  %v4729_v5 = vld [vmem:[%s5180_s6 + $0x18] sm:$0xff] }
0x1cde   :  { %v2206_v0 = vsel %vm2203_vm11, %v2205_v49, %v2201_v8  ;;  %2413 = vmatpush.msra.mxu3 %v4729_v5  ;;  %v4770_v49 = vld [vmem:[%s5179_s5 + $0x10] sm:$0xff]  ;;  %v4776_v8 = vld [vmem:[%s5179_s5 + $0x8] sm:$0xff] }
0x1cdf   :  { %v2208_v62 = vmul.f32 2.0, %v2206_v0  ;;  %v2210_v29 = vmul.f32 %v2206_v0, %v4586_v7  ;;  %2439 = vmatpush.msrb.mxu0 %v4770_v49 }
0x1ce0   :  { %2414 = vmatpush.msra.mxu3 %v4735_v12 }
0x1ce1   :  { %v3196_v55 = vadd.f32 -1.0, %v2208_v62  ;;  %2440 = vmatpush.msrb.mxu0 %v4776_v8 }
0x1ce3   :  { %2212 = vrot.lane.b32.xlu2 %v3196_v55, %s3474_s25 }
0x1ceb   :  { %2373 = vrot.lane.b32.xlu2 %v2371_v24, %s3473_s30  ;;  %v4797_v24 = vld [vmem:[%s5184_s10 + $0x10] sm:$0xff] }
0x1cec   :  { %2511 = vmatpush.msrb.mxu1 %v4797_v24 }
0x1d3d   :  { %v2213_v4 = vpop.permute.xlu2 %2212 }
0x1d3e   :  { %v2215_v46 = vmul.f32 %v2213_v4, %v2206_v0  ;;  %v4803_v4 = vld [vmem:[%s5184_s10 + $0x8] sm:$0xff] }
0x1d3f   :  { %2512 = vmatpush.msrb.mxu1 %v4803_v4 }
0x1d40   :  { %2217 = vrot.lane.b32.xlu1 %v2215_v46, %s3473_s30  ;;  %v4809_v46 = vld [vmem:[%s5184_s10] sm:$0xff] }
0x1d41   :  { %2513 = vmatpush.msrb.mxu1 %v4809_v46 }
0x1d45   :  { %v2374_v17 = vpop.permute.xlu2 %2373 }
0x1d46   :  { %v4704_v45 = vadd.f32 %v2374_v17, %v2366_v41 }
0x1d48   :  { %3396 = vtanh.f32 %v4704_v45 }
0x1d4e   :  { %v3397_v47 = vpop.eup %3396 }
0x1d4f   :  { %2379 = vrot.lane.b32.xlu1 %v3397_v47, %s3474_s25  ;;  %v2263_v47 = vmul.f32 %v4510_v58, %v4621_v15 }
0x1db2   :  { %v2218_v39 = vpop.permute.xlu1 %2217 }
0x1db3   :  { %v4709_v52 = vadd.f32 %v2218_v39, %v2210_v29 }
0x1db5   :  { %3398 = vtanh.f32 %v4709_v52 }
0x1dbb   :  { %v3399_v28 = vpop.eup %3398 }
0x1dbc   :  { %2223 = vrot.lane.b32.xlu0 %v3399_v28, %s3474_s25 }
0x1dc1   :  { %v2380_v54 = vpop.permute.xlu1 %2379 }
0x1dc2   :  { %v2382_v10 = vmul.f32 %v2380_v54, %v2362_v16  ;;  %v4746_v16 = vld [vmem:[%s5180_s6] sm:$0xff] }
0x1dc4   :  { %v4715_v59 = vsub.f32 %v2382_v10, %v2383_v20  ;;  %2397 = vrot.lane.b32.xlu0 %v4673_v3, %s3473_s30  ;;  %v4741_v3 = vld [vmem:[%s5180_s6 + $0x8] sm:$0xff] }
0x1dc5   :  { %2415 = vmatpush.msra.mxu3 %v4741_v3 }
0x1dc6   :  { %vm2385_vm12 = vcmp.gt.f32.partialorder %v4715_v59, %v3691_v53 }
0x1dc7   :  { %v4722_v7 = vsel %vm2385_vm12, 1.0, %v3471_v2  ;;  %2416 = vmatpush.msra.mxu3 %v4746_v16 }
0x1dc8   :  { %2422 = vrot.lane.b32.xlu1 %v4722_v7, %s3473_s30 }
0x1e2e   :  { %v2224_v22 = vpop.permute.xlu0 %2223 }
0x1e2f   :  { %v2226_v42 = vmul.f32 %v2224_v22, %v2206_v0  ;;  %v4782_v0 = vld [vmem:[%s5179_s5] sm:$0xff] }
0x1e30   :  { %2441 = vmatpush.msrb.mxu0 %v4782_v0 }
0x1e31   :  { %v4757_v19 = vsub.f32 %v2226_v42, %v2227_v31 }
0x1e33   :  { %2239 = vrot.lane.b32.xlu2 %v4757_v19, %s3473_s30 }
0x1e36   :  { %v2398_v38 = vpop.permute.xlu0 %2397 }
0x1e37   :  { %3208 = vmatmul.msk.f32.vlgmr.msra.gmra.mxu3 %vm69_vm0, %v2398_v38 }
0x1e3a   :  { %v2423_v55 = vpop.permute.xlu1 %2422 }
0x1e8d   :  { %v2240_v62 = vpop.permute.xlu2 %2239 }
0x1e8e   :  { %3198 = vmatmul.msk.f32.vlgmr.msra.gmra.mxu0 %vm69_vm0, %v2240_v62 }
0x1e96   :  { %3209 = vmatmul.msk.f32.vlgmr.msrb.gmra.mxu0 %vm69_vm0, %v2423_v55 }
0x1eba   :  { %v2418_v39 = vpop.f32.mrf.mxu3 }
0x1f0b   :  { %v2260_v41 = vpop.f32.mrf.mxu0 }
0x1f0c   :  { %v2261_v17 = vadd.f32 %v4504_v27, %v2260_v41  ;;  %v4825_v27 = vld [vmem:[%s5181_s7] ss:$0 sm:$0xff] }
0x1f0e   :  { %v4815_v29 = vadd.f32 %v2263_v47, %v2261_v17  ;;  %v4834_v47 = vld [vmem:[%s5192_s18] ss:$0 sm:$0xff] }
0x1f10   :  { %3199 = vmatmul.msk.f32.vlgmr.msra.gmra.mxu1 %vm69_vm0, %v4815_v29 }
0x1f11   :  { %2690 = vmatpush.msra.mxu1 %v4641_v56 }
0x1f13   :  { %v2443_v28 = vpop.f32.mrf.mxu0  ;;  %2691 = vmatpush.msra.mxu1 %v4647_v51 }
0x1f14   :  { %v2444_v54 = vadd.f32 %v2443_v28, %v2418_v39  ;;  %v1582_v39 = vmul.f32 %v4834_v47, %v4311_v14 }
0x1f15   :  { %2692 = vmatpush.msra.mxu1 %v4652_v11 }
0x1f16   :  { %v2446_v58 = vadd.f32 %v4825_v27, %v2444_v54  ;;  %v4839_v28 = vadd.f32 %v1582_v39, %v4535_v61 }
0x1f17   :  { %2693 = vmatpush.msra.mxu1 %v4658_v13 }
0x1f18   :  { %v3210_v15 = vmul.f32 -1.442695, %v2446_v58  ;;  %3213 = vmatmul.msk.f32.vlgmr.msrb.gmra.mxu1 %vm69_vm0, %v2240_v62  ;;  %v1937_v54 = vmul.f32 %v4834_v47, %v4839_v28 }
0x1f1a   :  { %3400 = vpow2.f32 %v3210_v15  ;;  %v4844_v58 = vadd.f32 %v1937_v54, %v4629_v25 }
0x1f20   :  { %v3401_v56 = vpop.eup %3400 }
0x1f21   :  { %v2450_v20 = vadd.f32 1.0, %v3401_v56 }
0x1f23   :  { %3402 = vrcp.f32 %v2450_v20  ;;  %v2462_v11 = vand.u32 2147483648, %v2450_v20  ;;  %v2460_v42 = vand.u32 2147483647, %v2450_v20  ;;  %vm2456_vm15 = vweird.f32 %v2450_v20 }
0x1f25   :  { %v2463_v55 = vor.u32 1.1754944e-38, %v2462_v11  ;;  %vm2461_vm2 = vcmp.eq.f32.partialorder %v2460_v42, 8.507059e+37  ;;  %v3223_v42 = vld [vmem:[%s5205_s28 + $0x38] sm:$0xff] }
0x1f29   :  { %v3403_v51 = vpop.eup %3402 }
0x1f2a   :  { %v2452_v10 = vmul.f32 %v3403_v51, %v2450_v20  ;;  %vm2457_vm14 = vweird.f32 %v3403_v51  ;;  %v2292_v20 = vmul.f32 %v4834_v47, %v4844_v58 }
0x1f2b   :  { %vm2458_vm1 = vmor %vm2456_vm15, %vm2457_vm14  ;;  %vm2229_vm14 = vcmp.gt.f32.partialorder %v4757_v19, %v4064_v6 }
0x1f2c   :  { %v2453_v22 = vsub.f32 1.0, %v2452_v10 }
0x1f2e   :  { %v2454_v31 = vmul.f32 %v3403_v51, %v2453_v22 }
0x1f30   :  { %v2455_v38 = vadd.f32 %v3403_v51, %v2454_v31 }
0x1f32   :  { %v2459_v41 = vsel %vm2458_vm1, %v3403_v51, %v2455_v38 }
0x1f33   :  { %v2464_v13 = vsel %vm2461_vm2, %v2463_v55, %v2459_v41 }
0x1f34   :  { %v2466_v17 = vmul.f32 2.0, %v2464_v13  ;;  %v2468_v25 = vmul.f32 %v2464_v13, %v4663_v43  ;;  %v2485_v43 = vmul.f32 %v4678_v9, %v3775_v40 }
0x1f36   :  { %v3211_v62 = vadd.f32 -1.0, %v2466_v17 }
0x1f38   :  { %2470 = vrot.lane.b32.xlu2 %v3211_v62, %s3474_s25 }
0x1f8d   :  { %v2289_v15 = vpop.f32.mrf.mxu1 }
0x1f8e   :  { %v2290_v56 = vadd.f32 %v4532_v34, %v2289_v15 }
0x1f90   :  { %v4849_v51 = vadd.f32 %v2292_v20, %v2290_v56  ;;  %3200 = vst.msk [vmem:[%s5193_s19 + $0x28] sm:$0xff] %vm77_vm8, %v2290_v56  ;;  %v2493_v56 = vld [vmem:[%s5183_s9 + $0x18] sm:$0xff]  ;;  %v2492_v20 = vld [vmem:[%s5183_s9 + $0x10] sm:$0xff] }
0x1f91   :  { %2535 = vmatpush.msrb.mxu2 %v2493_v56  ;;  %2890 = vmatpush.msrb.mxu1 %v2493_v56 }
0x1f92   :  { %v2471_v61 = vpop.permute.xlu2 %2470 }
0x1f93   :  { %v2473_v10 = vmul.f32 %v2471_v61, %v2464_v13  ;;  %2536 = vmatpush.msrb.mxu2 %v2492_v20  ;;  %2891 = vmatpush.msrb.mxu1 %v2492_v20 }
0x1f95   :  { %2475 = vrot.lane.b32.xlu0 %v2473_v10, %s3473_s30  ;;  %v2515_v55 = vpop.f32.mrf.mxu1 }
0x1f9d   :  { %2674 = vrot.lane.b32.xlu0 %v4715_v59, %s3473_s30 }
0x2007   :  { %v2476_v34 = vpop.permute.xlu0 %2475 }
0x2008   :  { %v4859_v22 = vadd.f32 %v2476_v34, %v2468_v25 }
0x200a   :  { %3404 = vtanh.f32 %v4859_v22 }
0x200f   :  { %v2675_v11 = vpop.permute.xlu0 %2674 }
0x2010   :  { %v3405_v31 = vpop.eup %3404  ;;  %3224 = vmatmul.msk.f32.vlgmr.msra.gmra.mxu1 %vm69_vm0, %v2675_v11 }
0x2011   :  { %2481 = vrot.lane.b32.xlu1 %v3405_v31, %s3474_s25 }
0x2019   :  { %2665 = vperm.xlu1 %3254, %v3223_v42  }
0x2083   :  { %v2482_v38 = vpop.permute.xlu1 %2481 }
0x2084   :  { %v2484_v59 = vmul.f32 %v2482_v38, %v2464_v13 }
0x2086   :  { %v4869_v41 = vsub.f32 %v2484_v59, %v2485_v43 }
0x2088   :  { %vm2487_vm3 = vcmp.gt.f32.partialorder %v4869_v41, %v3775_v40 }
0x2089   :  { %v4874_v17 = vsel %vm2487_vm3, 1.0, %v3471_v2 }
0x208a   :  { %2519 = vrot.lane.b32.xlu2 %v4874_v17, %s3473_s30 }
0x208b   :  { %v2666_v62 = vpop.permute.xlu1 %2665 }
0x208c   :  { %v2668_v39 = vmul.f32 %v4685_v32, %v2666_v62  ;;  %v2491_v32 = vld [vmem:[%s5183_s9 + $0x8] sm:$0xff] }
0x208d   :  { %v2695_v54 = vpop.f32.mrf.mxu1  ;;  %2537 = vmatpush.msrb.mxu2 %v2491_v32  ;;  %2892 = vmatpush.msrb.mxu1 %v2491_v32 }
0x208e   :  { %v2698_v15 = vadd.f32 %v2695_v54, %v2668_v39 }
0x2090   :  { %v2699_v9 = vadd.f32 %v4691_v44, %v2698_v15  ;;  %v2490_v44 = vld [vmem:[%s5183_s9] sm:$0xff] }
0x2091   :  { %2538 = vmatpush.msrb.mxu2 %v2490_v44  ;;  %2893 = vmatpush.msrb.mxu1 %v2490_v44  ;;  %v4904_v15 = vld [vmem:[%s5185_s11] ss:$0 sm:$0xff] }
0x2092   :  { %v3225_v13 = vmul.f32 -1.442695, %v2699_v9 }
0x2093   :  { %2768 = vmatpush.msra.mxu2 %v4729_v5 }
0x2094   :  { %3406 = vpow2.f32 %v3225_v13 }
0x2095   :  { %2769 = vmatpush.msra.mxu2 %v4735_v12 }
0x2097   :  { %2770 = vmatpush.msra.mxu2 %v4741_v3 }
0x2099   :  { %2771 = vmatpush.msra.mxu2 %v4746_v16 }
0x209a   :  { %v3407_v61 = vpop.eup %3406 }
0x209b   :  { %v2703_v10 = vadd.f32 1.0, %v3407_v61 }
0x209d   :  { %3408 = vrcp.f32 %v2703_v10  ;;  %v2715_v31 = vand.u32 2147483648, %v2703_v10  ;;  %v2713_v38 = vand.u32 2147483647, %v2703_v10  ;;  %vm2709_vm5 = vweird.f32 %v2703_v10 }
0x209f   :  { %v2716_v59 = vor.u32 1.1754944e-38, %v2715_v31  ;;  %vm2714_vm7 = vcmp.eq.f32.partialorder %v2713_v38, 8.507059e+37 }
0x20a3   :  { %v3409_v25 = vpop.eup %3408 }
0x20a4   :  { %v2705_v34 = vmul.f32 %v3409_v25, %v2703_v10  ;;  %vm2710_vm4 = vweird.f32 %v3409_v25 }
0x20a5   :  { %vm2711_vm6 = vmor %vm2709_vm5, %vm2710_vm4 }
0x20a6   :  { %v2706_v11 = vsub.f32 1.0, %v2705_v34 }
0x20a8   :  { %v2707_v42 = vmul.f32 %v3409_v25, %v2706_v11 }
0x20aa   :  { %v2708_v43 = vadd.f32 %v3409_v25, %v2707_v42 }
0x20ac   :  { %v2712_v5 = vsel %vm2711_vm6, %v3409_v25, %v2708_v43 }
0x20ad   :  { %v2717_v62 = vsel %vm2714_vm7, %v2716_v59, %v2712_v5 }
0x20ae   :  { %v2719_v12 = vmul.f32 2.0, %v2717_v62 }
0x20b0   :  { %v3226_v39 = vadd.f32 -1.0, %v2719_v12 }
0x20b2   :  { %2723 = vrot.lane.b32.xlu0 %v3226_v39, %s3474_s25 }
0x20e4   :  { %v4897_v3 = vpop.permute.xlu2 %2519 }
0x20e5   :  { %3214 = vmatmul.msk.f32.vlgmr.msrb.gmra.mxu2 %vm69_vm0, %v4897_v3 }
0x2124   :  { %v2724_v59 = vpop.permute.xlu0 %2723 }
0x2125   :  { %v2726_v5 = vmul.f32 %v2724_v59, %v2717_v62 }
0x2168   :  { %v2540_v16 = vpop.f32.mrf.mxu2 }
0x2169   :  { %v2541_v54 = vadd.f32 %v2540_v16, %v2515_v55  ;;  %v2721_v16 = vmul.f32 %v2717_v62, %v4704_v45  ;;  %v2738_v45 = vmul.f32 %v4722_v7, %v3691_v53  ;;  %v2591_v7 = vld [vmem:[%s5187_s13 + $0x10] sm:$0xff] }
0x216b   :  { %v2543_v9 = vadd.f32 %v4904_v15, %v2541_v54 }
0x216d   :  { %v3215_v13 = vmul.f32 -1.442695, %v2543_v9 }
0x216f   :  { %3410 = vpow2.f32 %v3215_v13 }
0x2175   :  { %v3411_v56 = vpop.eup %3410 }
0x2176   :  { %v2547_v20 = vadd.f32 1.0, %v3411_v56 }
0x2178   :  { %3412 = vrcp.f32 %v2547_v20  ;;  %v2559_v10 = vand.u32 2147483648, %v2547_v20  ;;  %v2557_v34 = vand.u32 2147483647, %v2547_v20  ;;  %vm2553_vm10 = vweird.f32 %v2547_v20 }
0x217a   :  { %v2560_v11 = vor.u32 1.1754944e-38, %v2559_v10  ;;  %vm2558_vm12 = vcmp.eq.f32.partialorder %v2557_v34, 8.507059e+37  ;;  %v2592_v34 = vld [vmem:[%s5187_s13 + $0x18] sm:$0xff] }
0x217b   :  { %2610 = vmatpush.msrb.mxu3 %v2592_v34  ;;  %2965 = vmatpush.msrb.mxu2 %v2592_v34 }
0x217d   :  { %2611 = vmatpush.msrb.mxu3 %v2591_v7  ;;  %2966 = vmatpush.msrb.mxu2 %v2591_v7 }
0x217e   :  { %v3413_v32 = vpop.eup %3412 }
0x217f   :  { %v2549_v44 = vmul.f32 %v3413_v32, %v2547_v20  ;;  %vm2554_vm9 = vweird.f32 %v3413_v32 }
0x2180   :  { %vm2555_vm11 = vmor %vm2553_vm10, %vm2554_vm9  ;;  %vm3049_vm10 = vcmask 254976  }
0x2181   :  { %v2550_v61 = vsub.f32 1.0, %v2549_v44 }
0x2183   :  { %v2551_v25 = vmul.f32 %v3413_v32, %v2550_v61 }
0x2185   :  { %v2552_v55 = vadd.f32 %v3413_v32, %v2551_v25 }
0x2187   :  { %v2556_v31 = vsel %vm2555_vm11, %v3413_v32, %v2552_v55 }
0x2188   :  { %v2561_v42 = vsel %vm2558_vm12, %v2560_v11, %v2556_v31 }
0x2189   :  { %v2563_v38 = vmul.f32 2.0, %v2561_v42  ;;  %v2565_v56 = vmul.f32 %v2561_v42, %v4709_v52 }
0x218b   :  { %v3216_v43 = vadd.f32 -1.0, %v2563_v38 }
0x218d   :  { %2567 = vrot.lane.b32.xlu2 %v3216_v43, %s3474_s25  ;;  %v2620_v43 = vld [vmem:[%s5190_s16] sm:$0xff] }
0x2195   :  { %2728 = vrot.lane.b32.xlu2 %v2726_v5, %s3473_s30  ;;  %v4979_v5 = vld [vmem:[%s5188_s14] ss:$0 sm:$0xff] }
0x21e7   :  { %v2568_v12 = vpop.permute.xlu2 %2567 }
0x21e8   :  { %v2570_v39 = vmul.f32 %v2568_v12, %v2561_v42 }
0x21ea   :  { %2572 = vrot.lane.b32.xlu1 %v2570_v39, %s3473_s30  ;;  %v4985_v39 = vld [vmem:[%s5189_s15] ss:$0 sm:$0xff] }
0x21ef   :  { %v2729_v54 = vpop.permute.xlu2 %2728 }
0x21f0   :  { %v4911_v9 = vadd.f32 %v2729_v54, %v2721_v16 }
0x21f2   :  { %3414 = vtanh.f32 %v4911_v9 }
0x21f8   :  { %v3415_v13 = vpop.eup %3414 }
0x21f9   :  { %2734 = vrot.lane.b32.xlu1 %v3415_v13, %s3474_s25 }
0x225c   :  { %v2573_v20 = vpop.permute.xlu1 %2572 }
0x225d   :  { %v4916_v32 = vadd.f32 %v2573_v20, %v2565_v56 }
0x225f   :  { %3416 = vtanh.f32 %v4916_v32 }
0x2265   :  { %v3417_v44 = vpop.eup %3416 }
0x2266   :  { %2578 = vrot.lane.b32.xlu0 %v3417_v44, %s3474_s25 }
0x226b   :  { %v2735_v61 = vpop.permute.xlu1 %2734 }
0x226c   :  { %v2737_v10 = vmul.f32 %v2735_v61, %v2717_v62  ;;  %v4949_v62 = vsel %vm2229_vm14, 1.0, %v3471_v2  ;;  %vm523_vm14 = vcmask 64544  }
0x226d   :  { %v2582_v11 = vmul.f32 %v4949_v62, %v4064_v6 }
0x226e   :  { %v4922_v25 = vsub.f32 %v2737_v10, %v2738_v45  ;;  %2752 = vrot.lane.b32.xlu0 %v4869_v41, %s3473_s30  ;;  %v2590_v41 = vld [vmem:[%s5187_s13 + $0x8] sm:$0xff] }
0x226f   :  { %2612 = vmatpush.msrb.mxu3 %v2590_v41  ;;  %2967 = vmatpush.msrb.mxu2 %v2590_v41 }
0x2270   :  { %vm2740_vm13 = vcmp.gt.f32.partialorder %v4922_v25, %v3691_v53  ;;  %v2589_v53 = vld [vmem:[%s5187_s13] sm:$0xff] }
0x2271   :  { %v3227_v52 = vsel %vm2740_vm13, 1.0, %v3471_v2  ;;  %2613 = vmatpush.msrb.mxu3 %v2589_v53  ;;  %2968 = vmatpush.msrb.mxu2 %v2589_v53  ;;  %vm3062_vm13 = vcmask 0  }
0x2272   :  { %2777 = vrot.lane.b32.xlu1 %v3227_v52, %s3473_s30 }
0x2273   :  { %2793 = vmatpush.msra.mxu3 %v4765_v23 }
0x2275   :  { %2794 = vmatpush.msra.mxu3 %v4770_v49 }
0x2277   :  { %2795 = vmatpush.msra.mxu3 %v4776_v8  ;;  %v2623_v8 = vld [vmem:[%s5190_s16 + $0x18] sm:$0xff] }
0x2278   :  { %2639 = vmatpush.msra.mxu0 %v2623_v8 }
0x2279   :  { %2796 = vmatpush.msra.mxu3 %v4782_v0  ;;  %v2622_v0 = vld [vmem:[%s5190_s16 + $0x10] sm:$0xff] }
0x227a   :  { %2640 = vmatpush.msra.mxu0 %v2622_v0 }
0x22d8   :  { %v2579_v55 = vpop.permute.xlu0 %2578 }
0x22d9   :  { %v2581_v31 = vmul.f32 %v2579_v55, %v2561_v42  ;;  %v2621_v42 = vld [vmem:[%s5190_s16 + $0x8] sm:$0xff] }
0x22da   :  { %2641 = vmatpush.msra.mxu0 %v2621_v42 }
0x22db   :  { %v4953_v38 = vsub.f32 %v2581_v31, %v2582_v11  ;;  %v4999_v31 = vld [vmem:[%s5191_s17] ss:$0 sm:$0xff]  ;;  %s3476_s17 = smov 4  }
0x22dc   :  { %2642 = vmatpush.msra.mxu0 %v2620_v43 }
0x22dd   :  { %2594 = vrot.lane.b32.xlu2 %v4953_v38, %s3473_s30  ;;  %vm2584_vm11 = vcmp.gt.f32.partialorder %v4953_v38, %v4064_v6 }
0x22de   :  { %2865 = vmatpush.msrb.mxu0 %v4791_v48  ;;  %v2618_v48 = vmul.f32 %v4985_v39, %v4815_v29 }
0x22e0   :  { %v2753_v23 = vpop.permute.xlu0 %2752  ;;  %2866 = vmatpush.msrb.mxu0 %v4797_v24 }
0x22e1   :  { %3228 = vmatmul.msk.f32.vlgmr.msra.gmra.mxu2 %vm69_vm0, %v2753_v23 }
0x22e2   :  { %2867 = vmatpush.msrb.mxu0 %v4803_v4 }
0x22e4   :  { %v2778_v19 = vpop.permute.xlu1 %2777  ;;  %2868 = vmatpush.msrb.mxu0 %v4809_v46 }
0x2337   :  { %v2595_v49 = vpop.permute.xlu2 %2594 }
0x2338   :  { %3218 = vmatmul.msk.f32.vlgmr.msrb.gmra.mxu3 %vm69_vm0, %v2595_v49 }
0x2339   :  { %2994 = vmatpush.msrb.mxu3 %v2623_v8 }
0x233b   :  { %2995 = vmatpush.msrb.mxu3 %v2622_v0 }
0x233d   :  { %2996 = vmatpush.msrb.mxu3 %v2621_v42 }
0x233f   :  { %2997 = vmatpush.msrb.mxu3 %v2620_v43 }
0x2340   :  { %3229 = vmatmul.msk.f32.vlgmr.msra.gmra.mxu3 %vm69_vm0, %v2778_v19 }
0x2364   :  { %v2773_v4 = vpop.f32.mrf.mxu2 }
0x23bb   :  { %v2615_v59 = vpop.f32.mrf.mxu3 }
0x23bc   :  { %v2616_v12 = vadd.f32 %v4979_v5, %v2615_v59 }
0x23be   :  { %v4989_v24 = vadd.f32 %v2618_v48, %v2616_v12  ;;  %v2840_v12 = vmul.f32 %v4874_v17, %v3775_v40 }
0x23c0   :  { %3219 = vmatmul.msk.f32.vlgmr.msra.gmra.mxu0 %vm69_vm0, %v4989_v24 }
0x23c3   :  { %v2798_v46 = vpop.f32.mrf.mxu3 }
0x23c4   :  { %v2799_v16 = vadd.f32 %v2798_v46, %v2773_v4  ;;  %v132_v46 = vld [vmem:[#allocation10] sm:$0xff] }
0x23c6   :  { %v2801_v54 = vadd.f32 %v4825_v27, %v2799_v16  ;;  %v456_v16 = vadd.f32 %v3833_v60, %v132_v46  ;;  %v2647_v46 = vmul.f32 %v4834_v47, %v4849_v51 }
0x23c8   :  { %v3230_v13 = vmul.f32 -1.442695, %v2801_v54  ;;  %3233 = vmatmul.msk.f32.vlgmr.msrb.gmra.mxu0 %vm69_vm0, %v2595_v49  ;;  %v813_v54 = vadd.f32 %v4029_v26, %v456_v16 }
0x23ca   :  { %3418 = vpow2.f32 %v3230_v13  ;;  %v1168_v13 = vadd.f32 %v4172_v36, %v813_v54 }
0x23d0   :  { %v3419_v56 = vpop.eup %3418 }
0x23d1   :  { %v2805_v20 = vadd.f32 1.0, %v3419_v56  ;;  %v1523_v56 = vadd.f32 %v4379_v21, %v1168_v13 }
0x23d3   :  { %3420 = vrcp.f32 %v2805_v20  ;;  %v2817_v45 = vand.u32 2147483648, %v2805_v20  ;;  %v2815_v52 = vand.u32 2147483647, %v2805_v20  ;;  %vm2811_vm1 = vweird.f32 %v2805_v20 }
0x23d4   :  { %v1878_v17 = vadd.f32 %v4568_v63, %v1523_v56 }
0x23d5   :  { %v2818_v7 = vor.u32 1.1754944e-38, %v2817_v45  ;;  %vm2816_vm3 = vcmp.eq.f32.partialorder %v2815_v52, 8.507059e+37 }
0x23d9   :  { %v3421_v44 = vpop.eup %3420 }
0x23da   :  { %v2807_v61 = vmul.f32 %v3421_v44, %v2805_v20  ;;  %vm2812_vm15 = vweird.f32 %v3421_v44  ;;  %v2233_v20 = vadd.f32 %v4695_v57, %v1878_v17 }
0x23db   :  { %vm2813_vm2 = vmor %vm2811_vm1, %vm2812_vm15  ;;  %vm529_vm15 = vcmask 326720  }
0x23dc   :  { %v2808_v29 = vsub.f32 1.0, %v2807_v61 }
0x23de   :  { %v2809_v10 = vmul.f32 %v3421_v44, %v2808_v29 }
0x23e0   :  { %v2810_v34 = vadd.f32 %v3421_v44, %v2809_v10 }
0x23e2   :  { %v2814_v41 = vsel %vm2813_vm2, %v3421_v44, %v2810_v34  ;;  %v2588_v44 = vadd.f32 %v4897_v3, %v2233_v20 }
0x23e3   :  { %v2819_v27 = vsel %vm2816_vm3, %v2818_v7, %v2814_v41 }
0x23e4   :  { %v2821_v53 = vmul.f32 2.0, %v2819_v27  ;;  %v2823_v8 = vmul.f32 %v2819_v27, %v4859_v22 }
0x23e6   :  { %v3231_v55 = vadd.f32 -1.0, %v2821_v53 }
0x23e8   :  { %2825 = vrot.lane.b32.xlu2 %v3231_v55, %s3474_s25 }
0x243d   :  { %v2644_v11 = vpop.f32.mrf.mxu0 }
0x243e   :  { %v5002_v23 = vadd.f32 %v4999_v31, %v2644_v11 }
0x2440   :  { %3220 = vst.msk [vmem:[%s5193_s19 + $0x30] sm:$0xff] %vm77_vm8, %v5002_v23 }
0x2442   :  { %v2826_v49 = vpop.permute.xlu2 %2825 }
0x2443   :  { %v2828_v19 = vmul.f32 %v2826_v49, %v2819_v27 }
0x2445   :  { %2830 = vrot.lane.b32.xlu0 %v2828_v19, %s3473_s30  ;;  %v2870_v29 = vpop.f32.mrf.mxu0 }
0x24b7   :  { %v2831_v0 = vpop.permute.xlu0 %2830 }
0x24b8   :  { %v5011_v42 = vadd.f32 %v2831_v0, %v2823_v8 }
0x24ba   :  { %3422 = vtanh.f32 %v5011_v42 }
0x24c0   :  { %v3423_v43 = vpop.eup %3422 }
0x24c1   :  { %2836 = vrot.lane.b32.xlu1 %v3423_v43, %s3474_s25 }
0x2533   :  { %v2837_v59 = vpop.permute.xlu1 %2836 }
0x2534   :  { %v2839_v48 = vmul.f32 %v2837_v59, %v2819_v27 }
0x2536   :  { %v5017_v4 = vsub.f32 %v2839_v48, %v2840_v12  ;;  %v3260_v48 = vpack.i.bf16 %v4603_v1, %v4443_v33 }
0x2538   :  { %vm2842_vm4 = vcmp.gt.f32.partialorder %v5017_v4, %v3775_v40 }
0x2539   :  { %v3232_v22 = vsel %vm2842_vm4, 1.0, %v3471_v2 }
0x253a   :  { %2874 = vrot.lane.b32.xlu2 %v3232_v22, %s3473_s30 }
0x2594   :  { %v2875_v40 = vpop.permute.xlu2 %2874 }
0x2595   :  { %v2943_v61 = vadd.f32 %v2875_v40, %v2588_v44  ;;  %3234 = vmatmul.msk.f32.vlgmr.msrb.gmra.mxu1 %vm69_vm0, %v2875_v40 }
0x2597   :  { %3045 = vst.msk [vmem:[#allocation10] sm:$0xff] %vm69_vm0, %v2943_v61  ;;  %v3050_v8 = vsel %vm3049_vm10, %v2943_v61, 0.0 }
0x2612   :  { %v2895_v60 = vpop.f32.mrf.mxu1 }
0x2613   :  { %v2896_v45 = vadd.f32 %v2895_v60, %v2870_v29 }
0x2615   :  { %v2898_v26 = vadd.f32 %v4904_v15, %v2896_v45 }
0x2617   :  { %v3235_v36 = vmul.f32 -1.442695, %v2898_v26 }
0x2619   :  { %3424 = vpow2.f32 %v3235_v36 }
0x261f   :  { %v3425_v21 = vpop.eup %3424 }
0x2620   :  { %v2902_v10 = vadd.f32 1.0, %v3425_v21 }
0x2622   :  { %3426 = vrcp.f32 %v2902_v10  ;;  %v2914_v3 = vand.u32 2147483648, %v2902_v10  ;;  %v2912_v7 = vand.u32 2147483647, %v2902_v10  ;;  %vm2908_vm6 = vweird.f32 %v2902_v10 }
0x2624   :  { %v2915_v27 = vor.u32 1.1754944e-38, %v2914_v3  ;;  %vm2913_vm9 = vcmp.eq.f32.partialorder %v2912_v7, 8.507059e+37 }
0x2628   :  { %v3427_v63 = vpop.eup %3426 }
0x2629   :  { %v2904_v57 = vmul.f32 %v3427_v63, %v2902_v10  ;;  %vm2909_vm5 = vweird.f32 %v3427_v63 }
0x262a   :  { %vm2910_vm7 = vmor %vm2908_vm6, %vm2909_vm5 }
0x262b   :  { %v2905_v52 = vsub.f32 1.0, %v2904_v57 }
0x262d   :  { %v2906_v34 = vmul.f32 %v3427_v63, %v2905_v52 }
0x262f   :  { %v2907_v41 = vadd.f32 %v3427_v63, %v2906_v34 }
0x2631   :  { %v2911_v53 = vsel %vm2910_vm7, %v3427_v63, %v2907_v41  ;;  %v2973_v41 = vmul.f32 %v4985_v39, %v4989_v24 }
0x2632   :  { %v2916_v55 = vsel %vm2913_vm9, %v2915_v27, %v2911_v53 }
0x2633   :  { %v2918_v15 = vmul.f32 2.0, %v2916_v55  ;;  %v2920_v0 = vmul.f32 %v2916_v55, %v4916_v32 }
0x2635   :  { %v3236_v11 = vadd.f32 -1.0, %v2918_v15 }
0x2637   :  { %2922 = vrot.lane.b32.xlu0 %v3236_v11, %s3474_s25 }
0x26a9   :  { %v2923_v49 = vpop.permute.xlu0 %2922 }
0x26aa   :  { %v2925_v19 = vmul.f32 %v2923_v49, %v2916_v55 }
0x26ac   :  { %2927 = vrot.lane.b32.xlu1 %v2925_v19, %s3473_s30 }
0x26d6   :  { %3051 = vadd.xlane.f32.xlu1 %v3050_v8 }
0x271e   :  { %v2928_v43 = vpop.permute.xlu1 %2927 }
0x271f   :  { %v5036_v59 = vadd.f32 %v2928_v43, %v2920_v0 }
0x2721   :  { %3428 = vtanh.f32 %v5036_v59 }
0x2727   :  { %v3429_v12 = vpop.eup %3428 }
0x2728   :  { %2933 = vrot.lane.b32.xlu2 %v3429_v12, %s3474_s25 }
0x2730   :  { %520 = vrot.lane.b32.xlu2 %v4101_v37, %s3476_s17  ;;  %v5052_v37 = vadd.f32 %v2647_v46, %v5002_v23  ;;  %v3217_v23 = vsel %vm2584_vm11, 1.0, %v3471_v2 }
0x2731   :  { %v2937_v56 = vmul.f32 %v3217_v23, %v4064_v6 }
0x2738   :  { %877 = vrot.lane.b32.xlu2 %v4106_v50, %s3476_s17 }
0x2740   :  { %3261 = vrot.lane.b32.xlu2 %v3260_v48, %s3477_s3 }
0x2748   :  { %1942 = vrot.lane.b32.xlu2 %v4844_v58, %s3476_s17  ;;  %v3265_v58 = vpack.i.bf16 %v4949_v62, %v4753_v30 }
0x2749   :  { %v3052_v32 = vpop.xlane.xlu1 %3051 }
0x274a   :  { %v3053_v22 = vrot.slane %v3052_v32, 4 }
0x274c   :  { %v3054_v16 = vadd.f32 %v3053_v22, %v3052_v32 }
0x274e   :  { %v3055_v54 = vrot.slane %v3054_v16, 2 }
0x2750   :  { %2652 = vrot.lane.b32.xlu2 %v5052_v37, %s3476_s17  ;;  %v3056_v50 = vadd.f32 %v3055_v54, %v3054_v16 }
0x2752   :  { %v3057_v33 = vrot.slane %v3056_v50, 1 }
0x2754   :  { %v3058_v1 = vadd.f32 %v3057_v33, %v3056_v50 }
0x2756   :  { %3243 = vpush %v3058_v1 }
0x2758   :  { %3266 = vrot.lane.b32.xlu2 %v3265_v58, %s3477_s3 }
0x2760   :  { %3022 = vrot.lane.b32.xlu2 %v4922_v25, %s3473_s30 }
0x2768   :  { %3032 = vrot.lane.b32.xlu2 %v5017_v4, %s3473_s30 }
0x2782   :  { %v2934_v13 = vpop.permute.xlu2 %2933 }
0x2783   :  { %v2936_v17 = vmul.f32 %v2934_v13, %v2916_v55 }
0x2785   :  { %v2938_v20 = vsub.f32 %v2936_v17, %v2937_v56 }
0x2787   :  { %vm2939_vm12 = vcmp.gt.f32.partialorder %v2938_v20, %v4064_v6  ;;  %2949 = vrot.lane.b32.xlu0 %v2938_v20, %s3473_s30  ;;  %s3244_s25 = spop %3243  ;;  %v3255_v6 = vpack.i.bf16 %v4230_v35, %v4069_v18  ;;  %s3071_s30 = sshll.u32 %s3478_s12, 4  ;;  %s3072_s30 = int_to_ptr.vmem [resolvable:$true] %s3071_s30 }
0x2788   :  { %v3060_v30 = vstv %s3244_s25  ;;  %v3237_v25 = vsel %vm2939_vm12, 1.0, %v3471_v2 }
0x2789   :  { %v3061_v62 = vmul.f32 0.001953125, %v3060_v30  ;;  %v3270_v4 = vpack.i.bf16 %v3237_v25, %v3217_v23 }
0x278a   :  { %v521_v38 = vpop.permute.xlu2 %520 }
0x278b   :  { %3063 = vst.msk [vmem:[#allocation11] sm:$0x1] %vm3062_vm13, %v3061_v62  ;;  %3271 = vrot.lane.b32.xlu1 %v3270_v4, %s3477_s3 }
0x278c   :  { %524 = vst.msk [vmem:[%s5193_s19] sm:$0xff] %vm523_vm14, %v521_v38  ;;  %3076 = dma.vmem_to_hbm [thread:$0]  %s3072_s30, 16, %s3074_s23, [#allocation12]  }
0x278f   :  { %3256 = vrot.lane.b32.xlu0 %v3255_v6, %s3477_s3 }
0x2792   :  { %v878_v44 = vpop.permute.xlu2 %877 }
0x2793   :  { %3121 = vst.msk [vmem:[%s5193_s19 + $0x8] sm:$0xff] %vm523_vm14, %v878_v44 }
0x2797   :  { %1232 = vrot.lane.b32.xlu0 %v4311_v14, %s3476_s17 }
0x279a   :  { %v3262_v2 = vpop.permute.xlu2 %3261 }
0x279b   :  { %v3263_v26 = vunpack.i.l.bf16 %v3262_v2  ;;  %v3264_v21 = vunpack.i.h.bf16 %v3262_v2 }
0x279f   :  { %1587 = vrot.lane.b32.xlu0 %v4839_v28, %s3476_s17 }
0x27a2   :  { %v1943_v40 = vpop.permute.xlu2 %1942 }
0x27a3   :  { %3181 = vst.msk [vmem:[%s5193_s19 + $0x20] sm:$0xff] %vm523_vm14, %v1943_v40 }
0x27a7   :  { %2297 = vrot.lane.b32.xlu0 %v4849_v51, %s3476_s17 }
0x27aa   :  { %v2653_v18 = vpop.permute.xlu2 %2652 }
0x27ab   :  { %3221 = vst.msk [vmem:[%s5193_s19 + $0x30] sm:$0xff] %vm523_vm14, %v2653_v18 }
0x27af   :  { %3017 = vrot.lane.b32.xlu0 %v4911_v9, %s3475_s4 }
0x27b2   :  { %v3267_v35 = vpop.permute.xlu2 %3266 }
0x27b3   :  { %v3268_v14 = vunpack.i.l.bf16 %v3267_v35  ;;  %v3269_v63 = vunpack.i.h.bf16 %v3267_v35 }
0x27b5   :  { %3182 = vst.msk [vmem:[%s5193_s19 + $0x20] sm:$0xff] %vm529_vm15, %v3268_v14 }
0x27b7   :  { %3027 = vrot.lane.b32.xlu0 %v5011_v42, %s3475_s4 }
0x27ba   :  { %v3023_v28 = vpop.permute.xlu2 %3022 }
0x27bb   :  { %3025 = vst.msk [vmem:[#allocation3] sm:$0xff] %vm69_vm0, %v3023_v28 }
0x27c2   :  { %v3033_v51 = vpop.permute.xlu2 %3032 }
0x27c3   :  { %3035 = vst.msk [vmem:[#allocation5] sm:$0xff] %vm69_vm0, %v3033_v51 }
0x27f9   :  { %v2950_v61 = vpop.permute.xlu0 %2949 }
0x27fa   :  { %3042 = vst.msk [vmem:[#allocation7] sm:$0xff] %vm69_vm0, %v2950_v61  ;;  %3238 = vmatmul.msk.f32.vlgmr.msrb.gmra.mxu2 %vm69_vm0, %v2950_v61 }
0x27fd   :  { %v3272_v9 = vpop.permute.xlu1 %3271 }
0x27fe   :  { %v3273_v29 = vunpack.i.l.bf16 %v3272_v9  ;;  %v3274_v24 = vunpack.i.h.bf16 %v3272_v9 }
0x2800   :  { %3222 = vst.msk [vmem:[%s5193_s19 + $0x30] sm:$0xff] %vm529_vm15, %v3273_v29 }
0x2801   :  { %v3257_v60 = vpop.permute.xlu0 %3256 }
0x2802   :  { %v3259_v42 = vunpack.i.h.bf16 %v3257_v60  ;;  %v3258_v45 = vunpack.i.l.bf16 %v3257_v60 }
0x2804   :  { %530 = vst.msk [vmem:[%s5193_s19] sm:$0xff] %vm529_vm15, %v3258_v45 }
0x2805   :  { %3122 = vst.msk [vmem:[%s5193_s19 + $0x8] sm:$0xff] %vm529_vm15, %v3259_v42 }
0x2809   :  { %v1233_v36 = vpop.permute.xlu0 %1232 }
0x280a   :  { %3141 = vst.msk [vmem:[%s5193_s19 + $0x10] sm:$0xff] %vm523_vm14, %v1233_v36 }
0x280b   :  { %3142 = vst.msk [vmem:[%s5193_s19 + $0x10] sm:$0xff] %vm529_vm15, %v3263_v26 }
0x2811   :  { %v1588_v10 = vpop.permute.xlu0 %1587 }
0x2812   :  { %3161 = vst.msk [vmem:[%s5193_s19 + $0x18] sm:$0xff] %vm523_vm14, %v1588_v10 }
0x2813   :  { %3162 = vst.msk [vmem:[%s5193_s19 + $0x18] sm:$0xff] %vm529_vm15, %v3264_v21 }
0x2819   :  { %v2298_v57 = vpop.permute.xlu0 %2297 }
0x281a   :  { %3201 = vst.msk [vmem:[%s5193_s19 + $0x28] sm:$0xff] %vm523_vm14, %v2298_v57 }
0x281b   :  { %3202 = vst.msk [vmem:[%s5193_s19 + $0x28] sm:$0xff] %vm529_vm15, %v3269_v63 }
0x2821   :  { %v3018_v52 = vpop.permute.xlu0 %3017 }
0x2822   :  { %3020 = vst.msk [vmem:[#allocation2] sm:$0xff] %vm69_vm0, %v3018_v52 }
0x2829   :  { %v3028_v3 = vpop.permute.xlu0 %3027 }
0x282a   :  { %3030 = vst.msk [vmem:[#allocation4] sm:$0xff] %vm69_vm0, %v3028_v3 }
0x287d   :  { %v2970_v34 = vpop.f32.mrf.mxu2 }
0x287e   :  { %v2971_v7 = vadd.f32 %v4979_v5, %v2970_v34  ;;  %v3002_v5 = vmul.f32 %v4834_v47, %v5052_v37 }
0x2880   :  { %v2974_v27 = vadd.f32 %v2973_v41, %v2971_v7 }
0x2882   :  { %3043 = vst.msk [vmem:[#allocation8] sm:$0xff] %vm69_vm0, %v2974_v27  ;;  %3239 = vmatmul.msk.f32.vlgmr.msrb.gmra.mxu3 %vm69_vm0, %v2974_v27 }
0x2905   :  { %v2999_v53 = vpop.f32.mrf.mxu3 }
0x2906   :  { %v3000_v55 = vadd.f32 %v4999_v31, %v2999_v53 }
0x2908   :  { %v3003_v39 = vadd.f32 %v3002_v5, %v3000_v55  ;;  %3240 = vst.msk [vmem:[%s5193_s19 + $0x38] sm:$0xff] %vm77_vm8, %v3000_v55 }
0x290a   :  { %3044 = vst.msk [vmem:[#allocation9] sm:$0xff] %vm77_vm8, %v3003_v39  ;;  %3007 = vrot.lane.b32.xlu0 %v3003_v39, %s3476_s17 }
0x2912   :  { %3037 = vrot.lane.b32.xlu0 %v5036_v59, %s3475_s4 }
0x297c   :  { %v3008_v15 = vpop.permute.xlu0 %3007 }
0x297d   :  { %3241 = vst.msk [vmem:[%s5193_s19 + $0x38] sm:$0xff] %vm523_vm14, %v3008_v15 }
0x297e   :  { %3242 = vst.msk [vmem:[%s5193_s19 + $0x38] sm:$0xff] %vm529_vm15, %v3274_v24 }
0x2984   :  { %v3038_v47 = vpop.permute.xlu0 %3037 }
0x2985   :  { %3040 = vst.msk [vmem:[#allocation6] sm:$0xff] %vm69_vm0, %v3038_v47 }
0x2986   :  { %3469 = dma.done.wait [#allocation12], 16  }
0x2987   :  { %3470 = vsyncadd [#allocation12], 4294967280 }
0x2988   :  { %3083 = vsyncpa [#allocation12], 1 }

</bundles_post_ra>
